<compile_context>
chip_gen: v6e
topology: v6e:2x2x1
jax: 0.10.0
libtpu: 0.0.40
codegen_flags: <defaults>
</compile_context>

<pallas_src>
import functools

import jax
import jax.numpy as jnp
from jax.experimental import pallas as pl
from jax.experimental.pallas import tpu as pltpu

DEFAULT_TB = 2048          # requested batch tile (loop path); MXU path caps at 1024
_ONE_HOT_TB_CAP = 1024     # bounds the (TB, U)/(TB, I) one-hot transients
_ONE_HOT_MAX_ROWS = 2048   # one-hot MXU gather only when both tables are this small
_LANE = 128
_SUBLANE = 8


def _round_up(x, m):
    return ((x + m - 1) // m) * m


def _pad2_bytes(rows, cols, itemsize=4):
    """Physical VMEM bytes of a 2-D f32/int32 buffer, including (8, 128) tile padding."""
    return (_round_up(max(int(rows), 1), _SUBLANE)
            * _round_up(max(int(cols), 1), _LANE) * itemsize)


def _vmem_capacity_bytes():
    try:
        cap = getattr(pltpu.get_tpu_info(), "vmem_capacity_bytes", None)
        if cap:
            return int(cap)
    except Exception:
        pass
    return 64 << 20            # conservative fallback = v7x per-TensorCore VMEM


# ----------------------------------------------------------------------------
# Kernels
# ----------------------------------------------------------------------------
def _mf_onehot_kernel(uid_ref, iid_ref, u_tab_ref, i_tab_ref, o_ref):
    # uid_ref / iid_ref : VMEM (TB, 1) int32 id columns for this batch tile
    # u_tab_ref         : VMEM (U, E) f32, whole table resident (single copy)
    # i_tab_ref         : VMEM (I, E) f32
    # o_ref             : VMEM (TB, 1) f32 per-row dot products
    tb = uid_ref.shape[0]
    nu = u_tab_ref.shape[0]
    ni = i_tab_ref.shape[0]
    # One-hot row-selection masks (2-D iota + compare on the VPU), then two small
    # MXU matmuls gather all TB rows at once -- no serial (1, E) load/store loop
    # and no per-row scalar address setup.
    one_u = (jax.lax.broadcasted_iota(jnp.int32, (tb, nu), 1)
             == uid_ref[...]).astype(jnp.float32)
    one_i = (jax.lax.broadcasted_iota(jnp.int32, (tb, ni), 1)
             == iid_ref[...]).astype(jnp.float32)
    u_rows = jnp.dot(one_u, u_tab_ref[...], preferred_element_type=jnp.float32)  # (TB, E)
    i_rows = jnp.dot(one_i, i_tab_ref[...], preferred_element_type=jnp.float32)  # (TB, E)
    # VPU multiply + lane reduce; output stays (TB, 1) -- its traffic is ~1/E of
    # the gather traffic, and its 128-lane padding is counted in the VMEM budget.
    o_ref[...] = jnp.sum(u_rows * i_rows, axis=-1, keepdims=True)


def _mf_loop_kernel(uid_ref, iid_ref, u_tab_ref, i_tab_ref, o_ref, prod_scr):
    # uid_ref / iid_ref : SMEM (1, TB) int32 id blocks for this batch tile
    # u_tab_ref/i_tab_ref : VMEM whole tables (single resident copy)
    # o_ref             : VMEM (TB, 1) f32
    # prod_scr          : VMEM (TB, E) f32 -- fused u*v product rows
    tb = prod_scr.shape[0]

    def gather(b, carry):
        uid = uid_ref[0, b]
        iid = iid_ref[0, b]
        # Fused gather+multiply: two (1, E) loads but only ONE (1, E) store per
        # row (the vector-store slot is the binding slot of this loop, esp. v5e).
        prod_scr[pl.ds(b, 1), :] = (u_tab_ref[pl.ds(uid, 1), :]
                                    * i_tab_ref[pl.ds(iid, 1), :])
        return carry

    # Capped unroll keeps code size bounded at large TB while letting the
    # scheduler pipeline the vld/vst chains.
    jax.lax.fori_loop(0, tb, gather, 0, unroll=8)
    o_ref[...] = jnp.sum(prod_scr[...], axis=-1, keepdims=True)


# ----------------------------------------------------------------------------
# VMEM accounting (physical, (8,128)-padded bytes) and tile selection
# ----------------------------------------------------------------------------
def _tables_vmem_bytes(nu, ni, e):
    # memory_space=VMEM whole-array operands: one resident copy each, no double buffer.
    return _pad2_bytes(nu, e) + _pad2_bytes(ni, e)


def _onehot_vmem_bytes(nu, ni, e, tb):
    ids = 2 * 2 * _pad2_bytes(tb, 1)          # two id inputs, double-buffered blocks
    out = 2 * _pad2_bytes(tb, 1)              # double-buffered (TB, 1) out block
    transient = _pad2_bytes(tb, nu) + _pad2_bytes(tb, ni) + 2 * _pad2_bytes(tb, e)
    return _tables_vmem_bytes(nu, ni, e) + ids + out + transient + (2 << 20)


def _loop_vmem_bytes(nu, ni, e, tb):
    out = 2 * _pad2_bytes(tb, 1)
    scratch = _pad2_bytes(tb, e)
    return _tables_vmem_bytes(nu, ni, e) + out + scratch + (2 << 20)


def _pick_tb(batch, requested, cap):
    """Batch tile: multiple of 8, as large as allowed, and >= 2 grid tiles when possible."""
    b8 = _round_up(max(int(batch), 1), _SUBLANE)
    tb = min((max(int(requested), _SUBLANE) // _SUBLANE) * _SUBLANE,
             (max(int(cap), _SUBLANE) // _SUBLANE) * _SUBLANE,
             b8)
    if b8 >= 2 * _SUBLANE:
        # Keep >= 2 tiles so dimension_semantics=("parallel",) can shard the
        # batch-tile grid across both v7x TensorCores.
        tb = min(tb, _round_up(pl.cdiv(int(batch), 2), _SUBLANE))
    return max(_SUBLANE, tb)


# ----------------------------------------------------------------------------
# Wrapper
# ----------------------------------------------------------------------------
@functools.partial(jax.jit, static_argnames=("tb", "path"))
def matrix_factorization(user_ids, item_ids, user_emb, item_emb, *,
                         tb=DEFAULT_TB, path="auto"):
    """out[b] = sum_e user_emb[user_ids[b], e] * item_emb[item_ids[b], e]  -> (B,) f32."""
    if path not in ("auto", "onehot", "loop"):
        raise ValueError(f"unknown path {path!r}")
    B = user_ids.shape[0]
    U, E = user_emb.shape
    I_, E2 = item_emb.shape
    assert E == E2, "user/item embedding sizes must match"

    vmem_cap = _vmem_capacity_bytes()
    budget = (7 * vmem_cap) // 10            # leave headroom for compiler scratch

    if path == "auto":
        tb_oh = _pick_tb(B, tb, _ONE_HOT_TB_CAP)
        if max(U, I_) <= _ONE_HOT_MAX_ROWS and _onehot_vmem_bytes(U, I_, E, tb_oh) <= budget:
            path = "onehot"
        else:
            path = "loop"

    tb_eff = _pick_tb(B, tb, _ONE_HOT_TB_CAP if path == "onehot" else tb)
    n_tiles = pl.cdiv(B, tb_eff)
    b_pad = n_tiles * tb_eff

    # PyTorch raises on out-of-range ids; a Pallas VMEM access has no runtime
    # bounds check, so clamp instead (documented semantic difference).
    uid = jnp.clip(user_ids.astype(jnp.int32), 0, U - 1)
    iid = jnp.clip(item_ids.astype(jnp.int32), 0, I_ - 1)
    uid = jnp.zeros((b_pad,), jnp.int32).at[:B].set(uid)     # padded rows gather row 0
    iid = jnp.zeros((b_pad,), jnp.int32).at[:B].set(iid)

    u_tab = user_emb.astype(jnp.float32)
    i_tab = item_emb.astype(jnp.float32)

    need = (_onehot_vmem_bytes if path == "onehot" else _loop_vmem_bytes)(U, I_, E, tb_eff)
    if need > budget:
        raise ValueError(
            f"Embedding tables need ~{need / 2**20:.1f} MiB of (padded) VMEM "
            f"(budget {budget / 2**20:.1f} MiB on this TPU generation); too large "
            "for the resident-table kernels. "
            "TODO(synk): add an HBM (pl.ANY) + async-DMA row-gather path."
        )
    vmem_limit = int(min(max(need + (4 << 20), 32 << 20), (9 * vmem_cap) // 10))

    table_spec = pl.BlockSpec(memory_space=pltpu.MemorySpace.VMEM)   # single resident copy
    out_spec = pl.BlockSpec((tb_eff, 1), lambda i: (i, 0))
    out_shape = jax.ShapeDtypeStruct((b_pad, 1), jnp.float32)
    cparams = pltpu.CompilerParams(
        dimension_semantics=("parallel",),       # batch tiles shard across TCs (v7x)
        vmem_limit_bytes=vmem_limit,
    )

    if path == "onehot":
        out = pl.pallas_call(
            _mf_onehot_kernel,
            out_shape=out_shape,
            grid=(n_tiles,),
            in_specs=[
                pl.BlockSpec((tb_eff, 1), lambda i: (i, 0)),   # uid column (VMEM)
                pl.BlockSpec((tb_eff, 1), lambda i: (i, 0)),   # iid column (VMEM)
                table_spec,
                table_spec,
            ],
            out_specs=out_spec,
            compiler_params=cparams,
        )(uid.reshape(b_pad, 1), iid.reshape(b_pad, 1), u_tab, i_tab)
    else:
        id_spec = pl.BlockSpec((1, tb_eff), lambda i: (i, 0),
                               memory_space=pltpu.MemorySpace.SMEM)
        out = pl.pallas_call(
            _mf_loop_kernel,
            out_shape=out_shape,
            grid=(n_tiles,),
            in_specs=[id_spec, id_spec, table_spec, table_spec],
            out_specs=out_spec,
            scratch_shapes=[pltpu.VMEM((tb_eff, E), jnp.float32)],
            compiler_params=cparams,
        )(uid.reshape(n_tiles, tb_eff), iid.reshape(n_tiles, tb_eff), u_tab, i_tab)

    return out[:B, 0]                            # (B,) f32, matching torch's .sum(dim=1)


if __name__ == "__main__":
    # Small shapes that still exercise a multi-tile grid and the batch-padding path.
    num_users, num_items, emb_size = 512, 384, 32
    batch = 1000

    key = jax.random.PRNGKey(0)
    k_u, k_i, k_uid, k_iid = jax.random.split(key, 4)

    # nn.Embedding default init ~ N(0, 1).  Snap table values to bf16-representable
    # f32 so the MXU one-hot gather matches the f32 reference tightly regardless of
    # the MXU's f32 pass count; the loop path is exact either way.
    user_emb = jax.random.normal(k_u, (num_users, emb_size), dtype=jnp.float32)
    item_emb = jax.random.normal(k_i, (num_items, emb_size), dtype=jnp.float32)
    user_emb = user_emb.astype(jnp.bfloat16).astype(jnp.float32)
    item_emb = item_emb.astype(jnp.bfloat16).astype(jnp.float32)

    user_ids = jax.random.randint(k_uid, (batch,), 0, num_users, dtype=jnp.int32)
    item_ids = jax.random.randint(k_iid, (batch,), 0, num_items, dtype=jnp.int32)

    # Pure-JAX reference.
    ref = jnp.sum(user_emb[user_ids] * item_emb[item_ids], axis=1)

    # Primary path (auto -> one-hot MXU gather at these table sizes).
    out = jax.block_until_ready(
        matrix_factorization(user_ids, item_ids, user_emb, item_emb))
    assert out.shape == (batch,)
    assert jnp.allclose(out, ref, atol=1e-4, rtol=1e-4), (out[:8], ref[:8])

    # Fallback path (fused row-gather loop), kept for tables too large for one-hot.
    out_loop = jax.block_until_ready(
        matrix_factorization(user_ids, item_ids, user_emb, item_emb, path="loop"))
    assert out_loop.shape == (batch,)
    assert jnp.allclose(out_loop, ref, atol=1e-4, rtol=1e-4), (out_loop[:8], ref[:8])

    print("KERNEL_OK")
</pallas_src>

<mosaic_0001>
module attributes {stable_mosaic.version = 11 : i64} {
  func.func @_mf_onehot_kernel(%arg0: i32, %arg1: memref<504x1xi32, #tpu.memory_space<vmem>>, %arg2: memref<504x1xi32, #tpu.memory_space<vmem>>, %arg3: memref<512x32xf32, #tpu.memory_space<vmem>>, %arg4: memref<384x32xf32, #tpu.memory_space<vmem>>, %arg5: memref<504x1xf32, #tpu.memory_space<vmem>>) attributes {dimension_semantics = [#tpu.dimension_semantics<parallel>], iteration_bounds = array<i64: 2>, scalar_prefetch = 0 : i64, scratch_operands = 0 : i64, tpu.core_type = #tpu.core_type<tc>, window_params = [{transform_indices = @transform_0, window_bounds = array<i64: 504, 1>}, {transform_indices = @transform_1, window_bounds = array<i64: 504, 1>}, {pipeline_mode = #tpu.pipeline_mode<synchronous>, transform_indices = @transform_2, window_bounds = array<i64: 512, 32>}, {pipeline_mode = #tpu.pipeline_mode<synchronous>, transform_indices = @transform_3, window_bounds = array<i64: 384, 32>}, {transform_indices = @transform_4, window_bounds = array<i64: 504, 1>}]} {
    %0 = tpu.iota {dimensions = array<i32: 1>} : vector<504x512xi32>
    %c0 = arith.constant 0 : index
    %c0_0 = arith.constant 0 : index
    %1 = vector.load %arg1[%c0, %c0_0] : memref<504x1xi32, #tpu.memory_space<vmem>>, vector<504x1xi32>
    %2 = vector.broadcast %1 : vector<504x1xi32> to vector<504x512xi32>
    %3 = arith.cmpi eq, %0, %2 : vector<504x512xi32>
    %4 = arith.extui %3 : vector<504x512xi1> to vector<504x512xi32>
    %5 = arith.sitofp %4 : vector<504x512xi32> to vector<504x512xf32>
    %6 = tpu.iota {dimensions = array<i32: 1>} : vector<504x384xi32>
    %c0_1 = arith.constant 0 : index
    %c0_2 = arith.constant 0 : index
    %7 = vector.load %arg2[%c0_1, %c0_2] : memref<504x1xi32, #tpu.memory_space<vmem>>, vector<504x1xi32>
    %8 = vector.broadcast %7 : vector<504x1xi32> to vector<504x384xi32>
    %9 = arith.cmpi eq, %6, %8 : vector<504x384xi32>
    %10 = arith.extui %9 : vector<504x384xi1> to vector<504x384xi32>
    %11 = arith.sitofp %10 : vector<504x384xi32> to vector<504x384xf32>
    %c0_3 = arith.constant 0 : index
    %c0_4 = arith.constant 0 : index
    %12 = vector.load %arg3[%c0_3, %c0_4] : memref<512x32xf32, #tpu.memory_space<vmem>>, vector<512x32xf32>
    %cst = arith.constant dense<0.000000e+00> : vector<504x32xf32>
    %13 = tpu.matmul %5, %12, %cst {dimension_numbers = #tpu.dot_dimension_numbers<[1], [0], [0], [1], [0, 0, 1, 1], [], []>} : vector<504x512xf32>, vector<512x32xf32>, vector<504x32xf32> -> vector<504x32xf32>
    %c0_5 = arith.constant 0 : index
    %c0_6 = arith.constant 0 : index
    %14 = vector.load %arg4[%c0_5, %c0_6] : memref<384x32xf32, #tpu.memory_space<vmem>>, vector<384x32xf32>
    %cst_7 = arith.constant dense<0.000000e+00> : vector<504x32xf32>
    %15 = tpu.matmul %11, %14, %cst_7 {dimension_numbers = #tpu.dot_dimension_numbers<[1], [0], [0], [1], [0, 0, 1, 1], [], []>} : vector<504x384xf32>, vector<384x32xf32>, vector<504x32xf32> -> vector<504x32xf32>
    %16 = arith.mulf %13, %15 : vector<504x32xf32>
    %cst_8 = arith.constant dense<0.000000e+00> : vector<504xf32>
    %17 = vector.multi_reduction <add>, %16, %cst_8 [1] : vector<504x32xf32> to vector<504xf32>
    %18 = vector.shape_cast %17 : vector<504xf32> to vector<504x1xf32>
    %c0_9 = arith.constant 0 : index
    %c0_10 = arith.constant 0 : index
    %19 = vector.load %arg5[%c0_9, %c0_10] : memref<504x1xf32, #tpu.memory_space<vmem>>, vector<504x1xf32>
    tpu.vector_store %arg5[%c0_9, %c0_10], %18 {strides = array<i32>} : memref<504x1xf32, #tpu.memory_space<vmem>>, vector<504x1xf32>,
    return
  }
  func.func @transform_0(%arg0: i32) -> (i32, i32) {
    %c0_i32 = arith.constant 0 : i32
    %c0_i32_0 = arith.constant 0 : i32
    return %arg0, %c0_i32 : i32, i32
  }
  func.func @transform_1(%arg0: i32) -> (i32, i32) {
    %c0_i32 = arith.constant 0 : i32
    %c0_i32_0 = arith.constant 0 : i32
    return %arg0, %c0_i32 : i32, i32
  }
  func.func @transform_2(%arg0: i32) -> (i32, i32) {
    %c0_i32 = arith.constant 0 : i32
    %c0_i32_0 = arith.constant 0 : i32
    %c0_i32_1 = arith.constant 0 : i32
    return %c0_i32, %c0_i32_0 : i32, i32
  }
  func.func @transform_3(%arg0: i32) -> (i32, i32) {
    %c0_i32 = arith.constant 0 : i32
    %c0_i32_0 = arith.constant 0 : i32
    %c0_i32_1 = arith.constant 0 : i32
    return %c0_i32, %c0_i32_0 : i32, i32
  }
  func.func @transform_4(%arg0: i32) -> (i32, i32) {
    %c0_i32 = arith.constant 0 : i32
    %c0_i32_0 = arith.constant 0 : i32
    return %arg0, %c0_i32 : i32, i32
  }
}

</mosaic_0001>

<bundles_post_ra>
// kernel: matrix_factorization.1
= control target key start
LH: loop header
LB: loop body
LE: loop exit
PB: predicated region body
PF: predicated region fallthrough
CT: control target
= control target key end

     0   :  { %s5315_s15 = smov 0   ;;  %s7317_s0 = inlined_call_operand.vmem [shape: s32[1008,1], index: 0, kind: input, shape index: {}]   ;;  %s7318_s1 = inlined_call_operand.vmem [shape: s32[1008,1], index: 1, kind: input, shape index: {}]   ;;  %s7319_s2 = inlined_call_operand.vmem [shape: f32[512,32], index: 2, kind: input, shape index: {}]   ;;  %s7320_s3 = inlined_call_operand.vmem [shape: f32[384,32], index: 3, kind: input, shape index: {}]   ;;  %s7321_s4 = inlined_call_operand.vmem [shape: f32[1008,1], index: 4, kind: output, shape index: {}]  }
   0x1 LB: > { %s4072_s16 = sadd.s32 4294967295, %s5284_s15   ;;  %p4076_p0 = scmp.ge.s32.totalorder %s5284_s15, 1  ;;  %s5284_s15 = sphi %s5315_s15, %s14_s15  }
   0x2   : > { %p174_p1 = scmp.lt.s32.totalorder %s5284_s15, 3 }
   0x4   : > { %p175_p2 = pnand %p4076_p0, %p174_p1 }
   0x6   : > { %178 = sbr.rel (%p175_p2) target bundleno = 983 (0x3d7), region = 36 }
   0xb   : > { %s205_s17 = smul.u32 63, %s4072_s16  ;;  %v2070_v0 = vld [vmem:[%s7319_s2 + $0x78] sm:$0xff]  ;;  %v5286_v2 = vmov 0   ;;  %v5287_v3 = vmov 0.0   ;;  %v2069_v4 = vld [vmem:[%s7319_s2 + $0x70] sm:$0xff]  ;;  %v2068_v6 = vld [vmem:[%s7319_s2 + $0x68] sm:$0xff] }
   0xc   : > { %v2102_v1 = vld [vmem:[%s7319_s2 + $0x178] sm:$0xff]  ;;  %5277 = vset.pattern.permute.xlu1 %v5286_v2  ;;  %5276 = vset.pattern.permute.xlu0 %v5286_v2  ;;  %v2101_v5 = vld [vmem:[%s7319_s2 + $0x170] sm:$0xff]  ;;  %v2100_v7 = vld [vmem:[%s7319_s2 + $0x168] sm:$0xff] }
   0xd   : > { %p206_p3 = scmp.lt.s32.totalorder %s205_s17, 125  ;;  %2119 = vmatprep.subr.mxu0 %v5287_v3  ;;  %2499 = vmatprep.subr.mxu1 %v5287_v3  ;;  %v2067_v8 = vld [vmem:[%s7319_s2 + $0x60] sm:$0xff]  ;;  %v2066_v12 = vld [vmem:[%s7319_s2 + $0x58] sm:$0xff]  ;;  %v2065_v16 = vld [vmem:[%s7319_s2 + $0x50] sm:$0xff] }
   0xe   : > { %2120 = vmatpush1.msra.mxu0 %v2070_v0  ;;  %2500 = vmatpush1.msra.mxu1 %v2102_v1  ;;  %v2099_v9 = vld [vmem:[%s7319_s2 + $0x160] sm:$0xff]  ;;  %v2098_v13 = vld [vmem:[%s7319_s2 + $0x158] sm:$0xff]  ;;  %v2097_v17 = vld [vmem:[%s7319_s2 + $0x150] sm:$0xff] }
   0xf   : > { %s7353_s17 = smov (!%p206_p3, %s205_s17), 125  ;;  %2121 = vmatprep.subr.mxu0 %v5287_v3  ;;  %2501 = vmatprep.subr.mxu1 %v5287_v3  ;;  %v2064_v20 = vld [vmem:[%s7319_s2 + $0x48] sm:$0xff]  ;;  %v2063_v22 = vld [vmem:[%s7319_s2 + $0x40] sm:$0xff]  ;;  %v2062_v26 = vld [vmem:[%s7319_s2 + $0x38] sm:$0xff] }
  0x10   : > { %2122 = vmatpush1.msra.mxu0 %v2069_v4  ;;  %2502 = vmatpush1.msra.mxu1 %v2101_v5  ;;  %s5345_s30 = sshll.u32 %s7353_s17, 3  ;;  %v2096_v21 = vld [vmem:[%s7319_s2 + $0x148] sm:$0xff]  ;;  %v2095_v23 = vld [vmem:[%s7319_s2 + $0x140] sm:$0xff]  ;;  %v2094_v27 = vld [vmem:[%s7319_s2 + $0x138] sm:$0xff] }
  0x11   : > { %2123 = vmatprep.subr.mxu0 %v5287_v3  ;;  %2503 = vmatprep.subr.mxu1 %v5287_v3  ;;  %s5353_s7 = scalar_lea.vmem %s7317_s0, %s5345_s30  ;;  %v2061_v30 = vld [vmem:[%s7319_s2 + $0x30] sm:$0xff]  ;;  %v2060_v32 = vld [vmem:[%s7319_s2 + $0x28] sm:$0xff]  ;;  %v2059_v36 = vld [vmem:[%s7319_s2 + $0x20] sm:$0xff]  ;;  %s5657_s11 = scalar_lea.vmem %s7318_s1, %s5345_s30 }
  0x12   : > { %2124 = vmatpush1.msra.mxu0 %v2068_v6  ;;  %2504 = vmatpush1.msra.mxu1 %v2100_v7  ;;  %v230_v10 = vld [vmem:[%s5353_s7 + $0x10] sm:$0xff]  ;;  %v228_v11 = vld [vmem:[%s5353_s7] sm:$0xff]  ;;  %v231_v14 = vld [vmem:[%s5353_s7 + $0x18] sm:$0xff] }
  0x13   : > { %2125 = vmatprep.subr.mxu0 %v5287_v3  ;;  %2505 = vmatprep.subr.mxu1 %v5287_v3  ;;  %v229_v15 = vld [vmem:[%s5353_s7 + $0x8] sm:$0xff]  ;;  %v232_v19 = vld [vmem:[%s5353_s7 + $0x20] sm:$0xff]  ;;  %v235_v24 = vld [vmem:[%s5353_s7 + $0x38] sm:$0xff] }
  0x14   : > { %298 = vperm.xlu1 %5277, %v230_v10   ;;  %292 = vperm.xlu0 %5276, %v228_v11   ;;  %v233_v18 = vld [vmem:[%s5353_s7 + $0x28] sm:$0xff]  ;;  %v234_v25 = vld [vmem:[%s5353_s7 + $0x30] sm:$0xff]  ;;  %v236_v29 = vld [vmem:[%s5353_s7 + $0x40] sm:$0xff] }
  0x15   : > { %2126 = vmatpush1.msra.mxu0 %v2067_v8  ;;  %2506 = vmatpush1.msra.mxu1 %v2099_v9  ;;  %v237_v28 = vld [vmem:[%s5353_s7 + $0x48] sm:$0xff]  ;;  %v2093_v31 = vld [vmem:[%s7319_s2 + $0x130] sm:$0xff]  ;;  %v239_v34 = vld [vmem:[%s5353_s7 + $0x58] sm:$0xff] }
  0x16   : > { %2127 = vmatprep.subr.mxu0 %v5287_v3  ;;  %2507 = vmatprep.subr.mxu1 %v5287_v3  ;;  %v2092_v33 = vld [vmem:[%s7319_s2 + $0x128] sm:$0xff]  ;;  %v238_v35 = vld [vmem:[%s5353_s7 + $0x50] sm:$0xff]  ;;  %v2091_v37 = vld [vmem:[%s7319_s2 + $0x120] sm:$0xff] }
  0x17   : > { %2128 = vmatpush1.msra.mxu0 %v2066_v12  ;;  %2508 = vmatpush1.msra.mxu1 %v2098_v13  ;;  %v241_v38 = vld [vmem:[%s5353_s7 + $0x68] sm:$0xff]  ;;  %v240_v39 = vld [vmem:[%s5353_s7 + $0x60] sm:$0xff]  ;;  %v2058_v40 = vld [vmem:[%s7319_s2 + $0x18] sm:$0xff] }
  0x18   : > { %301 = vperm.xlu1 %5277, %v231_v14   ;;  %295 = vperm.xlu0 %5276, %v229_v15   ;;  %v2090_v41 = vld [vmem:[%s7319_s2 + $0x118] sm:$0xff]  ;;  %v2057_v42 = vld [vmem:[%s7319_s2 + $0x10] sm:$0xff]  ;;  %v2056_v46 = vld [vmem:[%s7319_s2 + $0x8] sm:$0xff] }
  0x19   : > { %2129 = vmatprep.subr.mxu0 %v5287_v3  ;;  %2509 = vmatprep.subr.mxu1 %v5287_v3  ;;  %v2089_v43 = vld [vmem:[%s7319_s2 + $0x110] sm:$0xff]  ;;  %v243_v44 = vld [vmem:[%s5353_s7 + $0x78] sm:$0xff]  ;;  %v2088_v47 = vld [vmem:[%s7319_s2 + $0x108] sm:$0xff] }
  0x1a   : > { %2130 = vmatpush1.msra.mxu0 %v2065_v16  ;;  %2510 = vmatpush1.msra.mxu1 %v2097_v17  ;;  %v242_v45 = vld [vmem:[%s5353_s7 + $0x70] sm:$0xff]  ;;  %v245_v48 = vld [vmem:[%s5353_s7 + $0x88] sm:$0xff]  ;;  %v244_v49 = vld [vmem:[%s5353_s7 + $0x80] sm:$0xff] }
  0x1b   : > { %2131 = vmatprep.subr.mxu0 %v5287_v3  ;;  %2511 = vmatprep.subr.mxu1 %v5287_v3  ;;  %v2055_v50 = vld [vmem:[%s7319_s2] sm:$0xff]  ;;  %v2086_v52 = vld [vmem:[%s7319_s2 + $0xf8] sm:$0xff]  ;;  %v246_v55 = vld [vmem:[%s5353_s7 + $0x90] sm:$0xff] }
  0x1c   : > { %307 = vperm.xlu1 %5277, %v233_v18   ;;  %304 = vperm.xlu0 %5276, %v232_v19   ;;  %v2087_v51 = vld [vmem:[%s7319_s2 + $0x100] sm:$0xff]  ;;  %v2118_v53 = vld [vmem:[%s7319_s2 + $0x1f8] sm:$0xff]  ;;  %v2085_v56 = vld [vmem:[%s7319_s2 + $0xf0] sm:$0xff] }
  0x1d   : > { %2132 = vmatpush1.msra.mxu0 %v2064_v20  ;;  %2512 = vmatpush1.msra.mxu1 %v2096_v21  ;;  %v247_v54 = vld [vmem:[%s5353_s7 + $0x98] sm:$0xff]  ;;  %v2117_v57 = vld [vmem:[%s7319_s2 + $0x1f0] sm:$0xff]  ;;  %v249_v58 = vld [vmem:[%s5353_s7 + $0xa8] sm:$0xff] }
  0x1e   : > { %2133 = vmatprep.subr.mxu0 %v5287_v3  ;;  %2513 = vmatprep.subr.mxu1 %v5287_v3  ;;  %v248_v59 = vld [vmem:[%s5353_s7 + $0xa0] sm:$0xff]  ;;  %v2084_v60 = vld [vmem:[%s7319_s2 + $0xe8] sm:$0xff]  ;;  %v251_v0 = vld [vmem:[%s5353_s7 + $0xb8] sm:$0xff] }
  0x1f   : > { %2134 = vmatpush1.msra.mxu0 %v2063_v22  ;;  %2514 = vmatpush1.msra.mxu1 %v2095_v23  ;;  %v2116_v61 = vld [vmem:[%s7319_s2 + $0x1e8] sm:$0xff]  ;;  %v2083_v62 = vld [vmem:[%s7319_s2 + $0xe0] sm:$0xff]  ;;  %v250_v1 = vld [vmem:[%s5353_s7 + $0xb0] sm:$0xff] }
  0x20   : > { %313 = vperm.xlu1 %5277, %v235_v24   ;;  %310 = vperm.xlu0 %5276, %v234_v25   ;;  %v2115_v63 = vld [vmem:[%s7319_s2 + $0x1e0] sm:$0xff]  ;;  %v2082_v2 = vld [vmem:[%s7319_s2 + $0xd8] sm:$0xff]  ;;  %v253_v5 = vld [vmem:[%s5353_s7 + $0xc8] sm:$0xff] }
  0x21   : > { %2135 = vmatprep.subr.mxu0 %v5287_v3  ;;  %2515 = vmatprep.subr.mxu1 %v5287_v3  ;;  %v2114_v4 = vld [vmem:[%s7319_s2 + $0x1d8] sm:$0xff]  ;;  %v252_v6 = vld [vmem:[%s5353_s7 + $0xc0] sm:$0xff]  ;;  %v2081_v7 = vld [vmem:[%s7319_s2 + $0xd0] sm:$0xff] }
  0x22   : > { %2136 = vmatpush1.msra.mxu0 %v2062_v26  ;;  %2516 = vmatpush1.msra.mxu1 %v2094_v27  ;;  %v2113_v8 = vld [vmem:[%s7319_s2 + $0x1d0] sm:$0xff]  ;;  %v2080_v9 = vld [vmem:[%s7319_s2 + $0xc8] sm:$0xff]  ;;  %v255_v11 = vld [vmem:[%s5353_s7 + $0xd8] sm:$0xff] }
  0x23   : > { %2137 = vmatprep.subr.mxu0 %v5287_v3  ;;  %2517 = vmatprep.subr.mxu1 %v5287_v3  ;;  %v2112_v10 = vld [vmem:[%s7319_s2 + $0x1c8] sm:$0xff]  ;;  %v254_v12 = vld [vmem:[%s5353_s7 + $0xd0] sm:$0xff]  ;;  %v2079_v13 = vld [vmem:[%s7319_s2 + $0xc0] sm:$0xff] }
  0x24   : > { %319 = vperm.xlu1 %5277, %v237_v28   ;;  %316 = vperm.xlu0 %5276, %v236_v29   ;;  %v2111_v14 = vld [vmem:[%s7319_s2 + $0x1c0] sm:$0xff]  ;;  %v257_v15 = vld [vmem:[%s5353_s7 + $0xe8] sm:$0xff]  ;;  %v2078_v17 = vld [vmem:[%s7319_s2 + $0xb8] sm:$0xff] }
  0x25   : > { %2138 = vmatpush1.msra.mxu0 %v2061_v30  ;;  %2518 = vmatpush1.msra.mxu1 %v2093_v31  ;;  %v256_v16 = vld [vmem:[%s5353_s7 + $0xe0] sm:$0xff]  ;;  %v2110_v18 = vld [vmem:[%s7319_s2 + $0x1b8] sm:$0xff]  ;;  %v2077_v19 = vld [vmem:[%s7319_s2 + $0xb0] sm:$0xff] }
  0x26   : > { %2139 = vmatprep.subr.mxu0 %v5287_v3  ;;  %2519 = vmatprep.subr.mxu1 %v5287_v3  ;;  %v2109_v20 = vld [vmem:[%s7319_s2 + $0x1b0] sm:$0xff]  ;;  %v259_v21 = vld [vmem:[%s5353_s7 + $0xf8] sm:$0xff]  ;;  %v2076_v23 = vld [vmem:[%s7319_s2 + $0xa8] sm:$0xff] }
  0x27   : > { %2140 = vmatpush1.msra.mxu0 %v2060_v32  ;;  %2520 = vmatpush1.msra.mxu1 %v2092_v33  ;;  %v258_v22 = vld [vmem:[%s5353_s7 + $0xf0] sm:$0xff]  ;;  %v2108_v24 = vld [vmem:[%s7319_s2 + $0x1a8] sm:$0xff]  ;;  %v260_v26 = vld [vmem:[%s5353_s7 + $0x100] sm:$0xff] }
  0x28   : > { %325 = vperm.xlu1 %5277, %v239_v34   ;;  %322 = vperm.xlu0 %5276, %v238_v35   ;;  %v261_v25 = vld [vmem:[%s5353_s7 + $0x108] sm:$0xff]  ;;  %v2075_v27 = vld [vmem:[%s7319_s2 + $0xa0] sm:$0xff]  ;;  %v2074_v29 = vld [vmem:[%s7319_s2 + $0x98] sm:$0xff] }
  0x29   : > { %2141 = vmatprep.subr.mxu0 %v5287_v3  ;;  %2521 = vmatprep.subr.mxu1 %v5287_v3  ;;  %v2107_v28 = vld [vmem:[%s7319_s2 + $0x1a0] sm:$0xff]  ;;  %v2106_v30 = vld [vmem:[%s7319_s2 + $0x198] sm:$0xff]  ;;  %v262_v32 = vld [vmem:[%s5353_s7 + $0x110] sm:$0xff] }
  0x2a   : > { %2142 = vmatpush1.msra.mxu0 %v2059_v36  ;;  %2522 = vmatpush1.msra.mxu1 %v2091_v37  ;;  %v263_v31 = vld [vmem:[%s5353_s7 + $0x118] sm:$0xff]  ;;  %v2073_v33 = vld [vmem:[%s7319_s2 + $0x90] sm:$0xff]  ;;  %v265_v35 = vld [vmem:[%s5353_s7 + $0x128] sm:$0xff] }
  0x2b   : > { %2143 = vmatprep.subr.mxu0 %v5287_v3  ;;  %2523 = vmatprep.subr.mxu1 %v5287_v3  ;;  %v2105_v34 = vld [vmem:[%s7319_s2 + $0x190] sm:$0xff]  ;;  %v264_v36 = vld [vmem:[%s5353_s7 + $0x120] sm:$0xff]  ;;  %v2072_v37 = vld [vmem:[%s7319_s2 + $0x88] sm:$0xff] }
  0x2c   : > { %331 = vperm.xlu1 %5277, %v241_v38   ;;  %328 = vperm.xlu0 %5276, %v240_v39   ;;  %v2104_v38 = vld [vmem:[%s7319_s2 + $0x188] sm:$0xff]  ;;  %v2071_v39 = vld [vmem:[%s7319_s2 + $0x80] sm:$0xff] }
  0x2d   : > { %2144 = vmatpush1.msra.mxu0 %v2058_v40  ;;  %2524 = vmatpush1.msra.mxu1 %v2090_v41  ;;  %v2103_v40 = vld [vmem:[%s7319_s2 + $0x180] sm:$0xff]  ;;  %v267_v41 = vld [vmem:[%s5353_s7 + $0x138] sm:$0xff] }
  0x2e   : > { %2145 = vmatprep.subr.mxu0 %v5287_v3  ;;  %2525 = vmatprep.subr.mxu1 %v5287_v3 }
  0x2f   : > { %2146 = vmatpush1.msra.mxu0 %v2057_v42  ;;  %2526 = vmatpush1.msra.mxu1 %v2089_v43  ;;  %v266_v42 = vld [vmem:[%s5353_s7 + $0x130] sm:$0xff]  ;;  %v269_v43 = vld [vmem:[%s5353_s7 + $0x148] sm:$0xff] }
  0x30   : > { %337 = vperm.xlu1 %5277, %v243_v44   ;;  %334 = vperm.xlu0 %5276, %v242_v45   ;;  %v268_v44 = vld [vmem:[%s5353_s7 + $0x140] sm:$0xff]  ;;  %v271_v45 = vld [vmem:[%s5353_s7 + $0x158] sm:$0xff] }
  0x31   : > { %2147 = vmatprep.subr.mxu0 %v5287_v3  ;;  %2527 = vmatprep.subr.mxu1 %v5287_v3 }
  0x32   : > { %2148 = vmatpush1.msra.mxu0 %v2056_v46  ;;  %2528 = vmatpush1.msra.mxu1 %v2088_v47  ;;  %v270_v46 = vld [vmem:[%s5353_s7 + $0x150] sm:$0xff]  ;;  %v273_v47 = vld [vmem:[%s5353_s7 + $0x168] sm:$0xff] }
  0x33   : > { %2149 = vmatprep.subr.mxu0 %v5287_v3  ;;  %2529 = vmatprep.subr.mxu1 %v5287_v3 }
  0x34   : > { %343 = vperm.xlu1 %5277, %v245_v48   ;;  %340 = vperm.xlu0 %5276, %v244_v49   ;;  %v272_v48 = vld [vmem:[%s5353_s7 + $0x160] sm:$0xff]  ;;  %v275_v49 = vld [vmem:[%s5353_s7 + $0x178] sm:$0xff] }
  0x35   : > { %2150 = vmatpush1.msra.mxu0 %v2055_v50  ;;  %2530 = vmatpush1.msra.mxu1 %v2087_v51  ;;  %v274_v50 = vld [vmem:[%s5353_s7 + $0x170] sm:$0xff]  ;;  %v277_v51 = vld [vmem:[%s5353_s7 + $0x188] sm:$0xff] }
  0x36   : > { %2151 = vmatprep.subr.mxu0 %v5287_v3  ;;  %2531 = vmatprep.subr.mxu1 %v5287_v3 }
  0x37   : > { %2152 = vmatpush2.msra.mxu0 %v2086_v52  ;;  %2532 = vmatpush2.msra.mxu1 %v2118_v53  ;;  %v276_v52 = vld [vmem:[%s5353_s7 + $0x180] sm:$0xff]  ;;  %v279_v53 = vld [vmem:[%s5353_s7 + $0x198] sm:$0xff] }
  0x38   : > { %349 = vperm.xlu1 %5277, %v247_v54   ;;  %346 = vperm.xlu0 %5276, %v246_v55   ;;  %v278_v54 = vld [vmem:[%s5353_s7 + $0x190] sm:$0xff]  ;;  %v281_v55 = vld [vmem:[%s5353_s7 + $0x1a8] sm:$0xff] }
  0x39   : > { %2153 = vmatprep.subr.mxu0 %v5287_v3  ;;  %2533 = vmatprep.subr.mxu1 %v5287_v3 }
  0x3a   : > { %2154 = vmatpush2.msra.mxu0 %v2085_v56  ;;  %2534 = vmatpush2.msra.mxu1 %v2117_v57  ;;  %v280_v56 = vld [vmem:[%s5353_s7 + $0x1a0] sm:$0xff]  ;;  %v283_v57 = vld [vmem:[%s5353_s7 + $0x1b8] sm:$0xff] }
  0x3b   : > { %2155 = vmatprep.subr.mxu0 %v5287_v3  ;;  %2535 = vmatprep.subr.mxu1 %v5287_v3 }
  0x3c   : > { %355 = vperm.xlu1 %5277, %v249_v58   ;;  %352 = vperm.xlu0 %5276, %v248_v59   ;;  %v282_v58 = vld [vmem:[%s5353_s7 + $0x1b0] sm:$0xff]  ;;  %v285_v59 = vld [vmem:[%s5353_s7 + $0x1c8] sm:$0xff] }
  0x3d   : > { %2156 = vmatpush2.msra.mxu0 %v2084_v60  ;;  %2536 = vmatpush2.msra.mxu1 %v2116_v61  ;;  %v284_v60 = vld [vmem:[%s5353_s7 + $0x1c0] sm:$0xff]  ;;  %v223_v61 = vlaneseq }
  0x3e   : > { %2157 = vmatprep.subr.mxu0 %v5287_v3  ;;  %2537 = vmatprep.subr.mxu1 %v5287_v3 }
  0x3f   : > { %2158 = vmatpush2.msra.mxu0 %v2083_v62  ;;  %2538 = vmatpush2.msra.mxu1 %v2115_v63  ;;  %v287_v62 = vld [vmem:[%s5353_s7 + $0x1d8] sm:$0xff]  ;;  %v286_v63 = vld [vmem:[%s5353_s7 + $0x1d0] sm:$0xff] }
  0x40   : > { %361 = vperm.xlu1 %5277, %v251_v0   ;;  %358 = vperm.xlu0 %5276, %v250_v1   ;;  %v5649_v0 = vand.u32 127, %v223_v61  ;;  %v289_v1 = vld [vmem:[%s5353_s7 + $0x1e8] sm:$0xff]  ;;  %v2886_v61 = vld [vmem:[%s7320_s3 + $0x38] sm:$0xff] }
  0x41   : > { %2159 = vmatprep.subr.mxu0 %v5287_v3  ;;  %2539 = vmatprep.subr.mxu1 %v5287_v3 }
  0x42   : > { %2160 = vmatpush2.msra.mxu0 %v2082_v2  ;;  %2540 = vmatpush2.msra.mxu1 %v2114_v4  ;;  %v288_v2 = vld [vmem:[%s5353_s7 + $0x1e0] sm:$0xff]  ;;  %v5660_v4 = vadd.s32 128, %v5649_v0 }
  0x43   : > { %2161 = vmatprep.subr.mxu0 %v5287_v3  ;;  %2541 = vmatprep.subr.mxu1 %v5287_v3 }
  0x44   : > { %367 = vperm.xlu1 %5277, %v253_v5   ;;  %364 = vperm.xlu0 %5276, %v252_v6   ;;  %v5663_v5 = vadd.s32 384, %v5649_v0  ;;  %v1236_v6 = vld [vmem:[%s5657_s11] sm:$0xff] }
  0x45   : > { %2162 = vmatpush2.msra.mxu0 %v2081_v7  ;;  %2542 = vmatpush2.msra.mxu1 %v2113_v8  ;;  %v290_v7 = vld [vmem:[%s5353_s7 + $0x1f0] sm:$0xff]  ;;  %v5668_v8 = vadd.s32 256, %v5649_v0  ;;  %s7130_s7 = scalar_lea.vmem %s7321_s4, %s5345_s30 }
  0x46   : > { %2163 = vmatprep.subr.mxu0 %v5287_v3  ;;  %2543 = vmatprep.subr.mxu1 %v5287_v3 }
  0x47   : > { %2164 = vmatpush2.msra.mxu0 %v2080_v9  ;;  %2544 = vmatpush2.msra.mxu1 %v2112_v10  ;;  %v2894_v10 = vld [vmem:[%s7320_s3 + $0x78] sm:$0xff] }
  0x48   : > { %373 = vperm.xlu1 %5277, %v255_v11   ;;  %370 = vperm.xlu0 %5276, %v254_v12   ;;  %v2926_v11 = vld [vmem:[%s7320_s3 + $0x178] sm:$0xff]  ;;  %v5288_v12 = vmov 1.0  }
  0x49   : > { %2165 = vmatprep.subr.mxu0 %v5287_v3  ;;  %2545 = vmatprep.subr.mxu1 %v5287_v3 }
  0x4a   : > { %2166 = vmatpush2.msra.mxu0 %v2079_v13  ;;  %2546 = vmatpush2.msra.mxu1 %v2111_v14  ;;  %v1238_v13 = vld [vmem:[%s5657_s11 + $0x10] sm:$0xff]  ;;  %v1237_v14 = vld [vmem:[%s5657_s11 + $0x8] sm:$0xff] }
  0x4b   : > { %2167 = vmatprep.subr.mxu0 %v5287_v3  ;;  %2547 = vmatprep.subr.mxu1 %v5287_v3 }
  0x4c   : > { %379 = vperm.xlu1 %5277, %v257_v15   ;;  %376 = vperm.xlu0 %5276, %v256_v16  }
  0x4d   : > { %2168 = vmatpush2.msra.mxu0 %v2078_v17  ;;  %2548 = vmatpush2.msra.mxu1 %v2110_v18  ;;  %v1240_v17 = vld [vmem:[%s5657_s11 + $0x20] sm:$0xff]  ;;  %v1239_v18 = vld [vmem:[%s5657_s11 + $0x18] sm:$0xff] }
  0x4e   : > { %2169 = vmatprep.subr.mxu0 %v5287_v3  ;;  %2549 = vmatprep.subr.mxu1 %v5287_v3 }
  0x4f   : > { %2170 = vmatpush2.msra.mxu0 %v2077_v19  ;;  %2550 = vmatpush2.msra.mxu1 %v2109_v20  ;;  %v2893_v19 = vld [vmem:[%s7320_s3 + $0x70] sm:$0xff] }
  0x50   : > { %385 = vperm.xlu1 %5277, %v259_v21   ;;  %382 = vperm.xlu0 %5276, %v258_v22   ;;  %v1242_v21 = vld [vmem:[%s5657_s11 + $0x30] sm:$0xff]  ;;  %v1241_v22 = vld [vmem:[%s5657_s11 + $0x28] sm:$0xff] }
  0x51   : > { %2171 = vmatprep.subr.mxu0 %v5287_v3  ;;  %2551 = vmatprep.subr.mxu1 %v5287_v3 }
  0x52   : > { %2172 = vmatpush2.msra.mxu0 %v2076_v23  ;;  %2552 = vmatpush2.msra.mxu1 %v2108_v24  ;;  %v1244_v24 = vld [vmem:[%s5657_s11 + $0x40] sm:$0xff] }
  0x53   : > { %2173 = vmatprep.subr.mxu0 %v5287_v3  ;;  %2553 = vmatprep.subr.mxu1 %v5287_v3 }
  0x54   : > { %391 = vperm.xlu1 %5277, %v261_v25   ;;  %388 = vperm.xlu0 %5276, %v260_v26   ;;  %v2892_v25 = vld [vmem:[%s7320_s3 + $0x68] sm:$0xff]  ;;  %v1243_v26 = vld [vmem:[%s5657_s11 + $0x38] sm:$0xff] }
  0x55   : > { %2174 = vmatpush2.msra.mxu0 %v2075_v27  ;;  %2554 = vmatpush2.msra.mxu1 %v2107_v28  ;;  %v2925_v27 = vld [vmem:[%s7320_s3 + $0x170] sm:$0xff] }
  0x56   : > { %2175 = vmatprep.subr.mxu0 %v5287_v3  ;;  %2555 = vmatprep.subr.mxu1 %v5287_v3 }
  0x57   : > { %2176 = vmatpush2.msra.mxu0 %v2074_v29  ;;  %2556 = vmatpush2.msra.mxu1 %v2106_v30  ;;  %v1246_v29 = vld [vmem:[%s5657_s11 + $0x50] sm:$0xff]  ;;  %v1245_v30 = vld [vmem:[%s5657_s11 + $0x48] sm:$0xff] }
  0x58   : > { %397 = vperm.xlu1 %5277, %v263_v31   ;;  %394 = vperm.xlu0 %5276, %v262_v32   ;;  %v2891_v31 = vld [vmem:[%s7320_s3 + $0x60] sm:$0xff] }
  0x59   : > { %2177 = vmatprep.subr.mxu0 %v5287_v3  ;;  %2557 = vmatprep.subr.mxu1 %v5287_v3 }
  0x5a   : > { %2178 = vmatpush2.msra.mxu0 %v2073_v33  ;;  %2558 = vmatpush2.msra.mxu1 %v2105_v34  ;;  %v1248_v33 = vld [vmem:[%s5657_s11 + $0x60] sm:$0xff]  ;;  %v1247_v34 = vld [vmem:[%s5657_s11 + $0x58] sm:$0xff] }
  0x5b   : > { %2179 = vmatprep.subr.mxu0 %v5287_v3  ;;  %2559 = vmatprep.subr.mxu1 %v5287_v3 }
  0x5c   : > { %403 = vperm.xlu1 %5277, %v265_v35   ;;  %400 = vperm.xlu0 %5276, %v264_v36   ;;  %v1250_v36 = vld [vmem:[%s5657_s11 + $0x70] sm:$0xff] }
  0x5d   : > { %2180 = vmatpush2.msra.mxu0 %v2072_v37  ;;  %2560 = vmatpush2.msra.mxu1 %v2104_v38  ;;  %v2890_v37 = vld [vmem:[%s7320_s3 + $0x58] sm:$0xff]  ;;  %v1249_v38 = vld [vmem:[%s5657_s11 + $0x68] sm:$0xff] }
  0x5e   : > { %2181 = vmatprep.subr.mxu0 %v5287_v3  ;;  %2561 = vmatprep.subr.mxu1 %v5287_v3 }
  0x5f   : > { %2182 = vmatpush2.msra.mxu0 %v2071_v39  ;;  %2562 = vmatpush2.msra.mxu1 %v2103_v40  ;;  %v2924_v39 = vld [vmem:[%s7320_s3 + $0x168] sm:$0xff] }
  0x60   : > { %409 = vperm.xlu1 %5277, %v267_v41   ;;  %406 = vperm.xlu0 %5276, %v266_v42   ;;  %v1252_v41 = vld [vmem:[%s5657_s11 + $0x80] sm:$0xff]  ;;  %v1251_v42 = vld [vmem:[%s5657_s11 + $0x78] sm:$0xff] }
  0x61   : > { %2927 = vmatprep.subr.mxu0 %v5287_v3  ;;  %5043 = vmatprep.subr.mxu1 %v5287_v3 }
  0x64   : > { %415 = vperm.xlu1 %5277, %v269_v43   ;;  %412 = vperm.xlu0 %5276, %v268_v44   ;;  %v2889_v43 = vld [vmem:[%s7320_s3 + $0x50] sm:$0xff] }
  0x68   : > { %421 = vperm.xlu1 %5277, %v271_v45   ;;  %418 = vperm.xlu0 %5276, %v270_v46   ;;  %v1254_v45 = vld [vmem:[%s5657_s11 + $0x90] sm:$0xff]  ;;  %v1253_v46 = vld [vmem:[%s5657_s11 + $0x88] sm:$0xff] }
  0x6c   : > { %427 = vperm.xlu1 %5277, %v273_v47   ;;  %424 = vperm.xlu0 %5276, %v272_v48   ;;  %v1256_v48 = vld [vmem:[%s5657_s11 + $0xa0] sm:$0xff] }
  0x70   : > { %433 = vperm.xlu1 %5277, %v275_v49   ;;  %430 = vperm.xlu0 %5276, %v274_v50   ;;  %v2888_v49 = vld [vmem:[%s7320_s3 + $0x48] sm:$0xff]  ;;  %v1255_v50 = vld [vmem:[%s5657_s11 + $0x98] sm:$0xff] }
  0x74   : > { %439 = vperm.xlu1 %5277, %v277_v51   ;;  %436 = vperm.xlu0 %5276, %v276_v52   ;;  %v2923_v51 = vld [vmem:[%s7320_s3 + $0x160] sm:$0xff] }
  0x78   : > { %445 = vperm.xlu1 %5277, %v279_v53   ;;  %442 = vperm.xlu0 %5276, %v278_v54   ;;  %v1258_v53 = vld [vmem:[%s5657_s11 + $0xb0] sm:$0xff]  ;;  %v1257_v54 = vld [vmem:[%s5657_s11 + $0xa8] sm:$0xff] }
  0x7c   : > { %451 = vperm.xlu1 %5277, %v281_v55   ;;  %448 = vperm.xlu0 %5276, %v280_v56   ;;  %v2887_v55 = vld [vmem:[%s7320_s3 + $0x40] sm:$0xff] }
  0x80   : > { %457 = vperm.xlu1 %5277, %v283_v57   ;;  %454 = vperm.xlu0 %5276, %v282_v58   ;;  %v1260_v57 = vld [vmem:[%s5657_s11 + $0xc0] sm:$0xff]  ;;  %v1259_v58 = vld [vmem:[%s5657_s11 + $0xb8] sm:$0xff] }
  0x84   : > { %463 = vperm.xlu1 %5277, %v285_v59   ;;  %460 = vperm.xlu0 %5276, %v284_v60   ;;  %v1262_v60 = vld [vmem:[%s5657_s11 + $0xd0] sm:$0xff] }
  0x88   : > { %469 = vperm.xlu1 %5277, %v287_v62   ;;  %466 = vperm.xlu0 %5276, %v286_v63   ;;  %v1261_v62 = vld [vmem:[%s5657_s11 + $0xc8] sm:$0xff]  ;;  %v2922_v63 = vld [vmem:[%s7320_s3 + $0x158] sm:$0xff] }
  0x8c   : > { %475 = vperm.xlu1 %5277, %v289_v1   ;;  %472 = vperm.xlu0 %5276, %v288_v2   ;;  %v1264_v2 = vld [vmem:[%s5657_s11 + $0xe0] sm:$0xff] }
  0x8f   : > { %v293_v9 = vpop.permute.xlu0 %292  ;;  %v299_v15 = vpop.permute.xlu1 %298 }
  0x90   : > { %1300 = vperm.xlu1 %5277, %v1236_v6   ;;  %478 = vperm.xlu0 %5276, %v290_v7   ;;  %vm481_vm0 = vcmp.eq.s32.totalorder %v5660_v4, %v293_v9  ;;  %vm483_vm1 = vcmp.eq.s32.totalorder %v5663_v5, %v293_v9  ;;  %vm480_vm2 = vcmp.eq.s32.totalorder %v5649_v0, %v293_v9  ;;  %v1263_v6 = vld [vmem:[%s5657_s11 + $0xd8] sm:$0xff]  ;;  %v2885_v7 = vld [vmem:[%s7320_s3 + $0x30] sm:$0xff] }
  0x91   : > { %4521 = vmatprep.mubr.msk.f32.mxu0 %vm481_vm0, %v5288_v12  ;;  %4647 = vmatprep.mubr.msk.f32.mxu1 %vm483_vm1, %v5288_v12  ;;  %vm482_vm3 = vcmp.eq.s32.totalorder %v5668_v8, %v293_v9  ;;  %vm489_vm4 = vcmp.eq.s32.totalorder %v5660_v4, %v299_v15  ;;  %vm491_vm5 = vcmp.eq.s32.totalorder %v5663_v5, %v299_v15 }
  0x92   : > { %4522 = vmatmul.mubr.msk.f32.vlgmr.msra.gmra.mxu0 %vm480_vm2, %v5288_v12  ;;  %4648 = vmatmul.mubr.msk.f32.vlgmr.msra.gmra.mxu1 %vm482_vm3, %v5288_v12  ;;  %vm488_vm10 = vcmp.eq.s32.totalorder %v5649_v0, %v299_v15  ;;  %vm490_vm11 = vcmp.eq.s32.totalorder %v5668_v8, %v299_v15  ;;  %v2884_v15 = vld [vmem:[%s7320_s3 + $0x28] sm:$0xff] }
  0x93   : > { %2928 = vmatpush1.msra.mxu0 %v2894_v10  ;;  %5044 = vmatpush3.msra.mxu1 %v2926_v11  ;;  %v296_v16 = vpop.permute.xlu0 %295  ;;  %v302_v20 = vpop.permute.xlu1 %301  ;;  %v1266_v10 = vld [vmem:[%s5657_s11 + $0xf0] sm:$0xff]  ;;  %v1265_v11 = vld [vmem:[%s5657_s11 + $0xe8] sm:$0xff] }
  0x94   : > { %1306 = vperm.xlu1 %5277, %v1238_v13   ;;  %1303 = vperm.xlu0 %5276, %v1237_v14   ;;  %vm485_vm6 = vcmp.eq.s32.totalorder %v5660_v4, %v296_v16  ;;  %vm487_vm7 = vcmp.eq.s32.totalorder %v5663_v5, %v296_v16  ;;  %vm484_vm8 = vcmp.eq.s32.totalorder %v5649_v0, %v296_v16  ;;  %v1268_v14 = vld [vmem:[%s5657_s11 + $0x100] sm:$0xff] }
  0x95   : > { %4523 = vmatprep.mubr.msk.f32.mxu0 %vm485_vm6, %v5288_v12  ;;  %4649 = vmatprep.mubr.msk.f32.mxu1 %vm487_vm7, %v5288_v12  ;;  %vm486_vm9 = vcmp.eq.s32.totalorder %v5668_v8, %v296_v16  ;;  %vm493_vm12 = vcmp.eq.s32.totalorder %v5660_v4, %v302_v20  ;;  %vm495_vm13 = vcmp.eq.s32.totalorder %v5663_v5, %v302_v20  ;;  %v1267_v16 = vld [vmem:[%s5657_s11 + $0xf8] sm:$0xff] }
  0x96   : > { %4524 = vmatmul.mubr.msk.f32.gmra.mxu0 %vm484_vm8, %v5288_v12  ;;  %4650 = vmatmul.mubr.msk.f32.gmra.mxu1 %vm486_vm9, %v5288_v12  ;;  %vm492_vm14 = vcmp.eq.s32.totalorder %v5649_v0, %v302_v20  ;;  %vm494_vm15 = vcmp.eq.s32.totalorder %v5668_v8, %v302_v20  ;;  %v1269_v20 = vld [vmem:[%s5657_s11 + $0x108] sm:$0xff] }
  0x97   : > { %4525 = vmatprep.mubr.msk.f32.mxu0 %vm489_vm4, %v5288_v12  ;;  %4651 = vmatprep.mubr.msk.f32.mxu1 %vm491_vm5, %v5288_v12  ;;  %v305_v23 = vpop.permute.xlu0 %304  ;;  %v308_v28 = vpop.permute.xlu1 %307 }
  0x98   : > { %1312 = vperm.xlu1 %5277, %v1240_v17   ;;  %1309 = vperm.xlu0 %5276, %v1239_v18   ;;  %vm497_vm0 = vcmp.eq.s32.totalorder %v5660_v4, %v305_v23  ;;  %vm499_vm1 = vcmp.eq.s32.totalorder %v5663_v5, %v305_v23  ;;  %vm496_vm2 = vcmp.eq.s32.totalorder %v5649_v0, %v305_v23  ;;  %v2921_v17 = vld [vmem:[%s7320_s3 + $0x150] sm:$0xff] }
  0x99   : > { %2929 = vmatprep.subr.mxu0 %v5287_v3  ;;  %5045 = vmatprep.subr.mxu1 %v5287_v3  ;;  %vm498_vm3 = vcmp.eq.s32.totalorder %v5668_v8, %v305_v23  ;;  %vm501_vm4 = vcmp.eq.s32.totalorder %v5660_v4, %v308_v28  ;;  %vm503_vm5 = vcmp.eq.s32.totalorder %v5663_v5, %v308_v28  ;;  %v1272_v23 = vld [vmem:[%s5657_s11 + $0x120] sm:$0xff] }
  0x9a   : > { %4526 = vmatmul.mubr.msk.f32.gmra.mxu0 %vm488_vm10, %v5288_v12  ;;  %4652 = vmatmul.mubr.msk.f32.gmra.mxu1 %vm490_vm11, %v5288_v12  ;;  %vm500_vm6 = vcmp.eq.s32.totalorder %v5649_v0, %v308_v28  ;;  %vm502_vm7 = vcmp.eq.s32.totalorder %v5668_v8, %v308_v28  ;;  %v1273_v28 = vld [vmem:[%s5657_s11 + $0x128] sm:$0xff] }
  0x9b   : > { %2930 = vmatpush1.msra.mxu0 %v2893_v19  ;;  %4527 = vmatprep.mubr.msk.f32.mxu0 %vm493_vm12, %v5288_v12  ;;  %v311_v32 = vpop.permute.xlu0 %310  ;;  %v314_v35 = vpop.permute.xlu1 %313  ;;  %v1270_v19 = vld [vmem:[%s5657_s11 + $0x110] sm:$0xff] }
  0x9c   : > { %4653 = vmatprep.mubr.msk.f32.mxu1 %vm495_vm13, %v5288_v12  ;;  %1318 = vperm.xlu1 %5277, %v1242_v21   ;;  %vm505_vm8 = vcmp.eq.s32.totalorder %v5660_v4, %v311_v32  ;;  %vm507_vm9 = vcmp.eq.s32.totalorder %v5663_v5, %v311_v32  ;;  %vm504_vm10 = vcmp.eq.s32.totalorder %v5649_v0, %v311_v32  ;;  %v2883_v21 = vld [vmem:[%s7320_s3 + $0x20] sm:$0xff] }
  0x9d   : > { %1315 = vperm.xlu0 %5276, %v1241_v22   ;;  %2931 = vmatprep.subr.mxu0 %v5287_v3  ;;  %vm506_vm11 = vcmp.eq.s32.totalorder %v5668_v8, %v311_v32  ;;  %vm509_vm12 = vcmp.eq.s32.totalorder %v5660_v4, %v314_v35  ;;  %vm511_vm13 = vcmp.eq.s32.totalorder %v5663_v5, %v314_v35  ;;  %v1275_v32 = vld [vmem:[%s5657_s11 + $0x138] sm:$0xff] }
  0x9e   : > { %4528 = vmatmul.mubr.msk.f32.gmra.mxu0 %vm492_vm14, %v5288_v12  ;;  %4654 = vmatmul.mubr.msk.f32.gmra.mxu1 %vm494_vm15, %v5288_v12  ;;  %vm508_vm14 = vcmp.eq.s32.totalorder %v5649_v0, %v314_v35  ;;  %vm510_vm15 = vcmp.eq.s32.totalorder %v5668_v8, %v314_v35  ;;  %v1278_v35 = vld [vmem:[%s5657_s11 + $0x150] sm:$0xff] }
  0x9f   : > { %4529 = vmatprep.mubr.msk.f32.mxu0 %vm497_vm0, %v5288_v12  ;;  %4655 = vmatprep.mubr.msk.f32.mxu1 %vm499_vm1, %v5288_v12  ;;  %v317_v40 = vpop.permute.xlu0 %316  ;;  %v320_v44 = vpop.permute.xlu1 %319 }
  0xa0   : > { %1324 = vperm.xlu1 %5277, %v1244_v24   ;;  %2932 = vmatpush1.msra.mxu0 %v2892_v25  ;;  %vm513_vm0 = vcmp.eq.s32.totalorder %v5660_v4, %v317_v40  ;;  %vm515_vm1 = vcmp.eq.s32.totalorder %v5663_v5, %v317_v40  ;;  %v1271_v24 = vld [vmem:[%s5657_s11 + $0x118] sm:$0xff] }
  0xa1   : > { %1321 = vperm.xlu0 %5276, %v1243_v26   ;;  %5046 = vmatpush3.msra.mxu1 %v2925_v27  ;;  %v1274_v26 = vld [vmem:[%s5657_s11 + $0x130] sm:$0xff]  ;;  %v2882_v27 = vld [vmem:[%s7320_s3 + $0x18] sm:$0xff] }
  0xa2   : > { %4530 = vmatmul.mubr.msk.f32.gmra.mxu0 %vm496_vm2, %v5288_v12  ;;  %4656 = vmatmul.mubr.msk.f32.gmra.mxu1 %vm498_vm3, %v5288_v12  ;;  %vm512_vm2 = vcmp.eq.s32.totalorder %v5649_v0, %v317_v40  ;;  %vm514_vm3 = vcmp.eq.s32.totalorder %v5668_v8, %v317_v40  ;;  %v1279_v40 = vld [vmem:[%s5657_s11 + $0x158] sm:$0xff] }
  0xa3   : > { %4531 = vmatprep.mubr.msk.f32.mxu0 %vm501_vm4, %v5288_v12  ;;  %4657 = vmatprep.mubr.msk.f32.mxu1 %vm503_vm5, %v5288_v12  ;;  %vm517_vm4 = vcmp.eq.s32.totalorder %v5660_v4, %v320_v44  ;;  %vm519_vm5 = vcmp.eq.s32.totalorder %v5663_v5, %v320_v44  ;;  %v323_v47 = vpop.permute.xlu0 %322  ;;  %v326_v52 = vpop.permute.xlu1 %325 }
  0xa4   : > { %1330 = vperm.xlu1 %5277, %v1246_v29   ;;  %2933 = vmatprep.subr.mxu0 %v5287_v3  ;;  %v2920_v29 = vld [vmem:[%s7320_s3 + $0x148] sm:$0xff] }
  0xa5   : > { %1327 = vperm.xlu0 %5276, %v1245_v30   ;;  %2934 = vmatpush1.msra.mxu0 %v2891_v31  ;;  %v1276_v31 = vld [vmem:[%s5657_s11 + $0x140] sm:$0xff] }
  0xa6   : > { %4532 = vmatmul.mubr.msk.f32.gmra.mxu0 %vm500_vm6, %v5288_v12  ;;  %4658 = vmatmul.mubr.msk.f32.gmra.mxu1 %vm502_vm7, %v5288_v12  ;;  %vm516_vm6 = vcmp.eq.s32.totalorder %v5649_v0, %v320_v44  ;;  %vm518_vm7 = vcmp.eq.s32.totalorder %v5668_v8, %v320_v44  ;;  %v1281_v44 = vld [vmem:[%s5657_s11 + $0x168] sm:$0xff] }
  0xa7   : > { %4533 = vmatprep.mubr.msk.f32.mxu0 %vm505_vm8, %v5288_v12  ;;  %4659 = vmatprep.mubr.msk.f32.mxu1 %vm507_vm9, %v5288_v12  ;;  %vm521_vm8 = vcmp.eq.s32.totalorder %v5660_v4, %v323_v47  ;;  %vm523_vm9 = vcmp.eq.s32.totalorder %v5663_v5, %v323_v47  ;;  %v329_v56 = vpop.permute.xlu0 %328  ;;  %v332_v59 = vpop.permute.xlu1 %331 }
  0xa8   : > { %1336 = vperm.xlu1 %5277, %v1248_v33   ;;  %2935 = vmatprep.subr.mxu0 %v5287_v3  ;;  %v2881_v33 = vld [vmem:[%s7320_s3 + $0x10] sm:$0xff] }
  0xa9   : > { %1333 = vperm.xlu0 %5276, %v1247_v34   ;;  %5047 = vmatprep.subr.mxu1 %v5287_v3 }
  0xaa   : > { %4534 = vmatmul.mubr.msk.f32.gmra.mxu0 %vm504_vm10, %v5288_v12  ;;  %4660 = vmatmul.mubr.msk.f32.gmra.mxu1 %vm506_vm11, %v5288_v12  ;;  %vm520_vm10 = vcmp.eq.s32.totalorder %v5649_v0, %v323_v47  ;;  %vm522_vm11 = vcmp.eq.s32.totalorder %v5668_v8, %v323_v47  ;;  %v1284_v47 = vld [vmem:[%s5657_s11 + $0x180] sm:$0xff] }
  0xab   : > { %4535 = vmatprep.mubr.msk.f32.mxu0 %vm509_vm12, %v5288_v12  ;;  %4661 = vmatprep.mubr.msk.f32.mxu1 %vm511_vm13, %v5288_v12  ;;  %vm525_vm12 = vcmp.eq.s32.totalorder %v5660_v4, %v326_v52  ;;  %vm527_vm13 = vcmp.eq.s32.totalorder %v5663_v5, %v326_v52  ;;  %v335_v1 = vpop.permute.xlu0 %334  ;;  %v338_v9 = vpop.permute.xlu1 %337 }
  0xac   : > { %1342 = vperm.xlu1 %5277, %v1250_v36   ;;  %2936 = vmatpush1.msra.mxu0 %v2890_v37  ;;  %v1277_v36 = vld [vmem:[%s5657_s11 + $0x148] sm:$0xff] }
  0xad   : > { %1339 = vperm.xlu0 %5276, %v1249_v38   ;;  %5048 = vmatpush3.msra.mxu1 %v2924_v39  ;;  %v1280_v38 = vld [vmem:[%s5657_s11 + $0x160] sm:$0xff]  ;;  %v2880_v39 = vld [vmem:[%s7320_s3 + $0x8] sm:$0xff] }
  0xae   : > { %4536 = vmatmul.mubr.msk.f32.gmra.mxu0 %vm508_vm14, %v5288_v12  ;;  %4662 = vmatmul.mubr.msk.f32.gmra.mxu1 %vm510_vm15, %v5288_v12  ;;  %vm524_vm14 = vcmp.eq.s32.totalorder %v5649_v0, %v326_v52  ;;  %vm526_vm15 = vcmp.eq.s32.totalorder %v5668_v8, %v326_v52  ;;  %v1285_v52 = vld [vmem:[%s5657_s11 + $0x188] sm:$0xff] }
  0xaf   : > { %4537 = vmatprep.mubr.msk.f32.mxu0 %vm513_vm0, %v5288_v12  ;;  %4663 = vmatprep.mubr.msk.f32.mxu1 %vm515_vm1, %v5288_v12  ;;  %vm529_vm0 = vcmp.eq.s32.totalorder %v5660_v4, %v329_v56  ;;  %vm531_vm1 = vcmp.eq.s32.totalorder %v5663_v5, %v329_v56  ;;  %v341_v13 = vpop.permute.xlu0 %340  ;;  %v344_v18 = vpop.permute.xlu1 %343 }
  0xb0   : > { %1348 = vperm.xlu1 %5277, %v1252_v41   ;;  %2937 = vmatprep.subr.mxu0 %v5287_v3  ;;  %v2919_v41 = vld [vmem:[%s7320_s3 + $0x140] sm:$0xff] }
  0xb1   : > { %1345 = vperm.xlu0 %5276, %v1251_v42   ;;  %2938 = vmatpush1.msra.mxu0 %v2889_v43  ;;  %v1282_v43 = vld [vmem:[%s5657_s11 + $0x170] sm:$0xff] }
  0xb2   : > { %4538 = vmatmul.mubr.msk.f32.gmra.mxu0 %vm512_vm2, %v5288_v12  ;;  %4664 = vmatmul.mubr.msk.f32.gmra.mxu1 %vm514_vm3, %v5288_v12  ;;  %vm528_vm2 = vcmp.eq.s32.totalorder %v5649_v0, %v329_v56  ;;  %vm530_vm3 = vcmp.eq.s32.totalorder %v5668_v8, %v329_v56  ;;  %v1287_v56 = vld [vmem:[%s5657_s11 + $0x198] sm:$0xff] }
  0xb3   : > { %4539 = vmatprep.mubr.msk.f32.mxu0 %vm517_vm4, %v5288_v12  ;;  %4665 = vmatprep.mubr.msk.f32.mxu1 %vm519_vm5, %v5288_v12  ;;  %vm533_vm4 = vcmp.eq.s32.totalorder %v5660_v4, %v332_v59  ;;  %vm535_vm5 = vcmp.eq.s32.totalorder %v5663_v5, %v332_v59  ;;  %v347_v22 = vpop.permute.xlu0 %346  ;;  %v350_v25 = vpop.permute.xlu1 %349 }
  0xb4   : > { %1354 = vperm.xlu1 %5277, %v1254_v45   ;;  %2939 = vmatprep.subr.mxu0 %v5287_v3  ;;  %v2879_v45 = vld [vmem:[%s7320_s3] sm:$0xff] }
  0xb5   : > { %1351 = vperm.xlu0 %5276, %v1253_v46   ;;  %5049 = vmatprep.subr.mxu1 %v5287_v3 }
  0xb6   : > { %4540 = vmatmul.mubr.msk.f32.gmra.mxu0 %vm516_vm6, %v5288_v12  ;;  %4666 = vmatmul.mubr.msk.f32.gmra.mxu1 %vm518_vm7, %v5288_v12  ;;  %vm532_vm6 = vcmp.eq.s32.totalorder %v5649_v0, %v332_v59  ;;  %vm534_vm7 = vcmp.eq.s32.totalorder %v5668_v8, %v332_v59  ;;  %v1290_v59 = vld [vmem:[%s5657_s11 + $0x1b0] sm:$0xff] }
  0xb7   : > { %4541 = vmatprep.mubr.msk.f32.mxu0 %vm521_vm8, %v5288_v12  ;;  %4667 = vmatprep.mubr.msk.f32.mxu1 %vm523_vm9, %v5288_v12  ;;  %vm537_vm8 = vcmp.eq.s32.totalorder %v5660_v4, %v335_v1  ;;  %vm539_vm9 = vcmp.eq.s32.totalorder %v5663_v5, %v335_v1  ;;  %v353_v30 = vpop.permute.xlu0 %352  ;;  %v356_v34 = vpop.permute.xlu1 %355 }
  0xb8   : > { %1360 = vperm.xlu1 %5277, %v1256_v48   ;;  %2940 = vmatpush1.msra.mxu0 %v2888_v49  ;;  %v1283_v48 = vld [vmem:[%s5657_s11 + $0x178] sm:$0xff] }
  0xb9   : > { %1357 = vperm.xlu0 %5276, %v1255_v50   ;;  %5050 = vmatpush3.msra.mxu1 %v2923_v51  ;;  %v1286_v50 = vld [vmem:[%s5657_s11 + $0x190] sm:$0xff]  ;;  %v2910_v51 = vld [vmem:[%s7320_s3 + $0xf8] sm:$0xff] }
  0xba   : > { %4542 = vmatmul.mubr.msk.f32.gmra.mxu0 %vm520_vm10, %v5288_v12  ;;  %4668 = vmatmul.mubr.msk.f32.gmra.mxu1 %vm522_vm11, %v5288_v12  ;;  %vm536_vm10 = vcmp.eq.s32.totalorder %v5649_v0, %v335_v1  ;;  %vm538_vm11 = vcmp.eq.s32.totalorder %v5668_v8, %v335_v1  ;;  %v1291_v1 = vld [vmem:[%s5657_s11 + $0x1b8] sm:$0xff] }
  0xbb   : > { %4543 = vmatprep.mubr.msk.f32.mxu0 %vm525_vm12, %v5288_v12  ;;  %4669 = vmatprep.mubr.msk.f32.mxu1 %vm527_vm13, %v5288_v12  ;;  %vm541_vm12 = vcmp.eq.s32.totalorder %v5660_v4, %v338_v9  ;;  %vm543_vm13 = vcmp.eq.s32.totalorder %v5663_v5, %v338_v9  ;;  %v359_v37 = vpop.permute.xlu0 %358  ;;  %v362_v42 = vpop.permute.xlu1 %361 }
  0xbc   : > { %1366 = vperm.xlu1 %5277, %v1258_v53   ;;  %2941 = vmatprep.subr.mxu0 %v5287_v3  ;;  %v2918_v53 = vld [vmem:[%s7320_s3 + $0x138] sm:$0xff] }
  0xbd   : > { %1363 = vperm.xlu0 %5276, %v1257_v54   ;;  %2942 = vmatpush1.msra.mxu0 %v2887_v55  ;;  %v1288_v55 = vld [vmem:[%s5657_s11 + $0x1a0] sm:$0xff] }
  0xbe   : > { %4544 = vmatmul.mubr.msk.f32.gmra.mxu0 %vm524_vm14, %v5288_v12  ;;  %4670 = vmatmul.mubr.msk.f32.gmra.mxu1 %vm526_vm15, %v5288_v12  ;;  %vm540_vm14 = vcmp.eq.s32.totalorder %v5649_v0, %v338_v9  ;;  %vm542_vm15 = vcmp.eq.s32.totalorder %v5668_v8, %v338_v9  ;;  %v1293_v9 = vld [vmem:[%s5657_s11 + $0x1c8] sm:$0xff] }
  0xbf   : > { %4545 = vmatprep.mubr.msk.f32.mxu0 %vm529_vm0, %v5288_v12  ;;  %4671 = vmatprep.mubr.msk.f32.mxu1 %vm531_vm1, %v5288_v12  ;;  %vm545_vm0 = vcmp.eq.s32.totalorder %v5660_v4, %v341_v13  ;;  %vm547_vm1 = vcmp.eq.s32.totalorder %v5663_v5, %v341_v13  ;;  %v365_v46 = vpop.permute.xlu0 %364  ;;  %v368_v49 = vpop.permute.xlu1 %367 }
  0xc0   : > { %1372 = vperm.xlu1 %5277, %v1260_v57   ;;  %2943 = vmatprep.subr.mxu0 %v5287_v3  ;;  %v2909_v57 = vld [vmem:[%s7320_s3 + $0xf0] sm:$0xff] }
  0xc1   : > { %1369 = vperm.xlu0 %5276, %v1259_v58   ;;  %5051 = vmatprep.subr.mxu1 %v5287_v3 }
  0xc2   : > { %4546 = vmatmul.mubr.msk.f32.gmra.mxu0 %vm528_vm2, %v5288_v12  ;;  %4672 = vmatmul.mubr.msk.f32.gmra.mxu1 %vm530_vm3, %v5288_v12  ;;  %vm544_vm2 = vcmp.eq.s32.totalorder %v5649_v0, %v341_v13  ;;  %vm546_vm3 = vcmp.eq.s32.totalorder %v5668_v8, %v341_v13  ;;  %v1296_v13 = vld [vmem:[%s5657_s11 + $0x1e0] sm:$0xff] }
  0xc3   : > { %4547 = vmatprep.mubr.msk.f32.mxu0 %vm533_vm4, %v5288_v12  ;;  %4673 = vmatprep.mubr.msk.f32.mxu1 %vm535_vm5, %v5288_v12  ;;  %vm549_vm4 = vcmp.eq.s32.totalorder %v5660_v4, %v344_v18  ;;  %vm551_vm5 = vcmp.eq.s32.totalorder %v5663_v5, %v344_v18  ;;  %v371_v54 = vpop.permute.xlu0 %370  ;;  %v374_v58 = vpop.permute.xlu1 %373 }
  0xc4   : > { %1378 = vperm.xlu1 %5277, %v1262_v60   ;;  %2944 = vmatpush1.msra.mxu0 %v2886_v61  ;;  %v1289_v60 = vld [vmem:[%s5657_s11 + $0x1a8] sm:$0xff] }
  0xc5   : > { %1375 = vperm.xlu0 %5276, %v1261_v62   ;;  %5052 = vmatpush3.msra.mxu1 %v2922_v63  ;;  %v1292_v62 = vld [vmem:[%s5657_s11 + $0x1c0] sm:$0xff]  ;;  %v2908_v63 = vld [vmem:[%s7320_s3 + $0xe8] sm:$0xff] }
  0xc6   : > { %4548 = vmatmul.mubr.msk.f32.gmra.mxu0 %vm532_vm6, %v5288_v12  ;;  %4674 = vmatmul.mubr.msk.f32.gmra.mxu1 %vm534_vm7, %v5288_v12  ;;  %vm548_vm6 = vcmp.eq.s32.totalorder %v5649_v0, %v344_v18  ;;  %vm550_vm7 = vcmp.eq.s32.totalorder %v5668_v8, %v344_v18  ;;  %v1297_v18 = vld [vmem:[%s5657_s11 + $0x1e8] sm:$0xff] }
  0xc7   : > { %4549 = vmatprep.mubr.msk.f32.mxu0 %vm537_vm8, %v5288_v12  ;;  %4675 = vmatprep.mubr.msk.f32.mxu1 %vm539_vm9, %v5288_v12  ;;  %vm553_vm8 = vcmp.eq.s32.totalorder %v5660_v4, %v347_v22  ;;  %vm555_vm9 = vcmp.eq.s32.totalorder %v5663_v5, %v347_v22  ;;  %v377_v61 = vpop.permute.xlu0 %376 }
  0xc8   : > { %1384 = vperm.xlu1 %5277, %v1264_v2   ;;  %2945 = vmatprep.subr.mxu0 %v5287_v3  ;;  %v2917_v2 = vld [vmem:[%s7320_s3 + $0x130] sm:$0xff] }
  0xc9   : > { %1381 = vperm.xlu0 %5276, %v1263_v6   ;;  %2946 = vmatpush1.msra.mxu0 %v2885_v7  ;;  %v380_v6 = vpop.permute.xlu1 %379  ;;  %v1294_v7 = vld [vmem:[%s5657_s11 + $0x1d0] sm:$0xff] }
  0xca   : > { %4550 = vmatmul.mubr.msk.f32.gmra.mxu0 %vm536_vm10, %v5288_v12  ;;  %4676 = vmatmul.mubr.msk.f32.gmra.mxu1 %vm538_vm11, %v5288_v12  ;;  %vm552_vm10 = vcmp.eq.s32.totalorder %v5649_v0, %v347_v22  ;;  %vm554_vm11 = vcmp.eq.s32.totalorder %v5668_v8, %v347_v22  ;;  %v2915_v22 = vld [vmem:[%s7320_s3 + $0x120] sm:$0xff] }
  0xcb   : > { %4551 = vmatprep.mubr.msk.f32.mxu0 %vm541_vm12, %v5288_v12  ;;  %4677 = vmatprep.mubr.msk.f32.mxu1 %vm543_vm13, %v5288_v12  ;;  %vm557_vm12 = vcmp.eq.s32.totalorder %v5660_v4, %v350_v25  ;;  %vm559_vm13 = vcmp.eq.s32.totalorder %v5663_v5, %v350_v25 }
  0xcc   : > { %1390 = vperm.xlu1 %5277, %v1266_v10   ;;  %2947 = vmatprep.subr.mxu0 %v5287_v3  ;;  %v2907_v10 = vld [vmem:[%s7320_s3 + $0xe0] sm:$0xff] }
  0xcd   : > { %1387 = vperm.xlu0 %5276, %v1265_v11   ;;  %5053 = vmatprep.subr.mxu1 %v5287_v3  ;;  %v383_v11 = vpop.permute.xlu0 %382 }
  0xce   : > { %4552 = vmatmul.mubr.msk.f32.gmra.mxu0 %vm540_vm14, %v5288_v12  ;;  %4678 = vmatmul.mubr.msk.f32.gmra.mxu1 %vm542_vm15, %v5288_v12  ;;  %vm556_vm14 = vcmp.eq.s32.totalorder %v5649_v0, %v350_v25  ;;  %vm558_vm15 = vcmp.eq.s32.totalorder %v5668_v8, %v350_v25  ;;  %v2914_v25 = vld [vmem:[%s7320_s3 + $0x118] sm:$0xff] }
  0xcf   : > { %4553 = vmatprep.mubr.msk.f32.mxu0 %vm545_vm0, %v5288_v12  ;;  %4679 = vmatprep.mubr.msk.f32.mxu1 %vm547_vm1, %v5288_v12  ;;  %vm561_vm0 = vcmp.eq.s32.totalorder %v5660_v4, %v353_v30  ;;  %vm563_vm1 = vcmp.eq.s32.totalorder %v5663_v5, %v353_v30 }
  0xd0   : > { %1396 = vperm.xlu1 %5277, %v1268_v14   ;;  %2948 = vmatpush1.msra.mxu0 %v2884_v15  ;;  %v1295_v14 = vld [vmem:[%s5657_s11 + $0x1d8] sm:$0xff]  ;;  %v386_v15 = vpop.permute.xlu1 %385 }
  0xd1   : > { %1393 = vperm.xlu0 %5276, %v1267_v16   ;;  %5054 = vmatpush3.msra.mxu1 %v2921_v17  ;;  %v1298_v16 = vld [vmem:[%s5657_s11 + $0x1f0] sm:$0xff]  ;;  %v2906_v17 = vld [vmem:[%s7320_s3 + $0xd8] sm:$0xff] }
  0xd2   : > { %4554 = vmatmul.mubr.msk.f32.gmra.mxu0 %vm544_vm2, %v5288_v12  ;;  %4680 = vmatmul.mubr.msk.f32.gmra.mxu1 %vm546_vm3, %v5288_v12  ;;  %vm560_vm2 = vcmp.eq.s32.totalorder %v5649_v0, %v353_v30  ;;  %vm562_vm3 = vcmp.eq.s32.totalorder %v5668_v8, %v353_v30  ;;  %v2902_v30 = vld [vmem:[%s7320_s3 + $0xb8] sm:$0xff] }
  0xd3   : > { %4555 = vmatprep.mubr.msk.f32.mxu0 %vm549_vm4, %v5288_v12  ;;  %4681 = vmatprep.mubr.msk.f32.mxu1 %vm551_vm5, %v5288_v12  ;;  %vm565_vm4 = vcmp.eq.s32.totalorder %v5660_v4, %v356_v34  ;;  %vm567_vm5 = vcmp.eq.s32.totalorder %v5663_v5, %v356_v34 }
  0xd4   : > { %1402 = vperm.xlu1 %5277, %v1270_v19   ;;  %2949 = vmatprep.subr.mxu0 %v5287_v3  ;;  %v2916_v19 = vld [vmem:[%s7320_s3 + $0x128] sm:$0xff] }
  0xd5   : > { %1399 = vperm.xlu0 %5276, %v1269_v20   ;;  %2950 = vmatpush1.msra.mxu0 %v2883_v21  ;;  %v389_v20 = vpop.permute.xlu0 %388  ;;  %v2905_v21 = vld [vmem:[%s7320_s3 + $0xd0] sm:$0xff] }
  0xd6   : > { %4556 = vmatmul.mubr.msk.f32.gmra.mxu0 %vm548_vm6, %v5288_v12  ;;  %4682 = vmatmul.mubr.msk.f32.gmra.mxu1 %vm550_vm7, %v5288_v12  ;;  %vm564_vm6 = vcmp.eq.s32.totalorder %v5649_v0, %v356_v34  ;;  %vm566_vm7 = vcmp.eq.s32.totalorder %v5668_v8, %v356_v34  ;;  %v2911_v34 = vld [vmem:[%s7320_s3 + $0x100] sm:$0xff] }
  0xd7   : > { %4557 = vmatprep.mubr.msk.f32.mxu0 %vm553_vm8, %v5288_v12  ;;  %4683 = vmatprep.mubr.msk.f32.mxu1 %vm555_vm9, %v5288_v12  ;;  %vm569_vm8 = vcmp.eq.s32.totalorder %v5660_v4, %v359_v37  ;;  %vm571_vm9 = vcmp.eq.s32.totalorder %v5663_v5, %v359_v37 }
  0xd8   : > { %1408 = vperm.xlu1 %5277, %v1272_v23   ;;  %2951 = vmatprep.subr.mxu0 %v5287_v3  ;;  %v392_v23 = vpop.permute.xlu1 %391 }
  0xd9   : > { %1405 = vperm.xlu0 %5276, %v1271_v24   ;;  %5055 = vmatprep.subr.mxu1 %v5287_v3  ;;  %v2904_v24 = vld [vmem:[%s7320_s3 + $0xc8] sm:$0xff] }
  0xda   : > { %4558 = vmatmul.mubr.msk.f32.gmra.mxu0 %vm552_vm10, %v5288_v12  ;;  %4684 = vmatmul.mubr.msk.f32.gmra.mxu1 %vm554_vm11, %v5288_v12  ;;  %vm568_vm10 = vcmp.eq.s32.totalorder %v5649_v0, %v359_v37  ;;  %vm570_vm11 = vcmp.eq.s32.totalorder %v5668_v8, %v359_v37 }
  0xdb   : > { %4559 = vmatprep.mubr.msk.f32.mxu0 %vm557_vm12, %v5288_v12  ;;  %4685 = vmatprep.mubr.msk.f32.mxu1 %vm559_vm13, %v5288_v12  ;;  %vm573_vm12 = vcmp.eq.s32.totalorder %v5660_v4, %v362_v42  ;;  %vm575_vm13 = vcmp.eq.s32.totalorder %v5663_v5, %v362_v42 }
  0xdc   : > { %1414 = vperm.xlu1 %5277, %v1274_v26   ;;  %2952 = vmatpush1.msra.mxu0 %v2882_v27  ;;  %v395_v26 = vpop.permute.xlu0 %394  ;;  %v2903_v27 = vld [vmem:[%s7320_s3 + $0xc0] sm:$0xff] }
  0xdd   : > { %1411 = vperm.xlu0 %5276, %v1273_v28   ;;  %5056 = vmatpush3.msra.mxu1 %v2920_v29  ;;  %v2913_v28 = vld [vmem:[%s7320_s3 + $0x110] sm:$0xff]  ;;  %v398_v29 = vpop.permute.xlu1 %397 }
  0xde   : > { %4560 = vmatmul.mubr.msk.f32.gmra.mxu0 %vm556_vm14, %v5288_v12  ;;  %4686 = vmatmul.mubr.msk.f32.gmra.mxu1 %vm558_vm15, %v5288_v12  ;;  %vm572_vm14 = vcmp.eq.s32.totalorder %v5649_v0, %v362_v42  ;;  %vm574_vm15 = vcmp.eq.s32.totalorder %v5668_v8, %v362_v42  ;;  %v2897_v42 = vld [vmem:[%s7320_s3 + $0x90] sm:$0xff] }
  0xdf   : > { %4561 = vmatprep.mubr.msk.f32.mxu0 %vm561_vm0, %v5288_v12  ;;  %4687 = vmatprep.mubr.msk.f32.mxu1 %vm563_vm1, %v5288_v12  ;;  %vm577_vm0 = vcmp.eq.s32.totalorder %v5660_v4, %v365_v46  ;;  %vm579_vm1 = vcmp.eq.s32.totalorder %v5663_v5, %v365_v46 }
  0xe0   : > { %1420 = vperm.xlu1 %5277, %v1276_v31   ;;  %2953 = vmatprep.subr.mxu0 %v5287_v3  ;;  %v2912_v31 = vld [vmem:[%s7320_s3 + $0x108] sm:$0xff] }
  0xe1   : > { %1417 = vperm.xlu0 %5276, %v1275_v32   ;;  %2954 = vmatpush1.msra.mxu0 %v2881_v33  ;;  %v401_v32 = vpop.permute.xlu0 %400  ;;  %v2901_v33 = vld [vmem:[%s7320_s3 + $0xb0] sm:$0xff] }
  0xe2   : > { %4562 = vmatmul.mubr.msk.f32.gmra.mxu0 %vm560_vm2, %v5288_v12  ;;  %4688 = vmatmul.mubr.msk.f32.gmra.mxu1 %vm562_vm3, %v5288_v12  ;;  %vm576_vm2 = vcmp.eq.s32.totalorder %v5649_v0, %v365_v46  ;;  %vm578_vm3 = vcmp.eq.s32.totalorder %v5668_v8, %v365_v46  ;;  %v2895_v46 = vld [vmem:[%s7320_s3 + $0x80] sm:$0xff] }
  0xe3   : > { %4563 = vmatprep.mubr.msk.f32.mxu0 %vm565_vm4, %v5288_v12  ;;  %4689 = vmatprep.mubr.msk.f32.mxu1 %vm567_vm5, %v5288_v12  ;;  %vm581_vm4 = vcmp.eq.s32.totalorder %v5660_v4, %v368_v49  ;;  %vm583_vm5 = vcmp.eq.s32.totalorder %v5663_v5, %v368_v49 }
  0xe4   : > { %1426 = vperm.xlu1 %5277, %v1278_v35   ;;  %2955 = vmatprep.subr.mxu0 %v5287_v3  ;;  %v404_v35 = vpop.permute.xlu1 %403 }
  0xe5   : > { %1423 = vperm.xlu0 %5276, %v1277_v36   ;;  %5057 = vmatprep.subr.mxu1 %v5287_v3  ;;  %v2900_v36 = vld [vmem:[%s7320_s3 + $0xa8] sm:$0xff]  ;;  %v407_v37 = vpop.permute.xlu0 %406 }
  0xe6   : > { %4564 = vmatmul.mubr.msk.f32.gmra.mxu0 %vm564_vm6, %v5288_v12  ;;  %4690 = vmatmul.mubr.msk.f32.gmra.mxu1 %vm566_vm7, %v5288_v12  ;;  %vm580_vm6 = vcmp.eq.s32.totalorder %v5649_v0, %v368_v49  ;;  %vm582_vm7 = vcmp.eq.s32.totalorder %v5668_v8, %v368_v49 }
  0xe7   : > { %4565 = vmatprep.mubr.msk.f32.mxu0 %vm569_vm8, %v5288_v12  ;;  %4691 = vmatprep.mubr.msk.f32.mxu1 %vm571_vm9, %v5288_v12  ;;  %vm585_vm8 = vcmp.eq.s32.totalorder %v5660_v4, %v371_v54  ;;  %vm587_vm9 = vcmp.eq.s32.totalorder %v5663_v5, %v371_v54 }
  0xe8   : > { %1432 = vperm.xlu1 %5277, %v1280_v38   ;;  %2956 = vmatpush1.msra.mxu0 %v2880_v39  ;;  %v2899_v38 = vld [vmem:[%s7320_s3 + $0xa0] sm:$0xff]  ;;  %v410_v39 = vpop.permute.xlu1 %409 }
  0xe9   : > { %1429 = vperm.xlu0 %5276, %v1279_v40   ;;  %5058 = vmatpush3.msra.mxu1 %v2919_v41  ;;  %v2898_v40 = vld [vmem:[%s7320_s3 + $0x98] sm:$0xff]  ;;  %v413_v41 = vpop.permute.xlu0 %412 }
  0xea   : > { %4566 = vmatmul.mubr.msk.f32.gmra.mxu0 %vm568_vm10, %v5288_v12  ;;  %4692 = vmatmul.mubr.msk.f32.gmra.mxu1 %vm570_vm11, %v5288_v12  ;;  %vm584_vm10 = vcmp.eq.s32.totalorder %v5649_v0, %v371_v54  ;;  %vm586_vm11 = vcmp.eq.s32.totalorder %v5668_v8, %v371_v54 }
  0xeb   : > { %4567 = vmatprep.mubr.msk.f32.mxu0 %vm573_vm12, %v5288_v12  ;;  %4693 = vmatprep.mubr.msk.f32.mxu1 %vm575_vm13, %v5288_v12  ;;  %vm589_vm12 = vcmp.eq.s32.totalorder %v5660_v4, %v374_v58  ;;  %vm591_vm13 = vcmp.eq.s32.totalorder %v5663_v5, %v374_v58 }
  0xec   : > { %1438 = vperm.xlu1 %5277, %v1282_v43   ;;  %2957 = vmatprep.subr.mxu0 %v5287_v3  ;;  %v416_v43 = vpop.permute.xlu1 %415 }
  0xed   : > { %1435 = vperm.xlu0 %5276, %v1281_v44   ;;  %2958 = vmatpush1.msra.mxu0 %v2879_v45  ;;  %v2896_v44 = vld [vmem:[%s7320_s3 + $0x88] sm:$0xff]  ;;  %v419_v45 = vpop.permute.xlu0 %418 }
  0xee   : > { %4568 = vmatmul.mubr.msk.f32.gmra.mxu0 %vm572_vm14, %v5288_v12  ;;  %4694 = vmatmul.mubr.msk.f32.gmra.mxu1 %vm574_vm15, %v5288_v12  ;;  %vm588_vm14 = vcmp.eq.s32.totalorder %v5649_v0, %v374_v58  ;;  %vm590_vm15 = vcmp.eq.s32.totalorder %v5668_v8, %v374_v58 }
  0xef   : > { %4569 = vmatprep.mubr.msk.f32.mxu0 %vm577_vm0, %v5288_v12  ;;  %4695 = vmatprep.mubr.msk.f32.mxu1 %vm579_vm1, %v5288_v12  ;;  %vm593_vm0 = vcmp.eq.s32.totalorder %v5660_v4, %v377_v61  ;;  %vm595_vm1 = vcmp.eq.s32.totalorder %v5663_v5, %v377_v61 }
  0xf0   : > { %1444 = vperm.xlu1 %5277, %v1284_v47   ;;  %2959 = vmatprep.subr.mxu0 %v5287_v3  ;;  %v422_v47 = vpop.permute.xlu1 %421 }
  0xf1   : > { %1441 = vperm.xlu0 %5276, %v1283_v48   ;;  %5059 = vmatprep.subr.mxu1 %v5287_v3  ;;  %v425_v48 = vpop.permute.xlu0 %424 }
  0xf2   : > { %4570 = vmatmul.mubr.msk.f32.gmra.mxu0 %vm576_vm2, %v5288_v12  ;;  %4696 = vmatmul.mubr.msk.f32.gmra.mxu1 %vm578_vm3, %v5288_v12  ;;  %vm592_vm2 = vcmp.eq.s32.totalorder %v5649_v0, %v377_v61  ;;  %vm594_vm3 = vcmp.eq.s32.totalorder %v5668_v8, %v377_v61 }
  0xf3   : > { %4571 = vmatprep.mubr.msk.f32.mxu0 %vm581_vm4, %v5288_v12  ;;  %4697 = vmatprep.mubr.msk.f32.mxu1 %vm583_vm5, %v5288_v12  ;;  %vm597_vm4 = vcmp.eq.s32.totalorder %v5660_v4, %v380_v6  ;;  %vm599_vm5 = vcmp.eq.s32.totalorder %v5663_v5, %v380_v6 }
  0xf4   : > { %1450 = vperm.xlu1 %5277, %v1286_v50   ;;  %2960 = vmatpush2.msra.mxu0 %v2910_v51  ;;  %v428_v49 = vpop.permute.xlu1 %427 }
  0xf5   : > { %1447 = vperm.xlu0 %5276, %v1285_v52   ;;  %5060 = vmatpush3.msra.mxu1 %v2918_v53  ;;  %v431_v50 = vpop.permute.xlu0 %430 }
  0xf6   : > { %4572 = vmatmul.mubr.msk.f32.gmra.mxu0 %vm580_vm6, %v5288_v12  ;;  %4698 = vmatmul.mubr.msk.f32.gmra.mxu1 %vm582_vm7, %v5288_v12  ;;  %vm596_vm6 = vcmp.eq.s32.totalorder %v5649_v0, %v380_v6  ;;  %vm598_vm7 = vcmp.eq.s32.totalorder %v5668_v8, %v380_v6 }
  0xf7   : > { %4573 = vmatprep.mubr.msk.f32.mxu0 %vm585_vm8, %v5288_v12  ;;  %4699 = vmatprep.mubr.msk.f32.mxu1 %vm587_vm9, %v5288_v12  ;;  %vm601_vm8 = vcmp.eq.s32.totalorder %v5660_v4, %v383_v11  ;;  %vm603_vm9 = vcmp.eq.s32.totalorder %v5663_v5, %v383_v11 }
  0xf8   : > { %1456 = vperm.xlu1 %5277, %v1288_v55   ;;  %2961 = vmatprep.subr.mxu0 %v5287_v3  ;;  %v434_v51 = vpop.permute.xlu1 %433 }
  0xf9   : > { %1453 = vperm.xlu0 %5276, %v1287_v56   ;;  %2962 = vmatpush2.msra.mxu0 %v2909_v57  ;;  %v437_v52 = vpop.permute.xlu0 %436 }
  0xfa   : > { %4574 = vmatmul.mubr.msk.f32.gmra.mxu0 %vm584_vm10, %v5288_v12  ;;  %4700 = vmatmul.mubr.msk.f32.gmra.mxu1 %vm586_vm11, %v5288_v12  ;;  %vm600_vm10 = vcmp.eq.s32.totalorder %v5649_v0, %v383_v11  ;;  %vm602_vm11 = vcmp.eq.s32.totalorder %v5668_v8, %v383_v11 }
  0xfb   : > { %4575 = vmatprep.mubr.msk.f32.mxu0 %vm589_vm12, %v5288_v12  ;;  %4701 = vmatprep.mubr.msk.f32.mxu1 %vm591_vm13, %v5288_v12  ;;  %vm605_vm12 = vcmp.eq.s32.totalorder %v5660_v4, %v386_v15  ;;  %vm607_vm13 = vcmp.eq.s32.totalorder %v5663_v5, %v386_v15 }
  0xfc   : > { %1462 = vperm.xlu1 %5277, %v1290_v59   ;;  %2963 = vmatprep.subr.mxu0 %v5287_v3  ;;  %v440_v53 = vpop.permute.xlu1 %439 }
  0xfd   : > { %1459 = vperm.xlu0 %5276, %v1289_v60   ;;  %5061 = vmatprep.subr.mxu1 %v5287_v3  ;;  %v443_v56 = vpop.permute.xlu0 %442 }
  0xfe   : > { %4576 = vmatmul.mubr.msk.f32.gmra.mxu0 %vm588_vm14, %v5288_v12  ;;  %4702 = vmatmul.mubr.msk.f32.gmra.mxu1 %vm590_vm15, %v5288_v12  ;;  %vm604_vm14 = vcmp.eq.s32.totalorder %v5649_v0, %v386_v15  ;;  %vm606_vm15 = vcmp.eq.s32.totalorder %v5668_v8, %v386_v15 }
  0xff   : > { %4577 = vmatprep.mubr.msk.f32.mxu0 %vm593_vm0, %v5288_v12  ;;  %4703 = vmatprep.mubr.msk.f32.mxu1 %vm595_vm1, %v5288_v12  ;;  %vm609_vm0 = vcmp.eq.s32.totalorder %v5660_v4, %v389_v20  ;;  %vm611_vm1 = vcmp.eq.s32.totalorder %v5663_v5, %v389_v20 }
 0x100   : > { %1468 = vperm.xlu1 %5277, %v1292_v62   ;;  %2964 = vmatpush2.msra.mxu0 %v2908_v63  ;;  %v446_v61 = vpop.permute.xlu1 %445 }
 0x101   : > { %1465 = vperm.xlu0 %5276, %v1291_v1   ;;  %5062 = vmatpush3.msra.mxu1 %v2917_v2 }
 0x102   : > { %4578 = vmatmul.mubr.msk.f32.gmra.mxu0 %vm592_vm2, %v5288_v12  ;;  %4704 = vmatmul.mubr.msk.f32.gmra.mxu1 %vm594_vm3, %v5288_v12  ;;  %vm608_vm2 = vcmp.eq.s32.totalorder %v5649_v0, %v389_v20  ;;  %vm610_vm3 = vcmp.eq.s32.totalorder %v5668_v8, %v389_v20 }
 0x103   : > { %4579 = vmatprep.mubr.msk.f32.mxu0 %vm597_vm4, %v5288_v12  ;;  %4705 = vmatprep.mubr.msk.f32.mxu1 %vm599_vm5, %v5288_v12  ;;  %vm613_vm4 = vcmp.eq.s32.totalorder %v5660_v4, %v392_v23  ;;  %vm615_vm5 = vcmp.eq.s32.totalorder %v5663_v5, %v392_v23 }
 0x104   : > { %1474 = vperm.xlu1 %5277, %v1294_v7   ;;  %2965 = vmatprep.subr.mxu0 %v5287_v3  ;;  %v449_v7 = vpop.permute.xlu0 %448  ;;  %v452_v15 = vpop.permute.xlu1 %451 }
 0x105   : > { %1471 = vperm.xlu0 %5276, %v1293_v9   ;;  %2966 = vmatpush2.msra.mxu0 %v2907_v10 }
 0x106   : > { %4580 = vmatmul.mubr.msk.f32.gmra.mxu0 %vm596_vm6, %v5288_v12  ;;  %4706 = vmatmul.mubr.msk.f32.gmra.mxu1 %vm598_vm7, %v5288_v12  ;;  %vm612_vm6 = vcmp.eq.s32.totalorder %v5649_v0, %v392_v23  ;;  %vm614_vm7 = vcmp.eq.s32.totalorder %v5668_v8, %v392_v23 }
 0x107   : > { %4581 = vmatprep.mubr.msk.f32.mxu0 %vm601_vm8, %v5288_v12  ;;  %4707 = vmatprep.mubr.msk.f32.mxu1 %vm603_vm9, %v5288_v12  ;;  %vm617_vm8 = vcmp.eq.s32.totalorder %v5660_v4, %v395_v26  ;;  %vm619_vm9 = vcmp.eq.s32.totalorder %v5663_v5, %v395_v26 }
 0x108   : > { %1480 = vperm.xlu1 %5277, %v1296_v13   ;;  %2967 = vmatprep.subr.mxu0 %v5287_v3 }
 0x109   : > { %1477 = vperm.xlu0 %5276, %v1295_v14   ;;  %5063 = vmatprep.subr.mxu1 %v5287_v3 }
 0x10a   : > { %4582 = vmatmul.mubr.msk.f32.gmra.mxu0 %vm600_vm10, %v5288_v12  ;;  %4708 = vmatmul.mubr.msk.f32.gmra.mxu1 %vm602_vm11, %v5288_v12  ;;  %vm616_vm10 = vcmp.eq.s32.totalorder %v5649_v0, %v395_v26  ;;  %vm618_vm11 = vcmp.eq.s32.totalorder %v5668_v8, %v395_v26 }
 0x10b   : > { %4583 = vmatprep.mubr.msk.f32.mxu0 %vm605_vm12, %v5288_v12  ;;  %4709 = vmatprep.mubr.msk.f32.mxu1 %vm607_vm13, %v5288_v12  ;;  %vm621_vm12 = vcmp.eq.s32.totalorder %v5660_v4, %v398_v29  ;;  %vm623_vm13 = vcmp.eq.s32.totalorder %v5663_v5, %v398_v29 }
 0x10c   : > { %1486 = vperm.xlu1 %5277, %v1298_v16   ;;  %2968 = vmatpush2.msra.mxu0 %v2906_v17 }
 0x10d   : > { %1483 = vperm.xlu0 %5276, %v1297_v18   ;;  %5064 = vmatpush3.msra.mxu1 %v2916_v19 }
 0x10e   : > { %4584 = vmatmul.mubr.msk.f32.gmra.mxu0 %vm604_vm14, %v5288_v12  ;;  %4710 = vmatmul.mubr.msk.f32.gmra.mxu1 %vm606_vm15, %v5288_v12  ;;  %vm620_vm14 = vcmp.eq.s32.totalorder %v5649_v0, %v398_v29  ;;  %vm622_vm15 = vcmp.eq.s32.totalorder %v5668_v8, %v398_v29 }
 0x10f   : > { %4585 = vmatprep.mubr.msk.f32.mxu0 %vm609_vm0, %v5288_v12  ;;  %4711 = vmatprep.mubr.msk.f32.mxu1 %vm611_vm1, %v5288_v12  ;;  %vm625_vm0 = vcmp.eq.s32.totalorder %v5660_v4, %v401_v32  ;;  %vm627_vm1 = vcmp.eq.s32.totalorder %v5663_v5, %v401_v32 }
 0x110   : > { %2969 = vmatprep.subr.mxu0 %v5287_v3  ;;  %5065 = vmatprep.subr.mxu1 %v5287_v3 }
 0x111   : > { %2970 = vmatpush2.msra.mxu0 %v2905_v21  ;;  %5066 = vmatpush3.msra.mxu1 %v2915_v22  ;;  %v455_v21 = vpop.permute.xlu0 %454 }
 0x112   : > { %4586 = vmatmul.mubr.msk.f32.gmra.mxu0 %vm608_vm2, %v5288_v12  ;;  %4712 = vmatmul.mubr.msk.f32.gmra.mxu1 %vm610_vm3, %v5288_v12  ;;  %vm624_vm2 = vcmp.eq.s32.totalorder %v5649_v0, %v401_v32  ;;  %vm626_vm3 = vcmp.eq.s32.totalorder %v5668_v8, %v401_v32 }
 0x113   : > { %4587 = vmatprep.mubr.msk.f32.mxu0 %vm613_vm4, %v5288_v12  ;;  %4713 = vmatprep.mubr.msk.f32.mxu1 %vm615_vm5, %v5288_v12  ;;  %vm629_vm4 = vcmp.eq.s32.totalorder %v5660_v4, %v404_v35  ;;  %vm631_vm5 = vcmp.eq.s32.totalorder %v5663_v5, %v404_v35 }
 0x114   : > { %2971 = vmatprep.subr.mxu0 %v5287_v3  ;;  %5067 = vmatprep.subr.mxu1 %v5287_v3 }
 0x115   : > { %2972 = vmatpush2.msra.mxu0 %v2904_v24  ;;  %5068 = vmatpush3.msra.mxu1 %v2914_v25 }
 0x116   : > { %4588 = vmatmul.mubr.msk.f32.gmra.mxu0 %vm612_vm6, %v5288_v12  ;;  %4714 = vmatmul.mubr.msk.f32.gmra.mxu1 %vm614_vm7, %v5288_v12  ;;  %vm628_vm6 = vcmp.eq.s32.totalorder %v5649_v0, %v404_v35  ;;  %vm630_vm7 = vcmp.eq.s32.totalorder %v5668_v8, %v404_v35 }
 0x117   : > { %4589 = vmatprep.mubr.msk.f32.mxu0 %vm617_vm8, %v5288_v12  ;;  %4715 = vmatprep.mubr.msk.f32.mxu1 %vm619_vm9, %v5288_v12  ;;  %vm633_vm8 = vcmp.eq.s32.totalorder %v5660_v4, %v407_v37  ;;  %vm635_vm9 = vcmp.eq.s32.totalorder %v5663_v5, %v407_v37 }
 0x118   : > { %2973 = vmatprep.subr.mxu0 %v5287_v3  ;;  %5069 = vmatprep.subr.mxu1 %v5287_v3 }
 0x119   : > { %2974 = vmatpush2.msra.mxu0 %v2903_v27  ;;  %5070 = vmatpush3.msra.mxu1 %v2913_v28  ;;  %v458_v27 = vpop.permute.xlu1 %457 }
 0x11a   : > { %4590 = vmatmul.mubr.msk.f32.gmra.mxu0 %vm616_vm10, %v5288_v12  ;;  %4716 = vmatmul.mubr.msk.f32.gmra.mxu1 %vm618_vm11, %v5288_v12  ;;  %vm632_vm10 = vcmp.eq.s32.totalorder %v5649_v0, %v407_v37  ;;  %vm634_vm11 = vcmp.eq.s32.totalorder %v5668_v8, %v407_v37 }
 0x11b   : > { %4591 = vmatprep.mubr.msk.f32.mxu0 %vm621_vm12, %v5288_v12  ;;  %4717 = vmatprep.mubr.msk.f32.mxu1 %vm623_vm13, %v5288_v12  ;;  %vm637_vm12 = vcmp.eq.s32.totalorder %v5660_v4, %v410_v39  ;;  %vm639_vm13 = vcmp.eq.s32.totalorder %v5663_v5, %v410_v39 }
 0x11c   : > { %2975 = vmatprep.subr.mxu0 %v5287_v3  ;;  %5071 = vmatprep.subr.mxu1 %v5287_v3 }
 0x11d   : > { %2976 = vmatpush2.msra.mxu0 %v2902_v30  ;;  %5072 = vmatpush3.msra.mxu1 %v2912_v31 }
 0x11e   : > { %4592 = vmatmul.mubr.msk.f32.gmra.mxu0 %vm620_vm14, %v5288_v12  ;;  %4718 = vmatmul.mubr.msk.f32.gmra.mxu1 %vm622_vm15, %v5288_v12  ;;  %vm636_vm14 = vcmp.eq.s32.totalorder %v5649_v0, %v410_v39  ;;  %vm638_vm15 = vcmp.eq.s32.totalorder %v5668_v8, %v410_v39  ;;  %v464_v39 = vpop.permute.xlu1 %463 }
 0x11f   : > { %4593 = vmatprep.mubr.msk.f32.mxu0 %vm625_vm0, %v5288_v12  ;;  %4719 = vmatprep.mubr.msk.f32.mxu1 %vm627_vm1, %v5288_v12  ;;  %vm641_vm0 = vcmp.eq.s32.totalorder %v5660_v4, %v413_v41  ;;  %vm643_vm1 = vcmp.eq.s32.totalorder %v5663_v5, %v413_v41 }
 0x120   : > { %2977 = vmatprep.subr.mxu0 %v5287_v3  ;;  %5073 = vmatprep.subr.mxu1 %v5287_v3 }
 0x121   : > { %2978 = vmatpush2.msra.mxu0 %v2901_v33  ;;  %5074 = vmatpush3.msra.mxu1 %v2911_v34  ;;  %v461_v33 = vpop.permute.xlu0 %460 }
 0x122   : > { %4594 = vmatmul.mubr.msk.f32.gmra.mxu0 %vm624_vm2, %v5288_v12  ;;  %4720 = vmatmul.mubr.msk.f32.gmra.mxu1 %vm626_vm3, %v5288_v12  ;;  %vm640_vm2 = vcmp.eq.s32.totalorder %v5649_v0, %v413_v41  ;;  %vm642_vm3 = vcmp.eq.s32.totalorder %v5668_v8, %v413_v41 }
 0x123   : > { %4595 = vmatprep.mubr.msk.f32.mxu0 %vm629_vm4, %v5288_v12  ;;  %4721 = vmatprep.mubr.msk.f32.mxu1 %vm631_vm5, %v5288_v12  ;;  %vm645_vm4 = vcmp.eq.s32.totalorder %v5660_v4, %v416_v43  ;;  %vm647_vm5 = vcmp.eq.s32.totalorder %v5663_v5, %v416_v43 }
 0x124   : > { %2979 = vmatprep.subr.mxu0 %v5287_v3 }
 0x125   : > { %2980 = vmatpush2.msra.mxu0 %v2900_v36 }
 0x126   : > { %4596 = vmatmul.mubr.msk.f32.gmra.mxu0 %vm628_vm6, %v5288_v12  ;;  %4722 = vmatmul.mubr.msk.f32.gmra.mxu1 %vm630_vm7, %v5288_v12  ;;  %vm644_vm6 = vcmp.eq.s32.totalorder %v5649_v0, %v416_v43  ;;  %vm646_vm7 = vcmp.eq.s32.totalorder %v5668_v8, %v416_v43 }
 0x127   : > { %4597 = vmatprep.mubr.msk.f32.mxu0 %vm633_vm8, %v5288_v12  ;;  %4723 = vmatprep.mubr.msk.f32.mxu1 %vm635_vm9, %v5288_v12  ;;  %vm649_vm8 = vcmp.eq.s32.totalorder %v5660_v4, %v419_v45  ;;  %vm651_vm9 = vcmp.eq.s32.totalorder %v5663_v5, %v419_v45 }
 0x128   : > { %2981 = vmatprep.subr.mxu0 %v5287_v3 }
 0x129   : > { %2982 = vmatpush2.msra.mxu0 %v2899_v38 }
 0x12a   : > { %4598 = vmatmul.mubr.msk.f32.gmra.mxu0 %vm632_vm10, %v5288_v12  ;;  %4724 = vmatmul.mubr.msk.f32.gmra.mxu1 %vm634_vm11, %v5288_v12  ;;  %vm648_vm10 = vcmp.eq.s32.totalorder %v5649_v0, %v419_v45  ;;  %vm650_vm11 = vcmp.eq.s32.totalorder %v5668_v8, %v419_v45  ;;  %v467_v45 = vpop.permute.xlu0 %466 }
 0x12b   : > { %4599 = vmatprep.mubr.msk.f32.mxu0 %vm637_vm12, %v5288_v12  ;;  %4725 = vmatprep.mubr.msk.f32.mxu1 %vm639_vm13, %v5288_v12  ;;  %vm653_vm12 = vcmp.eq.s32.totalorder %v5660_v4, %v422_v47  ;;  %vm655_vm13 = vcmp.eq.s32.totalorder %v5663_v5, %v422_v47 }
 0x12c   : > { %2983 = vmatprep.subr.mxu0 %v5287_v3 }
 0x12d   : > { %2984 = vmatpush2.msra.mxu0 %v2898_v40 }
 0x12e   : > { %4600 = vmatmul.mubr.msk.f32.gmra.mxu0 %vm636_vm14, %v5288_v12  ;;  %4726 = vmatmul.mubr.msk.f32.gmra.mxu1 %vm638_vm15, %v5288_v12  ;;  %vm652_vm14 = vcmp.eq.s32.totalorder %v5649_v0, %v422_v47  ;;  %vm654_vm15 = vcmp.eq.s32.totalorder %v5668_v8, %v422_v47 }
 0x12f   : > { %4601 = vmatprep.mubr.msk.f32.mxu0 %vm641_vm0, %v5288_v12  ;;  %4727 = vmatprep.mubr.msk.f32.mxu1 %vm643_vm1, %v5288_v12  ;;  %vm657_vm0 = vcmp.eq.s32.totalorder %v5660_v4, %v425_v48  ;;  %vm659_vm1 = vcmp.eq.s32.totalorder %v5663_v5, %v425_v48 }
 0x130   : > { %2985 = vmatprep.subr.mxu0 %v5287_v3 }
 0x131   : > { %2986 = vmatpush2.msra.mxu0 %v2897_v42 }
 0x132   : > { %4602 = vmatmul.mubr.msk.f32.gmra.mxu0 %vm640_vm2, %v5288_v12  ;;  %4728 = vmatmul.mubr.msk.f32.gmra.mxu1 %vm642_vm3, %v5288_v12  ;;  %vm656_vm2 = vcmp.eq.s32.totalorder %v5649_v0, %v425_v48  ;;  %vm658_vm3 = vcmp.eq.s32.totalorder %v5668_v8, %v425_v48 }
 0x133   : > { %4603 = vmatprep.mubr.msk.f32.mxu0 %vm645_vm4, %v5288_v12  ;;  %4729 = vmatprep.mubr.msk.f32.mxu1 %vm647_vm5, %v5288_v12  ;;  %vm661_vm4 = vcmp.eq.s32.totalorder %v5660_v4, %v428_v49  ;;  %vm663_vm5 = vcmp.eq.s32.totalorder %v5663_v5, %v428_v49 }
 0x134   : > { %2987 = vmatprep.subr.mxu0 %v5287_v3 }
 0x135   : > { %2988 = vmatpush2.msra.mxu0 %v2896_v44 }
 0x136   : > { %4604 = vmatmul.mubr.msk.f32.gmra.mxu0 %vm644_vm6, %v5288_v12  ;;  %4730 = vmatmul.mubr.msk.f32.gmra.mxu1 %vm646_vm7, %v5288_v12  ;;  %vm660_vm6 = vcmp.eq.s32.totalorder %v5649_v0, %v428_v49  ;;  %vm662_vm7 = vcmp.eq.s32.totalorder %v5668_v8, %v428_v49 }
 0x137   : > { %4605 = vmatprep.mubr.msk.f32.mxu0 %vm649_vm8, %v5288_v12  ;;  %4731 = vmatprep.mubr.msk.f32.mxu1 %vm651_vm9, %v5288_v12  ;;  %vm665_vm8 = vcmp.eq.s32.totalorder %v5660_v4, %v431_v50  ;;  %vm667_vm9 = vcmp.eq.s32.totalorder %v5663_v5, %v431_v50 }
 0x138   : > { %2989 = vmatprep.subr.mxu0 %v5287_v3 }
 0x139   : > { %2990 = vmatpush2.msra.mxu0 %v2895_v46 }
 0x13a   : > { %4606 = vmatmul.mubr.msk.f32.gmra.mxu0 %vm648_vm10, %v5288_v12  ;;  %4732 = vmatmul.mubr.msk.f32.gmra.mxu1 %vm650_vm11, %v5288_v12  ;;  %vm664_vm10 = vcmp.eq.s32.totalorder %v5649_v0, %v431_v50  ;;  %vm666_vm11 = vcmp.eq.s32.totalorder %v5668_v8, %v431_v50 }
 0x13b   : > { %4607 = vmatprep.mubr.msk.f32.mxu0 %vm653_vm12, %v5288_v12  ;;  %4733 = vmatprep.mubr.msk.f32.mxu1 %vm655_vm13, %v5288_v12  ;;  %vm669_vm12 = vcmp.eq.s32.totalorder %v5660_v4, %v434_v51  ;;  %vm671_vm13 = vcmp.eq.s32.totalorder %v5663_v5, %v434_v51 }
 0x13e   : > { %4608 = vmatmul.mubr.msk.f32.gmra.mxu0 %vm652_vm14, %v5288_v12  ;;  %4734 = vmatmul.mubr.msk.f32.gmra.mxu1 %vm654_vm15, %v5288_v12  ;;  %vm668_vm14 = vcmp.eq.s32.totalorder %v5649_v0, %v434_v51  ;;  %vm670_vm15 = vcmp.eq.s32.totalorder %v5668_v8, %v434_v51  ;;  %v470_v51 = vpop.permute.xlu1 %469 }
 0x13f   : > { %4609 = vmatprep.mubr.msk.f32.mxu0 %vm657_vm0, %v5288_v12  ;;  %4735 = vmatprep.mubr.msk.f32.mxu1 %vm659_vm1, %v5288_v12  ;;  %vm673_vm0 = vcmp.eq.s32.totalorder %v5660_v4, %v437_v52  ;;  %vm675_vm1 = vcmp.eq.s32.totalorder %v5663_v5, %v437_v52 }
 0x142   : > { %4610 = vmatmul.mubr.msk.f32.gmra.mxu0 %vm656_vm2, %v5288_v12  ;;  %4736 = vmatmul.mubr.msk.f32.gmra.mxu1 %vm658_vm3, %v5288_v12  ;;  %vm672_vm2 = vcmp.eq.s32.totalorder %v5649_v0, %v437_v52  ;;  %vm674_vm3 = vcmp.eq.s32.totalorder %v5668_v8, %v437_v52 }
 0x143   : > { %4611 = vmatprep.mubr.msk.f32.mxu0 %vm661_vm4, %v5288_v12  ;;  %4737 = vmatprep.mubr.msk.f32.mxu1 %vm663_vm5, %v5288_v12  ;;  %vm677_vm4 = vcmp.eq.s32.totalorder %v5660_v4, %v440_v53  ;;  %vm679_vm5 = vcmp.eq.s32.totalorder %v5663_v5, %v440_v53 }
 0x146   : > { %4612 = vmatmul.mubr.msk.f32.gmra.mxu0 %vm660_vm6, %v5288_v12  ;;  %4738 = vmatmul.mubr.msk.f32.gmra.mxu1 %vm662_vm7, %v5288_v12  ;;  %vm676_vm6 = vcmp.eq.s32.totalorder %v5649_v0, %v440_v53  ;;  %vm678_vm7 = vcmp.eq.s32.totalorder %v5668_v8, %v440_v53 }
 0x147   : > { %4613 = vmatprep.mubr.msk.f32.mxu0 %vm665_vm8, %v5288_v12  ;;  %4739 = vmatprep.mubr.msk.f32.mxu1 %vm667_vm9, %v5288_v12  ;;  %vm681_vm8 = vcmp.eq.s32.totalorder %v5660_v4, %v443_v56  ;;  %vm683_vm9 = vcmp.eq.s32.totalorder %v5663_v5, %v443_v56 }
 0x14a   : > { %4614 = vmatmul.mubr.msk.f32.gmra.mxu0 %vm664_vm10, %v5288_v12  ;;  %4740 = vmatmul.mubr.msk.f32.gmra.mxu1 %vm666_vm11, %v5288_v12  ;;  %vm680_vm10 = vcmp.eq.s32.totalorder %v5649_v0, %v443_v56  ;;  %vm682_vm11 = vcmp.eq.s32.totalorder %v5668_v8, %v443_v56 }
 0x14b   : > { %4615 = vmatprep.mubr.msk.f32.mxu0 %vm669_vm12, %v5288_v12  ;;  %4741 = vmatprep.mubr.msk.f32.mxu1 %vm671_vm13, %v5288_v12  ;;  %vm685_vm12 = vcmp.eq.s32.totalorder %v5660_v4, %v446_v61  ;;  %vm687_vm13 = vcmp.eq.s32.totalorder %v5663_v5, %v446_v61 }
 0x14e   : > { %4616 = vmatmul.mubr.msk.f32.gmra.mxu0 %vm668_vm14, %v5288_v12  ;;  %4742 = vmatmul.mubr.msk.f32.gmra.mxu1 %vm670_vm15, %v5288_v12  ;;  %vm684_vm14 = vcmp.eq.s32.totalorder %v5649_v0, %v446_v61  ;;  %vm686_vm15 = vcmp.eq.s32.totalorder %v5668_v8, %v446_v61 }
 0x14f   : > { %4617 = vmatprep.mubr.msk.f32.mxu0 %vm673_vm0, %v5288_v12  ;;  %4743 = vmatprep.mubr.msk.f32.mxu1 %vm675_vm1, %v5288_v12  ;;  %vm689_vm0 = vcmp.eq.s32.totalorder %v5660_v4, %v449_v7  ;;  %vm691_vm1 = vcmp.eq.s32.totalorder %v5663_v5, %v449_v7 }
 0x152   : > { %v2185_v54 = vpop.f32.mrf.mxu0  ;;  %4618 = vmatmul.mubr.msk.f32.gmra.mxu0 %vm672_vm2, %v5288_v12  ;;  %v2565_v55 = vpop.f32.mrf.mxu1  ;;  %4744 = vmatmul.mubr.msk.f32.gmra.mxu1 %vm674_vm3, %v5288_v12  ;;  %vm688_vm2 = vcmp.eq.s32.totalorder %v5649_v0, %v449_v7  ;;  %vm690_vm3 = vcmp.eq.s32.totalorder %v5668_v8, %v449_v7 }
 0x153   : > { %v6316_v57 = vadd.f32 %v2565_v55, %v2185_v54  ;;  %4619 = vmatprep.mubr.msk.f32.mxu0 %vm677_vm4, %v5288_v12  ;;  %4745 = vmatprep.mubr.msk.f32.mxu1 %vm679_vm5, %v5288_v12  ;;  %vm693_vm4 = vcmp.eq.s32.totalorder %v5660_v4, %v452_v15  ;;  %vm695_vm5 = vcmp.eq.s32.totalorder %v5663_v5, %v452_v15 }
 0x154   : > { %v2187_v58 = vpop.f32.mrf.mxu0  ;;  %v2567_v59 = vpop.f32.mrf.mxu1 }
 0x155   : > { %v473_v58 = vpop.permute.xlu0 %472 }
 0x156   : > { %v2190_v60 = vpop.f32.mrf.mxu0  ;;  %4620 = vmatmul.mubr.msk.f32.gmra.mxu0 %vm676_vm6, %v5288_v12  ;;  %4746 = vmatmul.mubr.msk.f32.gmra.mxu1 %vm678_vm7, %v5288_v12  ;;  %v2570_v62 = vpop.f32.mrf.mxu1  ;;  %vm692_vm6 = vcmp.eq.s32.totalorder %v5649_v0, %v452_v15  ;;  %vm694_vm7 = vcmp.eq.s32.totalorder %v5668_v8, %v452_v15 }
 0x157   : > { %4621 = vmatprep.mubr.msk.f32.mxu0 %vm681_vm8, %v5288_v12  ;;  %4747 = vmatprep.mubr.msk.f32.mxu1 %vm683_vm9, %v5288_v12  ;;  %v6328_v63 = vadd.f32 %v2570_v62, %v2190_v60  ;;  %vm697_vm8 = vcmp.eq.s32.totalorder %v5660_v4, %v455_v21  ;;  %vm699_vm9 = vcmp.eq.s32.totalorder %v5663_v5, %v455_v21 }
 0x158   : > { %v2192_v1 = vpop.f32.mrf.mxu0  ;;  %v2572_v2 = vpop.f32.mrf.mxu1 }
 0x159   : > { %v476_v2 = vpop.permute.xlu1 %475 }
 0x15a   : > { %v2195_v6 = vpop.f32.mrf.mxu0  ;;  %4622 = vmatmul.mubr.msk.f32.gmra.mxu0 %vm680_vm10, %v5288_v12  ;;  %4748 = vmatmul.mubr.msk.f32.gmra.mxu1 %vm682_vm11, %v5288_v12  ;;  %v2575_v9 = vpop.f32.mrf.mxu1  ;;  %vm696_vm10 = vcmp.eq.s32.totalorder %v5649_v0, %v455_v21  ;;  %vm698_vm11 = vcmp.eq.s32.totalorder %v5668_v8, %v455_v21 }
 0x15b   : > { %4623 = vmatprep.mubr.msk.f32.mxu0 %vm685_vm12, %v5288_v12  ;;  %4749 = vmatprep.mubr.msk.f32.mxu1 %vm687_vm13, %v5288_v12  ;;  %v6338_v10 = vadd.f32 %v2575_v9, %v2195_v6  ;;  %vm701_vm12 = vcmp.eq.s32.totalorder %v5660_v4, %v458_v27  ;;  %vm703_vm13 = vcmp.eq.s32.totalorder %v5663_v5, %v458_v27 }
 0x15c   : > { %v2197_v11 = vpop.f32.mrf.mxu0  ;;  %v2577_v13 = vpop.f32.mrf.mxu1 }
 0x15d   : > { %v1301_v21 = vpop.permute.xlu1 %1300 }
 0x15e   : > { %v2200_v14 = vpop.f32.mrf.mxu0  ;;  %4624 = vmatmul.mubr.msk.f32.gmra.mxu0 %vm684_vm14, %v5288_v12  ;;  %4750 = vmatmul.mubr.msk.f32.gmra.mxu1 %vm686_vm15, %v5288_v12  ;;  %v2580_v16 = vpop.f32.mrf.mxu1  ;;  %vm700_vm14 = vcmp.eq.s32.totalorder %v5649_v0, %v458_v27  ;;  %vm702_vm15 = vcmp.eq.s32.totalorder %v5668_v8, %v458_v27 }
 0x15f   : > { %4625 = vmatprep.mubr.msk.f32.mxu0 %vm689_vm0, %v5288_v12  ;;  %4751 = vmatprep.mubr.msk.f32.mxu1 %vm691_vm1, %v5288_v12  ;;  %v6348_v17 = vadd.f32 %v2580_v16, %v2200_v14  ;;  %vm705_vm0 = vcmp.eq.s32.totalorder %v5660_v4, %v461_v33  ;;  %vm707_vm1 = vcmp.eq.s32.totalorder %v5663_v5, %v461_v33  ;;  %v479_v14 = vpop.permute.xlu0 %478 }
 0x160   : > { %v2202_v18 = vpop.f32.mrf.mxu0  ;;  %v2582_v19 = vpop.f32.mrf.mxu1 }
 0x162   : > { %v2205_v20 = vpop.f32.mrf.mxu0  ;;  %4626 = vmatmul.mubr.msk.f32.gmra.mxu0 %vm688_vm2, %v5288_v12  ;;  %4752 = vmatmul.mubr.msk.f32.gmra.mxu1 %vm690_vm3, %v5288_v12  ;;  %v2585_v22 = vpop.f32.mrf.mxu1  ;;  %vm704_vm2 = vcmp.eq.s32.totalorder %v5649_v0, %v461_v33  ;;  %vm706_vm3 = vcmp.eq.s32.totalorder %v5668_v8, %v461_v33 }
 0x163   : > { %4627 = vmatprep.mubr.msk.f32.mxu0 %vm693_vm4, %v5288_v12  ;;  %4753 = vmatprep.mubr.msk.f32.mxu1 %vm695_vm5, %v5288_v12  ;;  %v6358_v23 = vadd.f32 %v2585_v22, %v2205_v20  ;;  %vm709_vm4 = vcmp.eq.s32.totalorder %v5660_v4, %v464_v39  ;;  %vm711_vm5 = vcmp.eq.s32.totalorder %v5663_v5, %v464_v39 }
 0x164   : > { %v2207_v24 = vpop.f32.mrf.mxu0  ;;  %v2587_v25 = vpop.f32.mrf.mxu1 }
 0x166   : > { %v2210_v26 = vpop.f32.mrf.mxu0  ;;  %4628 = vmatmul.mubr.msk.f32.gmra.mxu0 %vm692_vm6, %v5288_v12  ;;  %4754 = vmatmul.mubr.msk.f32.gmra.mxu1 %vm694_vm7, %v5288_v12  ;;  %v2590_v28 = vpop.f32.mrf.mxu1  ;;  %vm708_vm6 = vcmp.eq.s32.totalorder %v5649_v0, %v464_v39  ;;  %vm710_vm7 = vcmp.eq.s32.totalorder %v5668_v8, %v464_v39 }
 0x167   : > { %4629 = vmatprep.mubr.msk.f32.mxu0 %vm697_vm8, %v5288_v12  ;;  %4755 = vmatprep.mubr.msk.f32.mxu1 %vm699_vm9, %v5288_v12  ;;  %v6368_v29 = vadd.f32 %v2590_v28, %v2210_v26  ;;  %vm713_vm8 = vcmp.eq.s32.totalorder %v5660_v4, %v467_v45  ;;  %vm715_vm9 = vcmp.eq.s32.totalorder %v5663_v5, %v467_v45 }
 0x168   : > { %v2212_v30 = vpop.f32.mrf.mxu0  ;;  %v2592_v31 = vpop.f32.mrf.mxu1 }
 0x16a   : > { %v2215_v32 = vpop.f32.mrf.mxu0  ;;  %4630 = vmatmul.mubr.msk.f32.gmra.mxu0 %vm696_vm10, %v5288_v12  ;;  %4756 = vmatmul.mubr.msk.f32.gmra.mxu1 %vm698_vm11, %v5288_v12  ;;  %v2595_v34 = vpop.f32.mrf.mxu1  ;;  %vm712_vm10 = vcmp.eq.s32.totalorder %v5649_v0, %v467_v45  ;;  %vm714_vm11 = vcmp.eq.s32.totalorder %v5668_v8, %v467_v45 }
 0x16b   : > { %4631 = vmatprep.mubr.msk.f32.mxu0 %vm701_vm12, %v5288_v12  ;;  %4757 = vmatprep.mubr.msk.f32.mxu1 %vm703_vm13, %v5288_v12  ;;  %v6378_v35 = vadd.f32 %v2595_v34, %v2215_v32  ;;  %vm717_vm12 = vcmp.eq.s32.totalorder %v5660_v4, %v470_v51  ;;  %vm719_vm13 = vcmp.eq.s32.totalorder %v5663_v5, %v470_v51  ;;  %v1307_v34 = vpop.permute.xlu1 %1306 }
 0x16c   : > { %v2217_v36 = vpop.f32.mrf.mxu0  ;;  %v2597_v37 = vpop.f32.mrf.mxu1 }
 0x16e   : > { %v2220_v38 = vpop.f32.mrf.mxu0  ;;  %4632 = vmatmul.mubr.msk.f32.gmra.mxu0 %vm700_vm14, %v5288_v12  ;;  %4758 = vmatmul.mubr.msk.f32.gmra.mxu1 %vm702_vm15, %v5288_v12  ;;  %v2600_v40 = vpop.f32.mrf.mxu1  ;;  %vm716_vm14 = vcmp.eq.s32.totalorder %v5649_v0, %v470_v51  ;;  %vm718_vm15 = vcmp.eq.s32.totalorder %v5668_v8, %v470_v51 }
 0x16f   : > { %4633 = vmatprep.mubr.msk.f32.mxu0 %vm705_vm0, %v5288_v12  ;;  %4759 = vmatprep.mubr.msk.f32.mxu1 %vm707_vm1, %v5288_v12  ;;  %v6388_v41 = vadd.f32 %v2600_v40, %v2220_v38  ;;  %vm721_vm0 = vcmp.eq.s32.totalorder %v5660_v4, %v473_v58  ;;  %vm723_vm1 = vcmp.eq.s32.totalorder %v5663_v5, %v473_v58 }
 0x170   : > { %v2222_v42 = vpop.f32.mrf.mxu0  ;;  %v2602_v43 = vpop.f32.mrf.mxu1 }
 0x172   : > { %v2225_v44 = vpop.f32.mrf.mxu0  ;;  %4634 = vmatmul.mubr.msk.f32.gmra.mxu0 %vm704_vm2, %v5288_v12  ;;  %4760 = vmatmul.mubr.msk.f32.gmra.mxu1 %vm706_vm3, %v5288_v12  ;;  %v2605_v46 = vpop.f32.mrf.mxu1  ;;  %vm720_vm2 = vcmp.eq.s32.totalorder %v5649_v0, %v473_v58  ;;  %vm722_vm3 = vcmp.eq.s32.totalorder %v5668_v8, %v473_v58 }
 0x173   : > { %4635 = vmatprep.mubr.msk.f32.mxu0 %vm709_vm4, %v5288_v12  ;;  %4761 = vmatprep.mubr.msk.f32.mxu1 %vm711_vm5, %v5288_v12  ;;  %v6398_v47 = vadd.f32 %v2605_v46, %v2225_v44  ;;  %vm725_vm4 = vcmp.eq.s32.totalorder %v5660_v4, %v476_v2  ;;  %vm727_vm5 = vcmp.eq.s32.totalorder %v5663_v5, %v476_v2 }
 0x174   : > { %v2227_v48 = vpop.f32.mrf.mxu0  ;;  %v2607_v49 = vpop.f32.mrf.mxu1 }
 0x175   : > { %v1313_v49 = vpop.permute.xlu1 %1312 }
 0x176   : > { %v2230_v50 = vpop.f32.mrf.mxu0  ;;  %4636 = vmatmul.mubr.msk.f32.gmra.mxu0 %vm708_vm6, %v5288_v12  ;;  %4762 = vmatmul.mubr.msk.f32.gmra.mxu1 %vm710_vm7, %v5288_v12  ;;  %v2610_v52 = vpop.f32.mrf.mxu1  ;;  %vm724_vm6 = vcmp.eq.s32.totalorder %v5649_v0, %v476_v2  ;;  %vm726_vm7 = vcmp.eq.s32.totalorder %v5668_v8, %v476_v2 }
 0x177   : > { %4637 = vmatprep.mubr.msk.f32.mxu0 %vm713_vm8, %v5288_v12  ;;  %4763 = vmatprep.mubr.msk.f32.mxu1 %vm715_vm9, %v5288_v12  ;;  %v6408_v53 = vadd.f32 %v2610_v52, %v2230_v50  ;;  %vm729_vm8 = vcmp.eq.s32.totalorder %v5660_v4, %v479_v14  ;;  %vm731_vm9 = vcmp.eq.s32.totalorder %v5663_v5, %v479_v14  ;;  %v1304_v5 = vpop.permute.xlu0 %1303 }
 0x178   : > { %v2232_v54 = vpop.f32.mrf.mxu0  ;;  %v2612_v55 = vpop.f32.mrf.mxu1 }
 0x179   : > { %v1319_v2 = vpop.permute.xlu1 %1318 }
 0x17a   : > { %v2235_v56 = vpop.f32.mrf.mxu0  ;;  %4638 = vmatmul.mubr.msk.f32.gmra.mxu0 %vm712_vm10, %v5288_v12  ;;  %4764 = vmatmul.mubr.msk.f32.gmra.mxu1 %vm714_vm11, %v5288_v12  ;;  %v2615_v59 = vpop.f32.mrf.mxu1  ;;  %vm728_vm10 = vcmp.eq.s32.totalorder %v5649_v0, %v479_v14  ;;  %vm730_vm11 = vcmp.eq.s32.totalorder %v5668_v8, %v479_v14 }
 0x17b   : > { %4639 = vmatprep.mubr.msk.f32.mxu0 %vm717_vm12, %v5288_v12  ;;  %4765 = vmatprep.mubr.msk.f32.mxu1 %vm719_vm13, %v5288_v12  ;;  %v6418_v60 = vadd.f32 %v2615_v59, %v2235_v56  ;;  %vm1489_vm12 = vcmp.eq.s32.totalorder %v5660_v4, %v1301_v21  ;;  %vm5289_vm13 = vmmov 0   ;;  %v1310_v42 = vpop.permute.xlu0 %1309 }
 0x17c   : > { %v2237_v61 = vpop.f32.mrf.mxu0  ;;  %v2617_v62 = vpop.f32.mrf.mxu1 }
 0x17e   : > { %v2240_v1 = vpop.f32.mrf.mxu0  ;;  %4640 = vmatmul.mubr.msk.f32.gmra.mxu0 %vm716_vm14, %v5288_v12  ;;  %4766 = vmatmul.mubr.msk.f32.gmra.mxu1 %vm718_vm15, %v5288_v12  ;;  %v2620_v6 = vpop.f32.mrf.mxu1  ;;  %vm1488_vm14 = vcmp.eq.s32.totalorder %v5649_v0, %v1301_v21  ;;  %vm1490_vm15 = vcmp.eq.s32.totalorder %v5668_v8, %v1301_v21 }
 0x17f   : > { %4641 = vmatprep.mubr.msk.f32.mxu0 %vm721_vm0, %v5288_v12  ;;  %4767 = vmatprep.mubr.msk.f32.mxu1 %vm723_vm1, %v5288_v12  ;;  %v6428_v7 = vadd.f32 %v2620_v6, %v2240_v1  ;;  %vm1492_vm0 = vcmp.eq.s32.totalorder %v5660_v4, %v1304_v5  ;;  %vm1491_vm1 = vcmp.eq.s32.totalorder %v5649_v0, %v1304_v5  ;;  %v1316_v56 = vpop.permute.xlu0 %1315 }
 0x180   : > { %v2242_v9 = vpop.f32.mrf.mxu0  ;;  %v2622_v11 = vpop.f32.mrf.mxu1 }
 0x182   : > { %v2245_v13 = vpop.f32.mrf.mxu0  ;;  %4642 = vmatmul.mubr.msk.f32.gmra.mxu0 %vm720_vm2, %v5288_v12  ;;  %4768 = vmatmul.mubr.msk.f32.gmra.mxu1 %vm722_vm3, %v5288_v12  ;;  %v2625_v15 = vpop.f32.mrf.mxu1  ;;  %vm1493_vm2 = vcmp.eq.s32.totalorder %v5668_v8, %v1304_v5  ;;  %vm1495_vm3 = vcmp.eq.s32.totalorder %v5660_v4, %v1307_v34 }
 0x183   : > { %4643 = vmatprep.mubr.msk.f32.mxu0 %vm725_vm4, %v5288_v12  ;;  %4769 = vmatprep.mubr.msk.f32.mxu1 %vm727_vm5, %v5288_v12  ;;  %v6438_v16 = vadd.f32 %v2625_v15, %v2245_v13  ;;  %vm1494_vm4 = vcmp.eq.s32.totalorder %v5649_v0, %v1307_v34  ;;  %vm1496_vm5 = vcmp.eq.s32.totalorder %v5668_v8, %v1307_v34  ;;  %v1322_v15 = vpop.permute.xlu0 %1321 }
 0x184   : > { %v2247_v18 = vpop.f32.mrf.mxu0  ;;  %v2627_v19 = vpop.f32.mrf.mxu1 }
 0x186   : > { %v2250_v20 = vpop.f32.mrf.mxu0  ;;  %4644 = vmatmul.mubr.msk.f32.gmra.mxu0 %vm724_vm6, %v5288_v12  ;;  %4770 = vmatmul.mubr.msk.f32.gmra.mxu1 %vm726_vm7, %v5288_v12  ;;  %v2630_v22 = vpop.f32.mrf.mxu1  ;;  %vm1498_vm6 = vcmp.eq.s32.totalorder %v5660_v4, %v1310_v42  ;;  %vm1497_vm7 = vcmp.eq.s32.totalorder %v5649_v0, %v1310_v42 }
 0x187   : > { %4645 = vmatprep.mubr.msk.f32.mxu0 %vm729_vm8, %v5288_v12  ;;  %4771 = vmatprep.mubr.msk.f32.mxu1 %vm731_vm9, %v5288_v12  ;;  %v6448_v24 = vadd.f32 %v2630_v22, %v2250_v20  ;;  %vm1499_vm8 = vcmp.eq.s32.totalorder %v5668_v8, %v1310_v42  ;;  %vm1501_vm9 = vcmp.eq.s32.totalorder %v5660_v4, %v1313_v49 }
 0x188   : > { %v2252_v25 = vpop.f32.mrf.mxu0  ;;  %v2632_v26 = vpop.f32.mrf.mxu1 }
 0x189   : > { %v1325_v25 = vpop.permute.xlu1 %1324 }
 0x18a   : > { %v2255_v27 = vpop.f32.mrf.mxu0  ;;  %4646 = vmatmul.mubr.msk.f32.gmra.mxu0 %vm728_vm10, %v5288_v12  ;;  %4772 = vmatmul.mubr.msk.f32.gmra.mxu1 %vm730_vm11, %v5288_v12  ;;  %v2635_v28 = vpop.f32.mrf.mxu1  ;;  %vm1500_vm10 = vcmp.eq.s32.totalorder %v5649_v0, %v1313_v49  ;;  %vm1502_vm11 = vcmp.eq.s32.totalorder %v5668_v8, %v1313_v49 }
 0x18b   : > { %4773 = vmatprep.mubr.msk.f32.mxu0 %vm1489_vm12, %v5288_v12  ;;  %5075 = vmatprep.mubr.msk.f32.mxu1 %vm5289_vm13, %v5287_v3  ;;  %v6458_v30 = vadd.f32 %v2635_v28, %v2255_v27  ;;  %vm1504_vm12 = vcmp.eq.s32.totalorder %v5660_v4, %v1316_v56 }
 0x18c   : > { %v2257_v31 = vpop.f32.mrf.mxu0  ;;  %v2637_v32 = vpop.f32.mrf.mxu1 }
 0x18d   : > { %v1328_v32 = vpop.permute.xlu0 %1327 }
 0x18e   : > { %v2260_v33 = vpop.f32.mrf.mxu0  ;;  %4774 = vmatmul.mubr.msk.f32.vlgmr.msra.gmra.mxu0 %vm1488_vm14, %v5288_v12  ;;  %5076 = vmatmul.mubr.msk.f32.vlgmr.msra.gmra.mxu1 %vm1490_vm15, %v5288_v12  ;;  %v2640_v36 = vpop.f32.mrf.mxu1  ;;  %vm1503_vm14 = vcmp.eq.s32.totalorder %v5649_v0, %v1316_v56  ;;  %vm1505_vm15 = vcmp.eq.s32.totalorder %v5668_v8, %v1316_v56 }
 0x18f   : > { %4775 = vmatprep.mubr.msk.f32.mxu0 %vm1492_vm0, %v5288_v12  ;;  %5078 = vmatprep.mubr.msk.f32.mxu1 %vm5289_vm13, %v5287_v3  ;;  %v6468_v37 = vadd.f32 %v2640_v36, %v2260_v33  ;;  %vm1507_vm0 = vcmp.eq.s32.totalorder %v5660_v4, %v1319_v2 }
 0x190   : > { %v2262_v38 = vpop.f32.mrf.mxu0  ;;  %v2642_v39 = vpop.f32.mrf.mxu1 }
 0x191   : > { %v1334_v49 = vpop.permute.xlu0 %1333 }
 0x192   : > { %v2265_v40 = vpop.f32.mrf.mxu0  ;;  %4776 = vmatmul.mubr.msk.f32.gmra.mxu0 %vm1491_vm1, %v5288_v12  ;;  %5079 = vmatmul.mubr.msk.f32.gmra.mxu1 %vm1493_vm2, %v5288_v12  ;;  %v2645_v43 = vpop.f32.mrf.mxu1  ;;  %vm1506_vm1 = vcmp.eq.s32.totalorder %v5649_v0, %v1319_v2  ;;  %vm1508_vm2 = vcmp.eq.s32.totalorder %v5668_v8, %v1319_v2 }
 0x193   : > { %4777 = vmatprep.mubr.msk.f32.mxu0 %vm1495_vm3, %v5288_v12  ;;  %5081 = vmatprep.mubr.msk.f32.mxu1 %vm5289_vm13, %v5287_v3  ;;  %v6478_v44 = vadd.f32 %v2645_v43, %v2265_v40  ;;  %vm1510_vm3 = vcmp.eq.s32.totalorder %v5660_v4, %v1322_v15  ;;  %v1331_v40 = vpop.permute.xlu1 %1330 }
 0x194   : > { %v2267_v45 = vpop.f32.mrf.mxu0  ;;  %v2647_v46 = vpop.f32.mrf.mxu1 }
 0x196   : > { %v2270_v48 = vpop.f32.mrf.mxu0  ;;  %4778 = vmatmul.mubr.msk.f32.gmra.mxu0 %vm1494_vm4, %v5288_v12  ;;  %5082 = vmatmul.mubr.msk.f32.gmra.mxu1 %vm1496_vm5, %v5288_v12  ;;  %v2650_v50 = vpop.f32.mrf.mxu1  ;;  %vm1509_vm4 = vcmp.eq.s32.totalorder %v5649_v0, %v1322_v15  ;;  %vm1511_vm5 = vcmp.eq.s32.totalorder %v5668_v8, %v1322_v15 }
 0x197   : > { %4779 = vmatprep.mubr.msk.f32.mxu0 %vm1498_vm6, %v5288_v12  ;;  %5084 = vmatprep.mubr.msk.f32.mxu1 %vm5289_vm13, %v5287_v3  ;;  %v6488_v51 = vadd.f32 %v2650_v50, %v2270_v48  ;;  %vm1513_vm6 = vcmp.eq.s32.totalorder %v5660_v4, %v1325_v25 }
 0x198   : > { %v2272_v52 = vpop.f32.mrf.mxu0  ;;  %v2652_v54 = vpop.f32.mrf.mxu1 }
 0x19a   : > { %v2275_v55 = vpop.f32.mrf.mxu0  ;;  %4780 = vmatmul.mubr.msk.f32.gmra.mxu0 %vm1497_vm7, %v5288_v12  ;;  %5085 = vmatmul.mubr.msk.f32.gmra.mxu1 %vm1499_vm8, %v5288_v12  ;;  %v2655_v58 = vpop.f32.mrf.mxu1  ;;  %vm1512_vm7 = vcmp.eq.s32.totalorder %v5649_v0, %v1325_v25  ;;  %vm1514_vm8 = vcmp.eq.s32.totalorder %v5668_v8, %v1325_v25 }
 0x19b   : > { %4781 = vmatprep.mubr.msk.f32.mxu0 %vm1501_vm9, %v5288_v12  ;;  %5087 = vmatprep.mubr.msk.f32.mxu1 %vm5289_vm13, %v5287_v3  ;;  %v6498_v59 = vadd.f32 %v2655_v58, %v2275_v55  ;;  %vm1516_vm9 = vcmp.eq.s32.totalorder %v5660_v4, %v1328_v32  ;;  %v1337_v58 = vpop.permute.xlu1 %1336 }
 0x19c   : > { %v2277_v61 = vpop.f32.mrf.mxu0  ;;  %v2657_v62 = vpop.f32.mrf.mxu1 }
 0x19e   : > { %v2280_v1 = vpop.f32.mrf.mxu0  ;;  %4782 = vmatmul.mubr.msk.f32.gmra.mxu0 %vm1500_vm10, %v5288_v12  ;;  %5088 = vmatmul.mubr.msk.f32.gmra.mxu1 %vm1502_vm11, %v5288_v12  ;;  %v2660_v6 = vpop.f32.mrf.mxu1  ;;  %vm1515_vm10 = vcmp.eq.s32.totalorder %v5649_v0, %v1328_v32  ;;  %vm1517_vm11 = vcmp.eq.s32.totalorder %v5668_v8, %v1328_v32 }
 0x19f   : > { %4783 = vmatprep.mubr.msk.f32.mxu0 %vm1504_vm12, %v5288_v12  ;;  %5090 = vmatprep.mubr.msk.f32.mxu1 %vm5289_vm13, %v5287_v3  ;;  %v6508_v9 = vadd.f32 %v2660_v6, %v2280_v1  ;;  %vm1519_vm12 = vcmp.eq.s32.totalorder %v5660_v4, %v1331_v40 }
 0x1a0   : > { %v2282_v11 = vpop.f32.mrf.mxu0  ;;  %v2662_v13 = vpop.f32.mrf.mxu1 }
 0x1a1   : > { %v1340_v11 = vpop.permute.xlu0 %1339 }
 0x1a2   : > { %v2285_v14 = vpop.f32.mrf.mxu0  ;;  %4784 = vmatmul.mubr.msk.f32.gmra.mxu0 %vm1503_vm14, %v5288_v12  ;;  %5091 = vmatmul.mubr.msk.f32.gmra.mxu1 %vm1505_vm15, %v5288_v12  ;;  %v2665_v18 = vpop.f32.mrf.mxu1  ;;  %vm1518_vm14 = vcmp.eq.s32.totalorder %v5649_v0, %v1331_v40  ;;  %vm1520_vm15 = vcmp.eq.s32.totalorder %v5668_v8, %v1331_v40 }
 0x1a3   : > { %4785 = vmatprep.mubr.msk.f32.mxu0 %vm1507_vm0, %v5288_v12  ;;  %5093 = vmatprep.mubr.msk.f32.mxu1 %vm5289_vm13, %v5287_v3  ;;  %v6518_v19 = vadd.f32 %v2665_v18, %v2285_v14  ;;  %vm1522_vm0 = vcmp.eq.s32.totalorder %v5660_v4, %v1334_v49 }
 0x1a4   : > { %v2287_v20 = vpop.f32.mrf.mxu0  ;;  %v2667_v21 = vpop.f32.mrf.mxu1 }
 0x1a5   : > { %v1343_v21 = vpop.permute.xlu1 %1342 }
 0x1a6   : > { %v2290_v22 = vpop.f32.mrf.mxu0  ;;  %4786 = vmatmul.mubr.msk.f32.gmra.mxu0 %vm1506_vm1, %v5288_v12  ;;  %5094 = vmatmul.mubr.msk.f32.gmra.mxu1 %vm1508_vm2, %v5288_v12  ;;  %v2670_v26 = vpop.f32.mrf.mxu1  ;;  %vm1521_vm1 = vcmp.eq.s32.totalorder %v5649_v0, %v1334_v49  ;;  %vm1523_vm2 = vcmp.eq.s32.totalorder %v5668_v8, %v1334_v49 }
 0x1a7   : > { %4787 = vmatprep.mubr.msk.f32.mxu0 %vm1510_vm3, %v5288_v12  ;;  %5096 = vmatprep.mubr.msk.f32.mxu1 %vm5289_vm13, %v5287_v3  ;;  %v6528_v27 = vadd.f32 %v2670_v26, %v2290_v22  ;;  %vm1525_vm3 = vcmp.eq.s32.totalorder %v5660_v4, %v1337_v58 }
 0x1a8   : > { %v2292_v5 = vpop.f32.mrf.mxu0  ;;  %v2672_v28 = vpop.f32.mrf.mxu1 }
 0x1a9   : > { %v1349_v40 = vpop.permute.xlu1 %1348 }
 0x1aa   : > { %v2295_v31 = vpop.f32.mrf.mxu0  ;;  %4788 = vmatmul.mubr.msk.f32.gmra.mxu0 %vm1509_vm4, %v5288_v12  ;;  %5097 = vmatmul.mubr.msk.f32.gmra.mxu1 %vm1511_vm5, %v5288_v12  ;;  %v2675_v33 = vpop.f32.mrf.mxu1  ;;  %vm1524_vm4 = vcmp.eq.s32.totalorder %v5649_v0, %v1337_v58  ;;  %vm1526_vm5 = vcmp.eq.s32.totalorder %v5668_v8, %v1337_v58 }
 0x1ab   : > { %4789 = vmatprep.mubr.msk.f32.mxu0 %vm1513_vm6, %v5288_v12  ;;  %5099 = vmatprep.mubr.msk.f32.mxu1 %vm5289_vm13, %v5287_v3  ;;  %v6538_v34 = vadd.f32 %v2675_v33, %v2295_v31  ;;  %vm1528_vm6 = vcmp.eq.s32.totalorder %v5660_v4, %v1340_v11  ;;  %v1346_v31 = vpop.permute.xlu0 %1345 }
 0x1ac   : > { %v2297_v36 = vpop.f32.mrf.mxu0  ;;  %v2677_v38 = vpop.f32.mrf.mxu1 }
 0x1ae   : > { %v2300_v39 = vpop.f32.mrf.mxu0  ;;  %4790 = vmatmul.mubr.msk.f32.gmra.mxu0 %vm1512_vm7, %v5288_v12  ;;  %5100 = vmatmul.mubr.msk.f32.gmra.mxu1 %vm1514_vm8, %v5288_v12  ;;  %v2680_v42 = vpop.f32.mrf.mxu1  ;;  %vm1527_vm7 = vcmp.eq.s32.totalorder %v5649_v0, %v1340_v11  ;;  %vm1529_vm8 = vcmp.eq.s32.totalorder %v5668_v8, %v1340_v11 }
 0x1af   : > { %4791 = vmatprep.mubr.msk.f32.mxu0 %vm1516_vm9, %v5288_v12  ;;  %5102 = vmatprep.mubr.msk.f32.mxu1 %vm5289_vm13, %v5287_v3  ;;  %v6548_v43 = vadd.f32 %v2680_v42, %v2300_v39  ;;  %vm1531_vm9 = vcmp.eq.s32.totalorder %v5660_v4, %v1343_v21 }
 0x1b0   : > { %v2302_v45 = vpop.f32.mrf.mxu0  ;;  %v2682_v46 = vpop.f32.mrf.mxu1 }
 0x1b2   : > { %v2305_v48 = vpop.f32.mrf.mxu0  ;;  %4792 = vmatmul.mubr.msk.f32.gmra.mxu0 %vm1515_vm10, %v5288_v12  ;;  %5103 = vmatmul.mubr.msk.f32.gmra.mxu1 %vm1517_vm11, %v5288_v12  ;;  %v2685_v50 = vpop.f32.mrf.mxu1  ;;  %vm1530_vm10 = vcmp.eq.s32.totalorder %v5649_v0, %v1343_v21  ;;  %vm1532_vm11 = vcmp.eq.s32.totalorder %v5668_v8, %v1343_v21 }
 0x1b3   : > { %4793 = vmatprep.mubr.msk.f32.mxu0 %vm1519_vm12, %v5288_v12  ;;  %5105 = vmatprep.mubr.msk.f32.mxu1 %vm5289_vm13, %v5287_v3  ;;  %v6558_v52 = vadd.f32 %v2685_v50, %v2305_v48  ;;  %vm1534_vm12 = vcmp.eq.s32.totalorder %v5660_v4, %v1346_v31  ;;  %v1352_v50 = vpop.permute.xlu0 %1351 }
 0x1b4   : > { %v2307_v54 = vpop.f32.mrf.mxu0  ;;  %v2687_v55 = vpop.f32.mrf.mxu1 }
 0x1b6   : > { %v2310_v56 = vpop.f32.mrf.mxu0  ;;  %4794 = vmatmul.mubr.msk.f32.gmra.mxu0 %vm1518_vm14, %v5288_v12  ;;  %5106 = vmatmul.mubr.msk.f32.gmra.mxu1 %vm1520_vm15, %v5288_v12  ;;  %v2690_v61 = vpop.f32.mrf.mxu1  ;;  %vm1533_vm14 = vcmp.eq.s32.totalorder %v5649_v0, %v1346_v31  ;;  %vm1535_vm15 = vcmp.eq.s32.totalorder %v5668_v8, %v1346_v31 }
 0x1b7   : > { %4795 = vmatprep.mubr.msk.f32.mxu0 %vm1522_vm0, %v5288_v12  ;;  %5108 = vmatprep.mubr.msk.f32.mxu1 %vm5289_vm13, %v5287_v3  ;;  %v6568_v62 = vadd.f32 %v2690_v61, %v2310_v56  ;;  %vm1537_vm0 = vcmp.eq.s32.totalorder %v5660_v4, %v1349_v40 }
 0x1b8   : > { %v2312_v1 = vpop.f32.mrf.mxu0  ;;  %v2692_v2 = vpop.f32.mrf.mxu1 }
 0x1b9   : > { %v1355_v1 = vpop.permute.xlu1 %1354 }
 0x1ba   : > { %v2315_v6 = vpop.f32.mrf.mxu0  ;;  %4796 = vmatmul.mubr.msk.f32.gmra.mxu0 %vm1521_vm1, %v5288_v12  ;;  %5109 = vmatmul.mubr.msk.f32.gmra.mxu1 %vm1523_vm2, %v5288_v12  ;;  %v2695_v13 = vpop.f32.mrf.mxu1  ;;  %vm1536_vm1 = vcmp.eq.s32.totalorder %v5649_v0, %v1349_v40  ;;  %vm1538_vm2 = vcmp.eq.s32.totalorder %v5668_v8, %v1349_v40 }
 0x1bb   : > { %4797 = vmatprep.mubr.msk.f32.mxu0 %vm1525_vm3, %v5288_v12  ;;  %5111 = vmatprep.mubr.msk.f32.mxu1 %vm5289_vm13, %v5287_v3  ;;  %v6578_v14 = vadd.f32 %v2695_v13, %v2315_v6  ;;  %vm1540_vm3 = vcmp.eq.s32.totalorder %v5660_v4, %v1352_v50 }
 0x1bc   : > { %v2317_v15 = vpop.f32.mrf.mxu0  ;;  %v2697_v18 = vpop.f32.mrf.mxu1 }
 0x1bd   : > { %v1358_v18 = vpop.permute.xlu0 %1357 }
 0x1be   : > { %v2320_v20 = vpop.f32.mrf.mxu0  ;;  %4798 = vmatmul.mubr.msk.f32.gmra.mxu0 %vm1524_vm4, %v5288_v12  ;;  %5112 = vmatmul.mubr.msk.f32.gmra.mxu1 %vm1526_vm5, %v5288_v12  ;;  %v2700_v22 = vpop.f32.mrf.mxu1  ;;  %vm1539_vm4 = vcmp.eq.s32.totalorder %v5649_v0, %v1352_v50  ;;  %vm1541_vm5 = vcmp.eq.s32.totalorder %v5668_v8, %v1352_v50 }
 0x1bf   : > { %4799 = vmatprep.mubr.msk.f32.mxu0 %vm1528_vm6, %v5288_v12  ;;  %5114 = vmatprep.mubr.msk.f32.mxu1 %vm5289_vm13, %v5287_v3  ;;  %v6588_v25 = vadd.f32 %v2700_v22, %v2320_v20  ;;  %vm1543_vm6 = vcmp.eq.s32.totalorder %v5660_v4, %v1355_v1 }
 0x1c0   : > { %v2322_v26 = vpop.f32.mrf.mxu0  ;;  %v2702_v5 = vpop.f32.mrf.mxu1 }
 0x1c1   : > { %v1364_v40 = vpop.permute.xlu0 %1363 }
 0x1c2   : > { %v2325_v28 = vpop.f32.mrf.mxu0  ;;  %4800 = vmatmul.mubr.msk.f32.gmra.mxu0 %vm1527_vm7, %v5288_v12  ;;  %5115 = vmatmul.mubr.msk.f32.gmra.mxu1 %vm1529_vm8, %v5288_v12  ;;  %v2705_v32 = vpop.f32.mrf.mxu1  ;;  %vm1542_vm7 = vcmp.eq.s32.totalorder %v5649_v0, %v1355_v1  ;;  %vm1544_vm8 = vcmp.eq.s32.totalorder %v5668_v8, %v1355_v1 }
 0x1c3   : > { %4801 = vmatprep.mubr.msk.f32.mxu0 %vm1531_vm9, %v5288_v12  ;;  %5117 = vmatprep.mubr.msk.f32.mxu1 %vm5289_vm13, %v5287_v3  ;;  %v6598_v33 = vadd.f32 %v2705_v32, %v2325_v28  ;;  %vm1546_vm9 = vcmp.eq.s32.totalorder %v5660_v4, %v1358_v18  ;;  %v1361_v28 = vpop.permute.xlu1 %1360 }
 0x1c4   : > { %v2327_v36 = vpop.f32.mrf.mxu0  ;;  %v2707_v38 = vpop.f32.mrf.mxu1 }
 0x1c6   : > { %v2330_v39 = vpop.f32.mrf.mxu0  ;;  %4802 = vmatmul.mubr.msk.f32.gmra.mxu0 %vm1530_vm10, %v5288_v12  ;;  %5118 = vmatmul.mubr.msk.f32.gmra.mxu1 %vm1532_vm11, %v5288_v12  ;;  %v2710_v42 = vpop.f32.mrf.mxu1  ;;  %vm1545_vm10 = vcmp.eq.s32.totalorder %v5649_v0, %v1358_v18  ;;  %vm1547_vm11 = vcmp.eq.s32.totalorder %v5668_v8, %v1358_v18 }
 0x1c7   : > { %4803 = vmatprep.mubr.msk.f32.mxu0 %vm1534_vm12, %v5288_v12  ;;  %5120 = vmatprep.mubr.msk.f32.mxu1 %vm5289_vm13, %v5287_v3  ;;  %v6608_v45 = vadd.f32 %v2710_v42, %v2330_v39  ;;  %vm1549_vm12 = vcmp.eq.s32.totalorder %v5660_v4, %v1361_v28 }
 0x1c8   : > { %v2332_v46 = vpop.f32.mrf.mxu0  ;;  %v2712_v48 = vpop.f32.mrf.mxu1 }
 0x1ca   : > { %v2335_v49 = vpop.f32.mrf.mxu0  ;;  %4804 = vmatmul.mubr.msk.f32.gmra.mxu0 %vm1533_vm14, %v5288_v12  ;;  %5121 = vmatmul.mubr.msk.f32.gmra.mxu1 %vm1535_vm15, %v5288_v12  ;;  %v2715_v54 = vpop.f32.mrf.mxu1  ;;  %vm1548_vm14 = vcmp.eq.s32.totalorder %v5649_v0, %v1361_v28  ;;  %vm1550_vm15 = vcmp.eq.s32.totalorder %v5668_v8, %v1361_v28 }
 0x1cb   : > { %4805 = vmatprep.mubr.msk.f32.mxu0 %vm1537_vm0, %v5288_v12  ;;  %5123 = vmatprep.mubr.msk.f32.mxu1 %vm5289_vm13, %v5287_v3  ;;  %v6618_v55 = vadd.f32 %v2715_v54, %v2335_v49  ;;  %vm1552_vm0 = vcmp.eq.s32.totalorder %v5660_v4, %v1364_v40  ;;  %v1367_v54 = vpop.permute.xlu1 %1366 }
 0x1cc   : > { %v2337_v56 = vpop.f32.mrf.mxu0  ;;  %v2717_v58 = vpop.f32.mrf.mxu1 }
 0x1ce   : > { %v2340_v61 = vpop.f32.mrf.mxu0  ;;  %4806 = vmatmul.mubr.msk.f32.gmra.mxu0 %vm1536_vm1, %v5288_v12  ;;  %5124 = vmatmul.mubr.msk.f32.gmra.mxu1 %vm1538_vm2, %v5288_v12  ;;  %v2720_v2 = vpop.f32.mrf.mxu1  ;;  %vm1551_vm1 = vcmp.eq.s32.totalorder %v5649_v0, %v1364_v40  ;;  %vm1553_vm2 = vcmp.eq.s32.totalorder %v5668_v8, %v1364_v40 }
 0x1cf   : > { %4807 = vmatprep.mubr.msk.f32.mxu0 %vm1540_vm3, %v5288_v12  ;;  %5126 = vmatprep.mubr.msk.f32.mxu1 %vm5289_vm13, %v5287_v3  ;;  %v6628_v6 = vadd.f32 %v2720_v2, %v2340_v61  ;;  %vm1555_vm3 = vcmp.eq.s32.totalorder %v5660_v4, %v1367_v54 }
 0x1d0   : > { %v2342_v11 = vpop.f32.mrf.mxu0  ;;  %v2722_v13 = vpop.f32.mrf.mxu1 }
 0x1d1   : > { %v1370_v11 = vpop.permute.xlu0 %1369 }
 0x1d2   : > { %v2345_v15 = vpop.f32.mrf.mxu0  ;;  %4808 = vmatmul.mubr.msk.f32.gmra.mxu0 %vm1539_vm4, %v5288_v12  ;;  %5127 = vmatmul.mubr.msk.f32.gmra.mxu1 %vm1541_vm5, %v5288_v12  ;;  %v2725_v20 = vpop.f32.mrf.mxu1  ;;  %vm1554_vm4 = vcmp.eq.s32.totalorder %v5649_v0, %v1367_v54  ;;  %vm1556_vm5 = vcmp.eq.s32.totalorder %v5668_v8, %v1367_v54 }
 0x1d3   : > { %4809 = vmatprep.mubr.msk.f32.mxu0 %vm1543_vm6, %v5288_v12  ;;  %5129 = vmatprep.mubr.msk.f32.mxu1 %vm5289_vm13, %v5287_v3  ;;  %v6638_v21 = vadd.f32 %v2725_v20, %v2345_v15  ;;  %vm1558_vm6 = vcmp.eq.s32.totalorder %v5660_v4, %v1370_v11 }
 0x1d4   : > { %v2347_v22 = vpop.f32.mrf.mxu0  ;;  %v2727_v26 = vpop.f32.mrf.mxu1 }
 0x1d5   : > { %v1373_v26 = vpop.permute.xlu1 %1372 }
 0x1d6   : > { %v2350_v5 = vpop.f32.mrf.mxu0  ;;  %4810 = vmatmul.mubr.msk.f32.gmra.mxu0 %vm1542_vm7, %v5288_v12  ;;  %5130 = vmatmul.mubr.msk.f32.gmra.mxu1 %vm1544_vm8, %v5288_v12  ;;  %v2730_v31 = vpop.f32.mrf.mxu1  ;;  %vm1557_vm7 = vcmp.eq.s32.totalorder %v5649_v0, %v1370_v11  ;;  %vm1559_vm8 = vcmp.eq.s32.totalorder %v5668_v8, %v1370_v11 }
 0x1d7   : > { %4811 = vmatprep.mubr.msk.f32.mxu0 %vm1546_vm9, %v5288_v12  ;;  %5132 = vmatprep.mubr.msk.f32.mxu1 %vm5289_vm13, %v5287_v3  ;;  %v6648_v32 = vadd.f32 %v2730_v31, %v2350_v5  ;;  %vm1561_vm9 = vcmp.eq.s32.totalorder %v5660_v4, %v1373_v26 }
 0x1d8   : > { %v2352_v36 = vpop.f32.mrf.mxu0  ;;  %v2732_v38 = vpop.f32.mrf.mxu1 }
 0x1d9   : > { %v1379_v54 = vpop.permute.xlu1 %1378 }
 0x1da   : > { %v2355_v39 = vpop.f32.mrf.mxu0  ;;  %4812 = vmatmul.mubr.msk.f32.gmra.mxu0 %vm1545_vm10, %v5288_v12  ;;  %5133 = vmatmul.mubr.msk.f32.gmra.mxu1 %vm1547_vm11, %v5288_v12  ;;  %v2735_v42 = vpop.f32.mrf.mxu1  ;;  %vm1560_vm10 = vcmp.eq.s32.totalorder %v5649_v0, %v1373_v26  ;;  %vm1562_vm11 = vcmp.eq.s32.totalorder %v5668_v8, %v1373_v26 }
 0x1db   : > { %4813 = vmatprep.mubr.msk.f32.mxu0 %vm1549_vm12, %v5288_v12  ;;  %5135 = vmatprep.mubr.msk.f32.mxu1 %vm5289_vm13, %v5287_v3  ;;  %v6658_v46 = vadd.f32 %v2735_v42, %v2355_v39  ;;  %v1376_v39 = vpop.permute.xlu0 %1375 }
 0x1dc   : > { %v2357_v48 = vpop.f32.mrf.mxu0  ;;  %v2737_v49 = vpop.f32.mrf.mxu1  ;;  %vm1564_vm12 = vcmp.eq.s32.totalorder %v5660_v4, %v1376_v39 }
 0x1de   : > { %v2360_v50 = vpop.f32.mrf.mxu0  ;;  %4814 = vmatmul.mubr.msk.f32.gmra.mxu0 %vm1548_vm14, %v5288_v12  ;;  %5136 = vmatmul.mubr.msk.f32.gmra.mxu1 %vm1550_vm15, %v5288_v12  ;;  %v2740_v56 = vpop.f32.mrf.mxu1  ;;  %vm1563_vm14 = vcmp.eq.s32.totalorder %v5649_v0, %v1376_v39  ;;  %vm1565_vm15 = vcmp.eq.s32.totalorder %v5668_v8, %v1376_v39 }
 0x1df   : > { %4815 = vmatprep.mubr.msk.f32.mxu0 %vm1552_vm0, %v5288_v12  ;;  %5138 = vmatprep.mubr.msk.f32.mxu1 %vm5289_vm13, %v5287_v3  ;;  %v6668_v58 = vadd.f32 %v2740_v56, %v2360_v50  ;;  %vm1567_vm0 = vcmp.eq.s32.totalorder %v5660_v4, %v1379_v54 }
 0x1e0   : > { %v2362_v61 = vpop.f32.mrf.mxu0  ;;  %v2742_v1 = vpop.f32.mrf.mxu1 }
 0x1e2   : > { %v2365_v2 = vpop.f32.mrf.mxu0  ;;  %4816 = vmatmul.mubr.msk.f32.gmra.mxu0 %vm1551_vm1, %v5288_v12  ;;  %5139 = vmatmul.mubr.msk.f32.gmra.mxu1 %vm1553_vm2, %v5288_v12  ;;  %v2745_v13 = vpop.f32.mrf.mxu1  ;;  %vm1566_vm1 = vcmp.eq.s32.totalorder %v5649_v0, %v1379_v54  ;;  %vm1568_vm2 = vcmp.eq.s32.totalorder %v5668_v8, %v1379_v54 }
 0x1e3   : > { %4817 = vmatprep.mubr.msk.f32.mxu0 %vm1555_vm3, %v5288_v12  ;;  %5141 = vmatprep.mubr.msk.f32.mxu1 %vm5289_vm13, %v5287_v3  ;;  %v6678_v15 = vadd.f32 %v2745_v13, %v2365_v2  ;;  %v1382_v13 = vpop.permute.xlu0 %1381 }
 0x1e4   : > { %v2367_v18 = vpop.f32.mrf.mxu0  ;;  %v2747_v20 = vpop.f32.mrf.mxu1  ;;  %vm1570_vm3 = vcmp.eq.s32.totalorder %v5660_v4, %v1382_v13 }
 0x1e6   : > { %v2370_v22 = vpop.f32.mrf.mxu0  ;;  %4818 = vmatmul.mubr.msk.f32.gmra.mxu0 %vm1554_vm4, %v5288_v12  ;;  %5142 = vmatmul.mubr.msk.f32.gmra.mxu1 %vm1556_vm5, %v5288_v12  ;;  %v2750_v5 = vpop.f32.mrf.mxu1  ;;  %vm1569_vm4 = vcmp.eq.s32.totalorder %v5649_v0, %v1382_v13  ;;  %vm1571_vm5 = vcmp.eq.s32.totalorder %v5668_v8, %v1382_v13 }
 0x1e7   : > { %4819 = vmatprep.mubr.msk.f32.mxu0 %vm1558_vm6, %v5288_v12  ;;  %5144 = vmatprep.mubr.msk.f32.mxu1 %vm5289_vm13, %v5287_v3  ;;  %v6688_v28 = vadd.f32 %v2750_v5, %v2370_v22 }
 0x1e8   : > { %v2372_v31 = vpop.f32.mrf.mxu0  ;;  %v2752_v36 = vpop.f32.mrf.mxu1 }
 0x1e9   : > { %v1385_v31 = vpop.permute.xlu1 %1384 }
 0x1ea   : > { %v2375_v38 = vpop.f32.mrf.mxu0  ;;  %4820 = vmatmul.mubr.msk.f32.gmra.mxu0 %vm1557_vm7, %v5288_v12  ;;  %5145 = vmatmul.mubr.msk.f32.gmra.mxu1 %vm1559_vm8, %v5288_v12  ;;  %v2755_v40 = vpop.f32.mrf.mxu1  ;;  %vm1573_vm6 = vcmp.eq.s32.totalorder %v5660_v4, %v1385_v31  ;;  %vm1572_vm7 = vcmp.eq.s32.totalorder %v5649_v0, %v1385_v31  ;;  %vm1574_vm8 = vcmp.eq.s32.totalorder %v5668_v8, %v1385_v31 }
 0x1eb   : > { %4821 = vmatprep.mubr.msk.f32.mxu0 %vm1561_vm9, %v5288_v12  ;;  %5147 = vmatprep.mubr.msk.f32.mxu1 %vm5289_vm13, %v5287_v3  ;;  %v6698_v42 = vadd.f32 %v2755_v40, %v2375_v38 }
 0x1ec   : > { %v2377_v48 = vpop.f32.mrf.mxu0  ;;  %v2757_v49 = vpop.f32.mrf.mxu1 }
 0x1ed   : > { %v1388_v49 = vpop.permute.xlu0 %1387 }
 0x1ee   : > { %v2380_v50 = vpop.f32.mrf.mxu0  ;;  %4822 = vmatmul.mubr.msk.f32.gmra.mxu0 %vm1560_vm10, %v5288_v12  ;;  %5148 = vmatmul.mubr.msk.f32.gmra.mxu1 %vm1562_vm11, %v5288_v12  ;;  %v2760_v56 = vpop.f32.mrf.mxu1  ;;  %vm1576_vm9 = vcmp.eq.s32.totalorder %v5660_v4, %v1388_v49  ;;  %vm1575_vm10 = vcmp.eq.s32.totalorder %v5649_v0, %v1388_v49  ;;  %vm1577_vm11 = vcmp.eq.s32.totalorder %v5668_v8, %v1388_v49 }
 0x1ef   : > { %4823 = vmatprep.mubr.msk.f32.mxu0 %vm1564_vm12, %v5288_v12  ;;  %5150 = vmatprep.mubr.msk.f32.mxu1 %vm5289_vm13, %v5287_v3  ;;  %v6708_v61 = vadd.f32 %v2760_v56, %v2380_v50 }
 0x1f0   : > { %v2382_v1 = vpop.f32.mrf.mxu0  ;;  %v2762_v2 = vpop.f32.mrf.mxu1 }
 0x1f1   : > { %v1394_v31 = vpop.permute.xlu0 %1393 }
 0x1f2   : > { %v2385_v11 = vpop.f32.mrf.mxu0  ;;  %4824 = vmatmul.mubr.msk.f32.gmra.mxu0 %vm1563_vm14, %v5288_v12  ;;  %5151 = vmatmul.mubr.msk.f32.gmra.mxu1 %vm1565_vm15, %v5288_v12  ;;  %v2765_v18 = vpop.f32.mrf.mxu1 }
 0x1f3   : > { %4825 = vmatprep.mubr.msk.f32.mxu0 %vm1567_vm0, %v5288_v12  ;;  %5153 = vmatprep.mubr.msk.f32.mxu1 %vm5289_vm13, %v5287_v3  ;;  %v6718_v20 = vadd.f32 %v2765_v18, %v2385_v11  ;;  %v1391_v11 = vpop.permute.xlu1 %1390  ;;  %vm1582_vm0 = vcmp.eq.s32.totalorder %v5660_v4, %v1394_v31 }
 0x1f4   : > { %v2387_v22 = vpop.f32.mrf.mxu0  ;;  %v2767_v26 = vpop.f32.mrf.mxu1  ;;  %vm1579_vm12 = vcmp.eq.s32.totalorder %v5660_v4, %v1391_v11  ;;  %vm1578_vm14 = vcmp.eq.s32.totalorder %v5649_v0, %v1391_v11  ;;  %vm1580_vm15 = vcmp.eq.s32.totalorder %v5668_v8, %v1391_v11 }
 0x1f6   : > { %v2390_v5 = vpop.f32.mrf.mxu0  ;;  %4826 = vmatmul.mubr.msk.f32.gmra.mxu0 %vm1566_vm1, %v5288_v12  ;;  %5154 = vmatmul.mubr.msk.f32.gmra.mxu1 %vm1568_vm2, %v5288_v12  ;;  %v2770_v36 = vpop.f32.mrf.mxu1  ;;  %vm1581_vm1 = vcmp.eq.s32.totalorder %v5649_v0, %v1394_v31  ;;  %vm1583_vm2 = vcmp.eq.s32.totalorder %v5668_v8, %v1394_v31 }
 0x1f7   : > { %4827 = vmatprep.mubr.msk.f32.mxu0 %vm1570_vm3, %v5288_v12  ;;  %5156 = vmatprep.mubr.msk.f32.mxu1 %vm5289_vm13, %v5287_v3  ;;  %v6728_v38 = vadd.f32 %v2770_v36, %v2390_v5 }
 0x1f8   : > { %v2392_v39 = vpop.f32.mrf.mxu0  ;;  %v2772_v40 = vpop.f32.mrf.mxu1 }
 0x1fa   : > { %v2395_v48 = vpop.f32.mrf.mxu0  ;;  %4828 = vmatmul.mubr.msk.f32.gmra.mxu0 %vm1569_vm4, %v5288_v12  ;;  %5157 = vmatmul.mubr.msk.f32.gmra.mxu1 %vm1571_vm5, %v5288_v12  ;;  %v2775_v50 = vpop.f32.mrf.mxu1 }
 0x1fb   : > { %4829 = vmatprep.mubr.msk.f32.mxu0 %vm1573_vm6, %v5288_v12  ;;  %5159 = vmatprep.mubr.msk.f32.mxu1 %vm5289_vm13, %v5287_v3  ;;  %v6738_v54 = vadd.f32 %v2775_v50, %v2395_v48  ;;  %v1397_v50 = vpop.permute.xlu1 %1396 }
 0x1fc   : > { %v2397_v56 = vpop.f32.mrf.mxu0  ;;  %v2777_v1 = vpop.f32.mrf.mxu1  ;;  %vm1585_vm3 = vcmp.eq.s32.totalorder %v5660_v4, %v1397_v50  ;;  %vm1584_vm4 = vcmp.eq.s32.totalorder %v5649_v0, %v1397_v50  ;;  %vm1586_vm5 = vcmp.eq.s32.totalorder %v5668_v8, %v1397_v50 }
 0x1fe   : > { %v2400_v2 = vpop.f32.mrf.mxu0  ;;  %4830 = vmatmul.mubr.msk.f32.gmra.mxu0 %vm1572_vm7, %v5288_v12  ;;  %5160 = vmatmul.mubr.msk.f32.gmra.mxu1 %vm1574_vm8, %v5288_v12  ;;  %v2780_v13 = vpop.f32.mrf.mxu1 }
 0x1ff   : > { %4831 = vmatprep.mubr.msk.f32.mxu0 %vm1576_vm9, %v5288_v12  ;;  %5162 = vmatprep.mubr.msk.f32.mxu1 %vm5289_vm13, %v5287_v3  ;;  %v6748_v18 = vadd.f32 %v2780_v13, %v2400_v2 }
 0x200   : > { %v2402_v22 = vpop.f32.mrf.mxu0  ;;  %v2782_v26 = vpop.f32.mrf.mxu1 }
 0x201   : > { %v1400_v22 = vpop.permute.xlu0 %1399 }
 0x202   : > { %v2405_v5 = vpop.f32.mrf.mxu0  ;;  %4832 = vmatmul.mubr.msk.f32.gmra.mxu0 %vm1575_vm10, %v5288_v12  ;;  %5163 = vmatmul.mubr.msk.f32.gmra.mxu1 %vm1577_vm11, %v5288_v12  ;;  %v2785_v36 = vpop.f32.mrf.mxu1  ;;  %vm1588_vm6 = vcmp.eq.s32.totalorder %v5660_v4, %v1400_v22  ;;  %vm1587_vm7 = vcmp.eq.s32.totalorder %v5649_v0, %v1400_v22  ;;  %vm1589_vm8 = vcmp.eq.s32.totalorder %v5668_v8, %v1400_v22 }
 0x203   : > { %4833 = vmatprep.mubr.msk.f32.mxu0 %vm1579_vm12, %v5288_v12  ;;  %5165 = vmatprep.mubr.msk.f32.mxu1 %vm5289_vm13, %v5287_v3  ;;  %v6758_v39 = vadd.f32 %v2785_v36, %v2405_v5 }
 0x204   : > { %v2407_v40 = vpop.f32.mrf.mxu0  ;;  %v2787_v48 = vpop.f32.mrf.mxu1 }
 0x205   : > { %v1403_v48 = vpop.permute.xlu1 %1402 }
 0x206   : > { %v2410_v49 = vpop.f32.mrf.mxu0  ;;  %4834 = vmatmul.mubr.msk.f32.gmra.mxu0 %vm1578_vm14, %v5288_v12  ;;  %5166 = vmatmul.mubr.msk.f32.gmra.mxu1 %vm1580_vm15, %v5288_v12  ;;  %v2790_v56 = vpop.f32.mrf.mxu1  ;;  %vm1591_vm9 = vcmp.eq.s32.totalorder %v5660_v4, %v1403_v48  ;;  %vm1590_vm10 = vcmp.eq.s32.totalorder %v5649_v0, %v1403_v48  ;;  %vm1592_vm11 = vcmp.eq.s32.totalorder %v5668_v8, %v1403_v48 }
 0x207   : > { %4835 = vmatprep.mubr.msk.f32.mxu0 %vm1582_vm0, %v5288_v12  ;;  %5168 = vmatprep.mubr.msk.f32.mxu1 %vm5289_vm13, %v5287_v3  ;;  %v6768_v1 = vadd.f32 %v2790_v56, %v2410_v49 }
 0x208   : > { %v2412_v2 = vpop.f32.mrf.mxu0  ;;  %v2792_v11 = vpop.f32.mrf.mxu1 }
 0x20a   : > { %v2415_v13 = vpop.f32.mrf.mxu0  ;;  %4836 = vmatmul.mubr.msk.f32.gmra.mxu0 %vm1581_vm1, %v5288_v12  ;;  %5169 = vmatmul.mubr.msk.f32.gmra.mxu1 %vm1583_vm2, %v5288_v12  ;;  %v2795_v26 = vpop.f32.mrf.mxu1 }
 0x20b   : > { %4837 = vmatprep.mubr.msk.f32.mxu0 %vm1585_vm3, %v5288_v12  ;;  %5171 = vmatprep.mubr.msk.f32.mxu1 %vm5289_vm13, %v5287_v3  ;;  %v6778_v5 = vadd.f32 %v2795_v26, %v2415_v13  ;;  %v1406_v13 = vpop.permute.xlu0 %1405 }
 0x20c   : > { %v2417_v36 = vpop.f32.mrf.mxu0  ;;  %v2797_v31 = vpop.f32.mrf.mxu1  ;;  %vm1594_vm12 = vcmp.eq.s32.totalorder %v5660_v4, %v1406_v13  ;;  %vm1593_vm14 = vcmp.eq.s32.totalorder %v5649_v0, %v1406_v13  ;;  %vm1595_vm15 = vcmp.eq.s32.totalorder %v5668_v8, %v1406_v13 }
 0x20e   : > { %v2420_v40 = vpop.f32.mrf.mxu0  ;;  %4838 = vmatmul.mubr.msk.f32.gmra.mxu0 %vm1584_vm4, %v5288_v12  ;;  %5172 = vmatmul.mubr.msk.f32.gmra.mxu1 %vm1586_vm5, %v5288_v12  ;;  %v2800_v49 = vpop.f32.mrf.mxu1 }
 0x20f   : > { %4839 = vmatprep.mubr.msk.f32.mxu0 %vm1588_vm6, %v5288_v12  ;;  %5174 = vmatprep.mubr.msk.f32.mxu1 %vm5289_vm13, %v5287_v3  ;;  %v6788_v56 = vadd.f32 %v2800_v49, %v2420_v40  ;;  %v1409_v49 = vpop.permute.xlu1 %1408 }
 0x210   : > { %v2422_v2 = vpop.f32.mrf.mxu0  ;;  %v2802_v50 = vpop.f32.mrf.mxu1  ;;  %vm1597_vm0 = vcmp.eq.s32.totalorder %v5660_v4, %v1409_v49  ;;  %vm1596_vm1 = vcmp.eq.s32.totalorder %v5649_v0, %v1409_v49  ;;  %vm1598_vm2 = vcmp.eq.s32.totalorder %v5668_v8, %v1409_v49 }
 0x212   : > { %v2425_v11 = vpop.f32.mrf.mxu0  ;;  %4840 = vmatmul.mubr.msk.f32.gmra.mxu0 %vm1587_vm7, %v5288_v12  ;;  %5175 = vmatmul.mubr.msk.f32.gmra.mxu1 %vm1589_vm8, %v5288_v12  ;;  %v2805_v26 = vpop.f32.mrf.mxu1 }
 0x213   : > { %4841 = vmatprep.mubr.msk.f32.mxu0 %vm1591_vm9, %v5288_v12  ;;  %5177 = vmatprep.mubr.msk.f32.mxu1 %vm5289_vm13, %v5287_v3  ;;  %v6798_v36 = vadd.f32 %v2805_v26, %v2425_v11 }
 0x214   : > { %v2427_v31 = vpop.f32.mrf.mxu0  ;;  %v2807_v22 = vpop.f32.mrf.mxu1 }
 0x215   : > { %7322 = vst [vmem:[#allocation2_spill] sm:$0xff] %v6798_v36  ;;  %v1412_v31 = vpop.permute.xlu0 %1411 }
 0x216   : > { %v2430_v40 = vpop.f32.mrf.mxu0  ;;  %4842 = vmatmul.mubr.msk.f32.gmra.mxu0 %vm1590_vm10, %v5288_v12  ;;  %5178 = vmatmul.mubr.msk.f32.gmra.mxu1 %vm1592_vm11, %v5288_v12  ;;  %v2810_v2 = vpop.f32.mrf.mxu1  ;;  %vm1600_vm3 = vcmp.eq.s32.totalorder %v5660_v4, %v1412_v31  ;;  %vm1599_vm4 = vcmp.eq.s32.totalorder %v5649_v0, %v1412_v31  ;;  %vm1601_vm5 = vcmp.eq.s32.totalorder %v5668_v8, %v1412_v31 }
 0x217   : > { %4843 = vmatprep.mubr.msk.f32.mxu0 %vm1594_vm12, %v5288_v12  ;;  %5180 = vmatprep.mubr.msk.f32.mxu1 %vm5289_vm13, %v5287_v3  ;;  %v6808_v50 = vadd.f32 %v2810_v2, %v2430_v40 }
 0x218   : > { %v2432_v11 = vpop.f32.mrf.mxu0  ;;  %v2812_v48 = vpop.f32.mrf.mxu1 }
 0x219   : > { %7323 = vst [vmem:[#allocation3_spill] sm:$0xff] %v6808_v50  ;;  %v1415_v48 = vpop.permute.xlu1 %1414 }
 0x21a   : > { %v2435_v26 = vpop.f32.mrf.mxu0  ;;  %4844 = vmatmul.mubr.msk.f32.gmra.mxu0 %vm1593_vm14, %v5288_v12  ;;  %5181 = vmatmul.mubr.msk.f32.gmra.mxu1 %vm1595_vm15, %v5288_v12  ;;  %v2815_v22 = vpop.f32.mrf.mxu1  ;;  %vm1603_vm6 = vcmp.eq.s32.totalorder %v5660_v4, %v1415_v48  ;;  %vm1602_vm7 = vcmp.eq.s32.totalorder %v5649_v0, %v1415_v48  ;;  %vm1604_vm8 = vcmp.eq.s32.totalorder %v5668_v8, %v1415_v48 }
 0x21b   : > { %4845 = vmatprep.mubr.msk.f32.mxu0 %vm1597_vm0, %v5288_v12  ;;  %5183 = vmatprep.mubr.msk.f32.mxu1 %vm5289_vm13, %v5287_v3  ;;  %v6818_v40 = vadd.f32 %v2815_v22, %v2435_v26 }
 0x21c   : > { %v2437_v2 = vpop.f32.mrf.mxu0  ;;  %v2817_v13 = vpop.f32.mrf.mxu1 }
 0x21d   : > { %7324 = vst [vmem:[#allocation4_spill] sm:$0xff] %v6818_v40  ;;  %v1418_v13 = vpop.permute.xlu0 %1417 }
 0x21e   : > { %v2440_v11 = vpop.f32.mrf.mxu0  ;;  %4846 = vmatmul.mubr.msk.f32.gmra.mxu0 %vm1596_vm1, %v5288_v12  ;;  %5184 = vmatmul.mubr.msk.f32.gmra.mxu1 %vm1598_vm2, %v5288_v12  ;;  %v2820_v50 = vpop.f32.mrf.mxu1  ;;  %vm1606_vm9 = vcmp.eq.s32.totalorder %v5660_v4, %v1418_v13  ;;  %vm1605_vm10 = vcmp.eq.s32.totalorder %v5649_v0, %v1418_v13  ;;  %vm1607_vm11 = vcmp.eq.s32.totalorder %v5668_v8, %v1418_v13 }
 0x21f   : > { %4847 = vmatprep.mubr.msk.f32.mxu0 %vm1600_vm3, %v5288_v12  ;;  %5186 = vmatprep.mubr.msk.f32.mxu1 %vm5289_vm13, %v5287_v3  ;;  %v6828_v26 = vadd.f32 %v2820_v50, %v2440_v11 }
 0x220   : > { %v2442_v22 = vpop.f32.mrf.mxu0  ;;  %v2822_v49 = vpop.f32.mrf.mxu1 }
 0x221   : > { %7325 = vst [vmem:[#allocation5_spill] sm:$0xff] %v6828_v26  ;;  %v1421_v49 = vpop.permute.xlu1 %1420 }
 0x222   : > { %v2445_v2 = vpop.f32.mrf.mxu0  ;;  %4848 = vmatmul.mubr.msk.f32.gmra.mxu0 %vm1599_vm4, %v5288_v12  ;;  %5187 = vmatmul.mubr.msk.f32.gmra.mxu1 %vm1601_vm5, %v5288_v12  ;;  %v2825_v40 = vpop.f32.mrf.mxu1  ;;  %vm1609_vm12 = vcmp.eq.s32.totalorder %v5660_v4, %v1421_v49  ;;  %vm1608_vm14 = vcmp.eq.s32.totalorder %v5649_v0, %v1421_v49  ;;  %vm1610_vm15 = vcmp.eq.s32.totalorder %v5668_v8, %v1421_v49 }
 0x223   : > { %4849 = vmatprep.mubr.msk.f32.mxu0 %vm1603_vm6, %v5288_v12  ;;  %5189 = vmatprep.mubr.msk.f32.mxu1 %vm5289_vm13, %v5287_v3  ;;  %v6838_v50 = vadd.f32 %v2825_v40, %v2445_v2 }
 0x224   : > { %v2447_v11 = vpop.f32.mrf.mxu0  ;;  %v2827_v31 = vpop.f32.mrf.mxu1 }
 0x225   : > { %7326 = vst [vmem:[#allocation6_spill] sm:$0xff] %v6838_v50  ;;  %v1424_v31 = vpop.permute.xlu0 %1423 }
 0x226   : > { %v2450_v22 = vpop.f32.mrf.mxu0  ;;  %4850 = vmatmul.mubr.msk.f32.gmra.mxu0 %vm1602_vm7, %v5288_v12  ;;  %5190 = vmatmul.mubr.msk.f32.gmra.mxu1 %vm1604_vm8, %v5288_v12  ;;  %v2830_v26 = vpop.f32.mrf.mxu1  ;;  %vm1612_vm0 = vcmp.eq.s32.totalorder %v5660_v4, %v1424_v31  ;;  %vm1611_vm1 = vcmp.eq.s32.totalorder %v5649_v0, %v1424_v31  ;;  %vm1613_vm2 = vcmp.eq.s32.totalorder %v5668_v8, %v1424_v31 }
 0x227   : > { %4851 = vmatprep.mubr.msk.f32.mxu0 %vm1606_vm9, %v5288_v12  ;;  %5192 = vmatprep.mubr.msk.f32.mxu1 %vm5289_vm13, %v5287_v3  ;;  %v6848_v40 = vadd.f32 %v2830_v26, %v2450_v22 }
 0x228   : > { %v2452_v2 = vpop.f32.mrf.mxu0  ;;  %v2832_v48 = vpop.f32.mrf.mxu1 }
 0x229   : > { %7327 = vst [vmem:[#allocation7_spill] sm:$0xff] %v6848_v40  ;;  %v1427_v48 = vpop.permute.xlu1 %1426 }
 0x22a   : > { %v2455_v11 = vpop.f32.mrf.mxu0  ;;  %4852 = vmatmul.mubr.msk.f32.gmra.mxu0 %vm1605_vm10, %v5288_v12  ;;  %5193 = vmatmul.mubr.msk.f32.gmra.mxu1 %vm1607_vm11, %v5288_v12  ;;  %v2835_v50 = vpop.f32.mrf.mxu1  ;;  %vm1615_vm3 = vcmp.eq.s32.totalorder %v5660_v4, %v1427_v48  ;;  %vm1614_vm4 = vcmp.eq.s32.totalorder %v5649_v0, %v1427_v48  ;;  %vm1616_vm5 = vcmp.eq.s32.totalorder %v5668_v8, %v1427_v48 }
 0x22b   : > { %4853 = vmatprep.mubr.msk.f32.mxu0 %vm1609_vm12, %v5288_v12  ;;  %5195 = vmatprep.mubr.msk.f32.mxu1 %vm5289_vm13, %v5287_v3  ;;  %v6858_v26 = vadd.f32 %v2835_v50, %v2455_v11 }
 0x22c   : > { %v2457_v22 = vpop.f32.mrf.mxu0  ;;  %v2837_v13 = vpop.f32.mrf.mxu1 }
 0x22d   : > { %7328 = vst [vmem:[#allocation8_spill] sm:$0xff] %v6858_v26  ;;  %v1430_v13 = vpop.permute.xlu0 %1429 }
 0x22e   : > { %v2460_v2 = vpop.f32.mrf.mxu0  ;;  %4854 = vmatmul.mubr.msk.f32.gmra.mxu0 %vm1608_vm14, %v5288_v12  ;;  %5196 = vmatmul.mubr.msk.f32.gmra.mxu1 %vm1610_vm15, %v5288_v12  ;;  %v2840_v40 = vpop.f32.mrf.mxu1  ;;  %vm1618_vm6 = vcmp.eq.s32.totalorder %v5660_v4, %v1430_v13  ;;  %vm1617_vm7 = vcmp.eq.s32.totalorder %v5649_v0, %v1430_v13  ;;  %vm1619_vm8 = vcmp.eq.s32.totalorder %v5668_v8, %v1430_v13 }
 0x22f   : > { %4855 = vmatprep.mubr.msk.f32.mxu0 %vm1612_vm0, %v5288_v12  ;;  %5198 = vmatprep.mubr.msk.f32.mxu1 %vm5289_vm13, %v5287_v3  ;;  %v6868_v50 = vadd.f32 %v2840_v40, %v2460_v2 }
 0x230   : > { %v2462_v11 = vpop.f32.mrf.mxu0  ;;  %v2842_v49 = vpop.f32.mrf.mxu1 }
 0x231   : > { %7329 = vst [vmem:[#allocation9_spill] sm:$0xff] %v6868_v50  ;;  %v1433_v49 = vpop.permute.xlu1 %1432 }
 0x232   : > { %v2465_v22 = vpop.f32.mrf.mxu0  ;;  %4856 = vmatmul.mubr.msk.f32.gmra.mxu0 %vm1611_vm1, %v5288_v12  ;;  %5199 = vmatmul.mubr.msk.f32.gmra.mxu1 %vm1613_vm2, %v5288_v12  ;;  %v2845_v26 = vpop.f32.mrf.mxu1  ;;  %vm1621_vm9 = vcmp.eq.s32.totalorder %v5660_v4, %v1433_v49  ;;  %vm1620_vm10 = vcmp.eq.s32.totalorder %v5649_v0, %v1433_v49  ;;  %vm1622_vm11 = vcmp.eq.s32.totalorder %v5668_v8, %v1433_v49 }
 0x233   : > { %4857 = vmatprep.mubr.msk.f32.mxu0 %vm1615_vm3, %v5288_v12  ;;  %5201 = vmatprep.mubr.msk.f32.mxu1 %vm5289_vm13, %v5287_v3  ;;  %v6878_v40 = vadd.f32 %v2845_v26, %v2465_v22 }
 0x234   : > { %v2467_v2 = vpop.f32.mrf.mxu0  ;;  %v2847_v31 = vpop.f32.mrf.mxu1 }
 0x235   : > { %7330 = vst [vmem:[#allocation10_spill] sm:$0xff] %v6878_v40  ;;  %v1436_v31 = vpop.permute.xlu0 %1435 }
 0x236   : > { %v2470_v11 = vpop.f32.mrf.mxu0  ;;  %4858 = vmatmul.mubr.msk.f32.gmra.mxu0 %vm1614_vm4, %v5288_v12  ;;  %5202 = vmatmul.mubr.msk.f32.gmra.mxu1 %vm1616_vm5, %v5288_v12  ;;  %v2850_v50 = vpop.f32.mrf.mxu1  ;;  %vm1624_vm12 = vcmp.eq.s32.totalorder %v5660_v4, %v1436_v31  ;;  %vm1623_vm14 = vcmp.eq.s32.totalorder %v5649_v0, %v1436_v31  ;;  %vm1625_vm15 = vcmp.eq.s32.totalorder %v5668_v8, %v1436_v31 }
 0x237   : > { %4859 = vmatprep.mubr.msk.f32.mxu0 %vm1618_vm6, %v5288_v12  ;;  %5204 = vmatprep.mubr.msk.f32.mxu1 %vm5289_vm13, %v5287_v3  ;;  %v6888_v26 = vadd.f32 %v2850_v50, %v2470_v11 }
 0x238   : > { %v2472_v22 = vpop.f32.mrf.mxu0  ;;  %v2852_v48 = vpop.f32.mrf.mxu1 }
 0x239   : > { %7331 = vst [vmem:[#allocation11_spill] sm:$0xff] %v6888_v26  ;;  %v1439_v48 = vpop.permute.xlu1 %1438 }
 0x23a   : > { %v2475_v2 = vpop.f32.mrf.mxu0  ;;  %4860 = vmatmul.mubr.msk.f32.gmra.mxu0 %vm1617_vm7, %v5288_v12  ;;  %5205 = vmatmul.mubr.msk.f32.gmra.mxu1 %vm1619_vm8, %v5288_v12  ;;  %v2855_v40 = vpop.f32.mrf.mxu1  ;;  %vm1627_vm0 = vcmp.eq.s32.totalorder %v5660_v4, %v1439_v48  ;;  %vm1626_vm1 = vcmp.eq.s32.totalorder %v5649_v0, %v1439_v48  ;;  %vm1628_vm2 = vcmp.eq.s32.totalorder %v5668_v8, %v1439_v48 }
 0x23b   : > { %4861 = vmatprep.mubr.msk.f32.mxu0 %vm1621_vm9, %v5288_v12  ;;  %5207 = vmatprep.mubr.msk.f32.mxu1 %vm5289_vm13, %v5287_v3  ;;  %v6898_v50 = vadd.f32 %v2855_v40, %v2475_v2 }
 0x23c   : > { %v2477_v11 = vpop.f32.mrf.mxu0  ;;  %v2857_v13 = vpop.f32.mrf.mxu1 }
 0x23d   : > { %7332 = vst [vmem:[#allocation12_spill] sm:$0xff] %v6898_v50  ;;  %v1442_v13 = vpop.permute.xlu0 %1441 }
 0x23e   : > { %v2480_v22 = vpop.f32.mrf.mxu0  ;;  %4862 = vmatmul.mubr.msk.f32.gmra.mxu0 %vm1620_vm10, %v5288_v12  ;;  %5208 = vmatmul.mubr.msk.f32.gmra.mxu1 %vm1622_vm11, %v5288_v12  ;;  %v2860_v26 = vpop.f32.mrf.mxu1  ;;  %vm1630_vm3 = vcmp.eq.s32.totalorder %v5660_v4, %v1442_v13  ;;  %vm1629_vm4 = vcmp.eq.s32.totalorder %v5649_v0, %v1442_v13  ;;  %vm1631_vm5 = vcmp.eq.s32.totalorder %v5668_v8, %v1442_v13 }
 0x23f   : > { %4863 = vmatprep.mubr.msk.f32.mxu0 %vm1624_vm12, %v5288_v12  ;;  %5210 = vmatprep.mubr.msk.f32.mxu1 %vm5289_vm13, %v5287_v3  ;;  %v6908_v40 = vadd.f32 %v2860_v26, %v2480_v22  ;;  %vm3750_vm12 = vcmask 261120  }
 0x240   : > { %v2482_v2 = vpop.f32.mrf.mxu0  ;;  %v2862_v49 = vpop.f32.mrf.mxu1 }
 0x241   : > { %7333 = vst [vmem:[#allocation13_spill] sm:$0xff] %v6908_v40  ;;  %v1445_v49 = vpop.permute.xlu1 %1444 }
 0x242   : > { %v2485_v11 = vpop.f32.mrf.mxu0  ;;  %4864 = vmatmul.mubr.msk.f32.gmra.mxu0 %vm1623_vm14, %v5288_v12  ;;  %5211 = vmatmul.mubr.msk.f32.gmra.mxu1 %vm1625_vm15, %v5288_v12  ;;  %v2865_v50 = vpop.f32.mrf.mxu1  ;;  %vm1633_vm6 = vcmp.eq.s32.totalorder %v5660_v4, %v1445_v49  ;;  %vm1632_vm7 = vcmp.eq.s32.totalorder %v5649_v0, %v1445_v49  ;;  %vm1634_vm8 = vcmp.eq.s32.totalorder %v5668_v8, %v1445_v49 }
 0x243   : > { %4865 = vmatprep.mubr.msk.f32.mxu0 %vm1627_vm0, %v5288_v12  ;;  %5213 = vmatprep.mubr.msk.f32.mxu1 %vm5289_vm13, %v5287_v3  ;;  %v6918_v26 = vadd.f32 %v2865_v50, %v2485_v11 }
 0x244   : > { %v2487_v22 = vpop.f32.mrf.mxu0  ;;  %v2867_v31 = vpop.f32.mrf.mxu1 }
 0x245   : > { %7334 = vst [vmem:[#allocation14_spill] sm:$0xff] %v6918_v26  ;;  %v1448_v31 = vpop.permute.xlu0 %1447 }
 0x246   : > { %v2490_v2 = vpop.f32.mrf.mxu0  ;;  %4866 = vmatmul.mubr.msk.f32.gmra.mxu0 %vm1626_vm1, %v5288_v12  ;;  %5214 = vmatmul.mubr.msk.f32.gmra.mxu1 %vm1628_vm2, %v5288_v12  ;;  %v2870_v40 = vpop.f32.mrf.mxu1  ;;  %vm1636_vm9 = vcmp.eq.s32.totalorder %v5660_v4, %v1448_v31  ;;  %vm1635_vm10 = vcmp.eq.s32.totalorder %v5649_v0, %v1448_v31  ;;  %vm1637_vm11 = vcmp.eq.s32.totalorder %v5668_v8, %v1448_v31 }
 0x247   : > { %4867 = vmatprep.mubr.msk.f32.mxu0 %vm1630_vm3, %v5288_v12  ;;  %5216 = vmatprep.mubr.msk.f32.mxu1 %vm5289_vm13, %v5287_v3  ;;  %v6928_v50 = vadd.f32 %v2870_v40, %v2490_v2 }
 0x248   : > { %v2492_v11 = vpop.f32.mrf.mxu0  ;;  %v2872_v48 = vpop.f32.mrf.mxu1 }
 0x249   : > { %7335 = vst [vmem:[#allocation15_spill] sm:$0xff] %v6928_v50  ;;  %v1451_v48 = vpop.permute.xlu1 %1450 }
 0x24a   : > { %v2495_v22 = vpop.f32.mrf.mxu0  ;;  %4868 = vmatmul.mubr.msk.f32.gmra.mxu0 %vm1629_vm4, %v5288_v12  ;;  %5217 = vmatmul.mubr.msk.f32.gmra.mxu1 %vm1631_vm5, %v5288_v12  ;;  %v2875_v26 = vpop.f32.mrf.mxu1  ;;  %vm1639_vm14 = vcmp.eq.s32.totalorder %v5660_v4, %v1451_v48  ;;  %vm1638_vm15 = vcmp.eq.s32.totalorder %v5649_v0, %v1451_v48  ;;  %vm1640_vm0 = vcmp.eq.s32.totalorder %v5668_v8, %v1451_v48 }
 0x24b   : > { %4869 = vmatprep.mubr.msk.f32.mxu0 %vm1633_vm6, %v5288_v12  ;;  %5219 = vmatprep.mubr.msk.f32.mxu1 %vm5289_vm13, %v5287_v3  ;;  %v6938_v40 = vadd.f32 %v2875_v26, %v2495_v22 }
 0x24c   : > { %v2497_v2 = vpop.f32.mrf.mxu0  ;;  %v2877_v13 = vpop.f32.mrf.mxu1 }
 0x24d   : > { %7336 = vst [vmem:[#allocation16_spill] sm:$0xff] %v6938_v40  ;;  %v1454_v40 = vpop.permute.xlu0 %1453 }
 0x24e   : > { %v2993_v11 = vpop.f32.mrf.mxu0  ;;  %4870 = vmatmul.mubr.msk.f32.gmra.mxu0 %vm1632_vm7, %v5288_v12  ;;  %5220 = vmatmul.mubr.msk.f32.gmra.mxu1 %vm1634_vm8, %v5288_v12  ;;  %v3373_v50 = vpop.f32.mrf.mxu1  ;;  %vm1642_vm1 = vcmp.eq.s32.totalorder %v5660_v4, %v1454_v40  ;;  %vm1641_vm2 = vcmp.eq.s32.totalorder %v5649_v0, %v1454_v40  ;;  %vm1643_vm3 = vcmp.eq.s32.totalorder %v5668_v8, %v1454_v40 }
 0x24f   : > { %4871 = vmatprep.mubr.msk.f32.mxu0 %vm1636_vm9, %v5288_v12  ;;  %5222 = vmatprep.mubr.msk.f32.mxu1 %vm5289_vm13, %v5287_v3  ;;  %v3374_v26 = vadd.f32 %v3373_v50, %v2993_v11 }
 0x250   : > { %v2995_v22 = vpop.f32.mrf.mxu0  ;;  %v5077_v49 = vpop.f32.mrf.mxu1 }
 0x251   : > { %v3687_v2 = vmul.f32 %v3374_v26, %v6316_v57  ;;  %v1457_v49 = vpop.permute.xlu1 %1456 }
 0x252   : > { %v2998_v13 = vpop.f32.mrf.mxu0  ;;  %4872 = vmatmul.mubr.msk.f32.gmra.mxu0 %vm1635_vm10, %v5288_v12  ;;  %5223 = vmatmul.mubr.msk.f32.gmra.mxu1 %vm1637_vm11, %v5288_v12  ;;  %v3378_v36 = vpop.f32.mrf.mxu1  ;;  %vm1645_vm4 = vcmp.eq.s32.totalorder %v5660_v4, %v1457_v49  ;;  %vm1644_vm5 = vcmp.eq.s32.totalorder %v5649_v0, %v1457_v49  ;;  %vm1646_vm6 = vcmp.eq.s32.totalorder %v5668_v8, %v1457_v49 }
 0x253   : > { %4873 = vmatprep.mubr.msk.f32.mxu0 %vm1639_vm14, %v5288_v12  ;;  %5225 = vmatprep.mubr.msk.f32.mxu1 %vm5289_vm13, %v5287_v3  ;;  %v3379_v50 = vadd.f32 %v3378_v36, %v2998_v13  ;;  %v3751_v31 = vsel %vm3750_vm12, %v3687_v2, 0.0 }
 0x254   : > { %v3000_v11 = vpop.f32.mrf.mxu0  ;;  %3752 = vadd.xlane.f32.xlu0 %v3751_v31  ;;  %v5080_v57 = vpop.f32.mrf.mxu1 }
 0x255   : > { %v3688_v26 = vmul.f32 %v3379_v50, %v6328_v63  ;;  %v1460_v11 = vpop.permute.xlu0 %1459 }
 0x256   : > { %v3003_v22 = vpop.f32.mrf.mxu0  ;;  %4874 = vmatmul.mubr.msk.f32.gmra.mxu0 %vm1638_vm15, %v5288_v12  ;;  %5226 = vmatmul.mubr.msk.f32.gmra.mxu1 %vm1640_vm0, %v5288_v12  ;;  %v3383_v36 = vpop.f32.mrf.mxu1  ;;  %vm1648_vm7 = vcmp.eq.s32.totalorder %v5660_v4, %v1460_v11  ;;  %vm1647_vm8 = vcmp.eq.s32.totalorder %v5649_v0, %v1460_v11  ;;  %vm1649_vm9 = vcmp.eq.s32.totalorder %v5668_v8, %v1460_v11 }
 0x257   : > { %4875 = vmatprep.mubr.msk.f32.mxu0 %vm1642_vm1, %v5288_v12  ;;  %5228 = vmatprep.mubr.msk.f32.mxu1 %vm5289_vm13, %v5287_v3  ;;  %v3384_v2 = vadd.f32 %v3383_v36, %v3003_v22  ;;  %v3754_v48 = vsel %vm3750_vm12, %v3688_v26, 0.0 }
 0x258   : > { %v3005_v13 = vpop.f32.mrf.mxu0  ;;  %v5083_v63 = vpop.f32.mrf.mxu1  ;;  %3755 = vadd.xlane.f32.xlu1 %v3754_v48 }
 0x259   : > { %v3689_v50 = vmul.f32 %v3384_v2, %v6338_v10  ;;  %v1463_v48 = vpop.permute.xlu1 %1462 }
 0x25a   : > { %v3008_v31 = vpop.f32.mrf.mxu0  ;;  %4876 = vmatmul.mubr.msk.f32.gmra.mxu0 %vm1641_vm2, %v5288_v12  ;;  %5229 = vmatmul.mubr.msk.f32.gmra.mxu1 %vm1643_vm3, %v5288_v12  ;;  %v3388_v57 = vpop.f32.mrf.mxu1  ;;  %vm1651_vm10 = vcmp.eq.s32.totalorder %v5660_v4, %v1463_v48  ;;  %vm1650_vm11 = vcmp.eq.s32.totalorder %v5649_v0, %v1463_v48  ;;  %vm1652_vm14 = vcmp.eq.s32.totalorder %v5668_v8, %v1463_v48 }
 0x25b   : > { %4877 = vmatprep.mubr.msk.f32.mxu0 %vm1645_vm4, %v5288_v12  ;;  %5231 = vmatprep.mubr.msk.f32.mxu1 %vm5289_vm13, %v5287_v3  ;;  %v3389_v26 = vadd.f32 %v3388_v57, %v3008_v31  ;;  %v3757_v40 = vsel %vm3750_vm12, %v3689_v50, 0.0 }
 0x25c   : > { %v3010_v22 = vpop.f32.mrf.mxu0  ;;  %3758 = vadd.xlane.f32.xlu0 %v3757_v40  ;;  %v5086_v10 = vpop.f32.mrf.mxu1 }
 0x25d   : > { %v3690_v36 = vmul.f32 %v3389_v26, %v6348_v17  ;;  %v1466_v26 = vpop.permute.xlu0 %1465 }
 0x25e   : > { %v3013_v2 = vpop.f32.mrf.mxu0  ;;  %4878 = vmatmul.mubr.msk.f32.gmra.mxu0 %vm1644_vm5, %v5288_v12  ;;  %5232 = vmatmul.mubr.msk.f32.gmra.mxu1 %vm1646_vm6, %v5288_v12  ;;  %v3393_v13 = vpop.f32.mrf.mxu1  ;;  %vm1654_vm15 = vcmp.eq.s32.totalorder %v5660_v4, %v1466_v26  ;;  %vm1653_vm0 = vcmp.eq.s32.totalorder %v5649_v0, %v1466_v26  ;;  %vm1655_vm1 = vcmp.eq.s32.totalorder %v5668_v8, %v1466_v26 }
 0x25f   : > { %4879 = vmatprep.mubr.msk.f32.mxu0 %vm1648_vm7, %v5288_v12  ;;  %5234 = vmatprep.mubr.msk.f32.mxu1 %vm5289_vm13, %v5287_v3  ;;  %v3394_v63 = vadd.f32 %v3393_v13, %v3013_v2  ;;  %v3760_v49 = vsel %vm3750_vm12, %v3690_v36, 0.0  ;;  %v1469_v13 = vpop.permute.xlu1 %1468 }
 0x260   : > { %v3015_v50 = vpop.f32.mrf.mxu0  ;;  %v5089_v17 = vpop.f32.mrf.mxu1  ;;  %3761 = vadd.xlane.f32.xlu0 %v3760_v49  ;;  %vm1657_vm2 = vcmp.eq.s32.totalorder %v5660_v4, %v1469_v13  ;;  %vm1656_vm3 = vcmp.eq.s32.totalorder %v5649_v0, %v1469_v13  ;;  %vm1658_vm4 = vcmp.eq.s32.totalorder %v5668_v8, %v1469_v13 }
 0x261   : > { %v3691_v31 = vmul.f32 %v3394_v63, %v6358_v23 }
 0x262   : > { %v3018_v57 = vpop.f32.mrf.mxu0  ;;  %4880 = vmatmul.mubr.msk.f32.gmra.mxu0 %vm1647_vm8, %v5288_v12  ;;  %5235 = vmatmul.mubr.msk.f32.gmra.mxu1 %vm1649_vm9, %v5288_v12  ;;  %v3398_v40 = vpop.f32.mrf.mxu1 }
 0x263   : > { %4881 = vmatprep.mubr.msk.f32.mxu0 %vm1651_vm10, %v5288_v12  ;;  %5237 = vmatprep.mubr.msk.f32.mxu1 %vm5289_vm13, %v5287_v3  ;;  %v3399_v22 = vadd.f32 %v3398_v40, %v3018_v57  ;;  %v3763_v11 = vsel %vm3750_vm12, %v3691_v31, 0.0  ;;  %v1472_v57 = vpop.permute.xlu0 %1471 }
 0x264   : > { %v3020_v10 = vpop.f32.mrf.mxu0  ;;  %3764 = vadd.xlane.f32.xlu1 %v3763_v11  ;;  %v5092_v23 = vpop.f32.mrf.mxu1  ;;  %vm1660_vm5 = vcmp.eq.s32.totalorder %v5660_v4, %v1472_v57  ;;  %vm1659_vm6 = vcmp.eq.s32.totalorder %v5649_v0, %v1472_v57  ;;  %vm1661_vm7 = vcmp.eq.s32.totalorder %v5668_v8, %v1472_v57 }
 0x265   : > { %v3692_v36 = vmul.f32 %v3399_v22, %v6368_v29 }
 0x266   : > { %v3023_v2 = vpop.f32.mrf.mxu0  ;;  %4882 = vmatmul.mubr.msk.f32.gmra.mxu0 %vm1650_vm11, %v5288_v12  ;;  %5238 = vmatmul.mubr.msk.f32.gmra.mxu1 %vm1652_vm14, %v5288_v12  ;;  %v3403_v63 = vpop.f32.mrf.mxu1 }
 0x267   : > { %4883 = vmatprep.mubr.msk.f32.mxu0 %vm1654_vm15, %v5288_v12  ;;  %5240 = vmatprep.mubr.msk.f32.mxu1 %vm5289_vm13, %v5287_v3  ;;  %v3404_v49 = vadd.f32 %v3403_v63, %v3023_v2  ;;  %v3766_v48 = vsel %vm3750_vm12, %v3692_v36, 0.0  ;;  %v1475_v36 = vpop.permute.xlu1 %1474 }
 0x268   : > { %v3025_v50 = vpop.f32.mrf.mxu0  ;;  %v5095_v29 = vpop.f32.mrf.mxu1  ;;  %3767 = vadd.xlane.f32.xlu0 %v3766_v48  ;;  %vm1663_vm8 = vcmp.eq.s32.totalorder %v5660_v4, %v1475_v36  ;;  %vm1662_vm9 = vcmp.eq.s32.totalorder %v5649_v0, %v1475_v36  ;;  %vm1664_vm10 = vcmp.eq.s32.totalorder %v5668_v8, %v1475_v36 }
 0x269   : > { %v3693_v17 = vmul.f32 %v3404_v49, %v6378_v35  ;;  %v1478_v29 = vpop.permute.xlu0 %1477 }
 0x26a   : > { %v3028_v31 = vpop.f32.mrf.mxu0  ;;  %4884 = vmatmul.mubr.msk.f32.gmra.mxu0 %vm1653_vm0, %v5288_v12  ;;  %5241 = vmatmul.mubr.msk.f32.gmra.mxu1 %vm1655_vm1, %v5288_v12  ;;  %v3408_v40 = vpop.f32.mrf.mxu1  ;;  %vm1666_vm11 = vcmp.eq.s32.totalorder %v5660_v4, %v1478_v29  ;;  %vm1665_vm14 = vcmp.eq.s32.totalorder %v5649_v0, %v1478_v29  ;;  %vm1667_vm15 = vcmp.eq.s32.totalorder %v5668_v8, %v1478_v29 }
 0x26b   : > { %4885 = vmatprep.mubr.msk.f32.mxu0 %vm1657_vm2, %v5288_v12  ;;  %5243 = vmatprep.mubr.msk.f32.mxu1 %vm5289_vm13, %v5287_v3  ;;  %v3409_v22 = vadd.f32 %v3408_v40, %v3028_v31  ;;  %v3769_v26 = vsel %vm3750_vm12, %v3693_v17, 0.0 }
 0x26c   : > { %v3030_v11 = vpop.f32.mrf.mxu0  ;;  %3770 = vadd.xlane.f32.xlu1 %v3769_v26  ;;  %v5098_v35 = vpop.f32.mrf.mxu1 }
 0x26d   : > { %v3694_v10 = vmul.f32 %v3409_v22, %v6388_v41  ;;  %v1481_v11 = vpop.permute.xlu1 %1480 }
 0x26e   : > { %v3033_v23 = vpop.f32.mrf.mxu0  ;;  %4886 = vmatmul.mubr.msk.f32.gmra.mxu0 %vm1656_vm3, %v5288_v12  ;;  %5244 = vmatmul.mubr.msk.f32.gmra.mxu1 %vm1658_vm4, %v5288_v12  ;;  %v3413_v2 = vpop.f32.mrf.mxu1  ;;  %vm1669_vm0 = vcmp.eq.s32.totalorder %v5660_v4, %v1481_v11  ;;  %vm1668_vm1 = vcmp.eq.s32.totalorder %v5649_v0, %v1481_v11  ;;  %vm1670_vm2 = vcmp.eq.s32.totalorder %v5668_v8, %v1481_v11 }
 0x26f   : > { %4887 = vmatprep.mubr.msk.f32.mxu0 %vm1660_vm5, %v5288_v12  ;;  %5246 = vmatprep.mubr.msk.f32.mxu1 %vm5289_vm13, %v5287_v3  ;;  %v3414_v63 = vadd.f32 %v3413_v2, %v3033_v23  ;;  %v3772_v13 = vsel %vm3750_vm12, %v3694_v10, 0.0 }
 0x270   : > { %v3035_v49 = vpop.f32.mrf.mxu0  ;;  %v5101_v41 = vpop.f32.mrf.mxu1  ;;  %3773 = vadd.xlane.f32.xlu0 %v3772_v13 }
 0x271   : > { %v3695_v48 = vmul.f32 %v3414_v63, %v6398_v47  ;;  %v1484_v13 = vpop.permute.xlu0 %1483 }
 0x272   : > { %v3038_v50 = vpop.f32.mrf.mxu0  ;;  %4888 = vmatmul.mubr.msk.f32.gmra.mxu0 %vm1659_vm6, %v5288_v12  ;;  %5247 = vmatmul.mubr.msk.f32.gmra.mxu1 %vm1661_vm7, %v5288_v12  ;;  %v3418_v17 = vpop.f32.mrf.mxu1  ;;  %vm1672_vm3 = vcmp.eq.s32.totalorder %v5660_v4, %v1484_v13  ;;  %vm1671_vm4 = vcmp.eq.s32.totalorder %v5649_v0, %v1484_v13  ;;  %vm1673_vm5 = vcmp.eq.s32.totalorder %v5668_v8, %v1484_v13 }
 0x273   : > { %4889 = vmatprep.mubr.msk.f32.mxu0 %vm1663_vm8, %v5288_v12  ;;  %5249 = vmatprep.mubr.msk.f32.mxu1 %vm5289_vm13, %v5287_v3  ;;  %v3419_v31 = vadd.f32 %v3418_v17, %v3038_v50  ;;  %v3775_v57 = vsel %vm3750_vm12, %v3695_v48, 0.0 }
 0x274   : > { %v3040_v40 = vpop.f32.mrf.mxu0  ;;  %3776 = vadd.xlane.f32.xlu1 %v3775_v57  ;;  %v5104_v47 = vpop.f32.mrf.mxu1 }
 0x275   : > { %v3696_v22 = vmul.f32 %v3419_v31, %v6408_v53  ;;  %v1487_v31 = vpop.permute.xlu1 %1486 }
 0x276   : > { %v3043_v26 = vpop.f32.mrf.mxu0  ;;  %4890 = vmatmul.mubr.msk.f32.gmra.mxu0 %vm1662_vm9, %v5288_v12  ;;  %5250 = vmatmul.mubr.msk.f32.gmra.mxu1 %vm1664_vm10, %v5288_v12  ;;  %v3423_v35 = vpop.f32.mrf.mxu1  ;;  %vm1675_vm6 = vcmp.eq.s32.totalorder %v5660_v4, %v1487_v31  ;;  %vm1674_vm7 = vcmp.eq.s32.totalorder %v5649_v0, %v1487_v31  ;;  %vm1676_vm8 = vcmp.eq.s32.totalorder %v5668_v8, %v1487_v31 }
 0x277   : > { %4891 = vmatprep.mubr.msk.f32.mxu0 %vm1666_vm11, %v5288_v12  ;;  %5252 = vmatprep.mubr.msk.f32.mxu1 %vm5289_vm13, %v5287_v3  ;;  %v3424_v10 = vadd.f32 %v3423_v35, %v3043_v26  ;;  %v3778_v23 = vsel %vm3750_vm12, %v3696_v22, 0.0 }
 0x278   : > { %v3045_v36 = vpop.f32.mrf.mxu0  ;;  %v5107_v53 = vpop.f32.mrf.mxu1  ;;  %3779 = vadd.xlane.f32.xlu0 %v3778_v23 }
 0x279   : > { %v3697_v2 = vmul.f32 %v3424_v10, %v6418_v60 }
 0x27a   : > { %v3048_v63 = vpop.f32.mrf.mxu0  ;;  %4892 = vmatmul.mubr.msk.f32.gmra.mxu0 %vm1665_vm14, %v5288_v12  ;;  %5253 = vmatmul.mubr.msk.f32.gmra.mxu1 %vm1667_vm15, %v5288_v12  ;;  %v3428_v49 = vpop.f32.mrf.mxu1 }
 0x27b   : > { %4893 = vmatprep.mubr.msk.f32.mxu0 %vm1669_vm0, %v5288_v12  ;;  %5255 = vmatprep.mubr.msk.f32.mxu1 %vm5289_vm13, %v5287_v3  ;;  %v3429_v41 = vadd.f32 %v3428_v49, %v3048_v63  ;;  %v3781_v48 = vsel %vm3750_vm12, %v3697_v2, 0.0 }
 0x27c   : > { %v3050_v50 = vpop.f32.mrf.mxu0  ;;  %3782 = vadd.xlane.f32.xlu1 %v3781_v48  ;;  %v5110_v60 = vpop.f32.mrf.mxu1 }
 0x27d   : > { %v3698_v29 = vmul.f32 %v3429_v41, %v6428_v7 }
 0x27e   : > { %v3053_v17 = vpop.f32.mrf.mxu0  ;;  %4894 = vmatmul.mubr.msk.f32.gmra.mxu0 %vm1668_vm1, %v5288_v12  ;;  %5256 = vmatmul.mubr.msk.f32.gmra.mxu1 %vm1670_vm2, %v5288_v12  ;;  %v3433_v57 = vpop.f32.mrf.mxu1 }
 0x27f   : > { %4895 = vmatprep.mubr.msk.f32.mxu0 %vm1672_vm3, %v5288_v12  ;;  %5258 = vmatprep.mubr.msk.f32.mxu1 %vm5289_vm13, %v5287_v3  ;;  %v3434_v40 = vadd.f32 %v3433_v57, %v3053_v17  ;;  %v3784_v47 = vsel %vm3750_vm12, %v3698_v29, 0.0 }
 0x280   : > { %v3055_v22 = vpop.f32.mrf.mxu0  ;;  %v5113_v7 = vpop.f32.mrf.mxu1  ;;  %3785 = vadd.xlane.f32.xlu0 %v3784_v47 }
 0x281   : > { %v3699_v26 = vmul.f32 %v3434_v40, %v6438_v16 }
 0x282   : > { %v3058_v11 = vpop.f32.mrf.mxu0  ;;  %4896 = vmatmul.mubr.msk.f32.gmra.mxu0 %vm1671_vm4, %v5288_v12  ;;  %5259 = vmatmul.mubr.msk.f32.gmra.mxu1 %vm1673_vm5, %v5288_v12  ;;  %v3438_v35 = vpop.f32.mrf.mxu1 }
 0x283   : > { %4897 = vmatprep.mubr.msk.f32.mxu0 %vm1675_vm6, %v5288_v12  ;;  %5261 = vmatprep.mubr.msk.f32.mxu1 %vm5289_vm13, %v5287_v3  ;;  %v3439_v10 = vadd.f32 %v3438_v35, %v3058_v11  ;;  %v3787_v23 = vsel %vm3750_vm12, %v3699_v26, 0.0  ;;  %vm3940_vm13 = vcmask 7168  }
 0x284   : > { %v3060_v36 = vpop.f32.mrf.mxu0  ;;  %3788 = vadd.xlane.f32.xlu1 %v3787_v23  ;;  %v5116_v16 = vpop.f32.mrf.mxu1 }
 0x285   : > { %v3700_v53 = vmul.f32 %v3439_v10, %v6448_v24 }
 0x286   : > { %v3063_v2 = vpop.f32.mrf.mxu0  ;;  %4898 = vmatmul.mubr.msk.f32.gmra.mxu0 %vm1674_vm7, %v5288_v12  ;;  %5262 = vmatmul.mubr.msk.f32.gmra.mxu1 %vm1676_vm8, %v5288_v12  ;;  %v3443_v4 = vpop.f32.mrf.mxu1 }
 0x287   : > { %v3444_v63 = vadd.f32 %v3443_v4, %v3063_v2  ;;  %v3790_v3 = vsel %vm3750_vm12, %v3700_v53, 0.0 }
 0x288   : > { %v3065_v13 = vpop.f32.mrf.mxu0  ;;  %v5119_v49 = vpop.f32.mrf.mxu1  ;;  %3791 = vadd.xlane.f32.xlu0 %v3790_v3 }
 0x289   : > { %v3701_v0 = vmul.f32 %v3444_v63, %v6458_v30 }
 0x28a   : > { %v3068_v41 = vpop.f32.mrf.mxu0  ;;  %v3448_v8 = vpop.f32.mrf.mxu1 }
 0x28b   : > { %v3449_v48 = vadd.f32 %v3448_v8, %v3068_v41  ;;  %v3793_v50 = vsel %vm3750_vm12, %v3701_v0, 0.0 }
 0x28c   : > { %v3070_v24 = vpop.f32.mrf.mxu0  ;;  %3794 = vadd.xlane.f32.xlu1 %v3793_v50  ;;  %v5122_v60 = vpop.f32.mrf.mxu1 }
 0x28d   : > { %v3702_v29 = vmul.f32 %v3449_v48, %v6468_v37 }
 0x28e   : > { %v3073_v12 = vpop.f32.mrf.mxu0  ;;  %v3453_v17 = vpop.f32.mrf.mxu1 }
 0x28f   : > { %v3454_v31 = vadd.f32 %v3453_v17, %v3073_v12  ;;  %v3796_v57 = vsel %vm3750_vm12, %v3702_v29, 0.0 }
 0x290   : > { %v3075_v40 = vpop.f32.mrf.mxu0  ;;  %v5125_v47 = vpop.f32.mrf.mxu1  ;;  %3797 = vadd.xlane.f32.xlu0 %v3796_v57 }
 0x291   : > { %v3703_v30 = vmul.f32 %v3454_v31, %v6478_v44 }
 0x292   : > { %v3078_v22 = vpop.f32.mrf.mxu0  ;;  %v3458_v7 = vpop.f32.mrf.mxu1 }
 0x293   : > { %v3459_v26 = vadd.f32 %v3458_v7, %v3078_v22  ;;  %v3799_v11 = vsel %vm3750_vm12, %v3703_v30, 0.0 }
 0x294   : > { %v3080_v35 = vpop.f32.mrf.mxu0  ;;  %3800 = vadd.xlane.f32.xlu1 %v3799_v11  ;;  %v5128_v10 = vpop.f32.mrf.mxu1 }
 0x295   : > { %v3704_v37 = vmul.f32 %v3459_v26, %v6488_v51 }
 0x296   : > { %v3083_v23 = vpop.f32.mrf.mxu0  ;;  %v3463_v36 = vpop.f32.mrf.mxu1 }
 0x297   : > { %v3464_v16 = vadd.f32 %v3463_v36, %v3083_v23  ;;  %v3802_v53 = vsel %vm3750_vm12, %v3704_v37, 0.0 }
 0x298   : > { %v3085_v2 = vpop.f32.mrf.mxu0  ;;  %v5131_v4 = vpop.f32.mrf.mxu1  ;;  %3803 = vadd.xlane.f32.xlu0 %v3802_v53 }
 0x299   : > { %v3705_v44 = vmul.f32 %v3464_v16, %v6498_v59 }
 0x29a   : > { %v3088_v63 = vpop.f32.mrf.mxu0  ;;  %v3468_v3 = vpop.f32.mrf.mxu1 }
 0x29b   : > { %v3469_v13 = vadd.f32 %v3468_v3, %v3088_v63  ;;  %v3805_v49 = vsel %vm3750_vm12, %v3705_v44, 0.0 }
 0x29c   : > { %v3090_v0 = vpop.f32.mrf.mxu0  ;;  %3806 = vadd.xlane.f32.xlu1 %v3805_v49  ;;  %v5134_v41 = vpop.f32.mrf.mxu1 }
 0x29d   : > { %v3706_v51 = vmul.f32 %v3469_v13, %v6508_v9 }
 0x29e   : > { %v3093_v8 = vpop.f32.mrf.mxu0  ;;  %v3473_v48 = vpop.f32.mrf.mxu1 }
 0x29f   : > { %v3474_v50 = vadd.f32 %v3473_v48, %v3093_v8  ;;  %v3808_v24 = vsel %vm3750_vm12, %v3706_v51, 0.0 }
 0x2a0   : > { %v3095_v60 = vpop.f32.mrf.mxu0  ;;  %v5137_v29 = vpop.f32.mrf.mxu1  ;;  %3809 = vadd.xlane.f32.xlu0 %v3808_v24 }
 0x2a1   : > { %v3707_v59 = vmul.f32 %v3474_v50, %v6518_v19 }
 0x2a2   : > { %v3098_v12 = vpop.f32.mrf.mxu0  ;;  %v3478_v17 = vpop.f32.mrf.mxu1 }
 0x2a3   : > { %v3479_v31 = vadd.f32 %v3478_v17, %v3098_v12  ;;  %v3811_v57 = vsel %vm3750_vm12, %v3707_v59, 0.0 }
 0x2a4   : > { %v3100_v40 = vpop.f32.mrf.mxu0  ;;  %3812 = vadd.xlane.f32.xlu1 %v3811_v57  ;;  %v5140_v47 = vpop.f32.mrf.mxu1 }
 0x2a5   : > { %v3708_v9 = vmul.f32 %v3479_v31, %v6528_v27 }
 0x2a6   : > { %v3103_v30 = vpop.f32.mrf.mxu0  ;;  %v3483_v22 = vpop.f32.mrf.mxu1 }
 0x2a7   : > { %v3484_v7 = vadd.f32 %v3483_v22, %v3103_v30  ;;  %v3814_v26 = vsel %vm3750_vm12, %v3708_v9, 0.0 }
 0x2a8   : > { %v3105_v11 = vpop.f32.mrf.mxu0  ;;  %v5143_v35 = vpop.f32.mrf.mxu1  ;;  %3815 = vadd.xlane.f32.xlu0 %v3814_v26 }
 0x2a9   : > { %v3709_v19 = vmul.f32 %v3484_v7, %v6538_v34 }
 0x2aa   : > { %v3108_v10 = vpop.f32.mrf.mxu0  ;;  %v3488_v37 = vpop.f32.mrf.mxu1 }
 0x2ab   : > { %v3489_v23 = vadd.f32 %v3488_v37, %v3108_v10  ;;  %v3817_v36 = vsel %vm3750_vm12, %v3709_v19, 0.0 }
 0x2ac   : > { %v3110_v16 = vpop.f32.mrf.mxu0  ;;  %3818 = vadd.xlane.f32.xlu1 %v3817_v36  ;;  %v5146_v53 = vpop.f32.mrf.mxu1 }
 0x2ad   : > { %v3710_v27 = vmul.f32 %v3489_v23, %v6548_v43 }
 0x2ae   : > { %v3113_v2 = vpop.f32.mrf.mxu0  ;;  %v3493_v4 = vpop.f32.mrf.mxu1 }
 0x2af   : > { %v3494_v44 = vadd.f32 %v3493_v4, %v3113_v2  ;;  %v3820_v63 = vsel %vm3750_vm12, %v3710_v27, 0.0 }
 0x2b0   : > { %v3115_v3 = vpop.f32.mrf.mxu0  ;;  %v5149_v13 = vpop.f32.mrf.mxu1  ;;  %3821 = vadd.xlane.f32.xlu0 %v3820_v63 }
 0x2b1   : > { %v3711_v34 = vmul.f32 %v3494_v44, %v6558_v52 }
 0x2b2   : > { %v3118_v49 = vpop.f32.mrf.mxu0  ;;  %v3498_v0 = vpop.f32.mrf.mxu1 }
 0x2b3   : > { %v3499_v41 = vadd.f32 %v3498_v0, %v3118_v49  ;;  %v3823_v51 = vsel %vm3750_vm12, %v3711_v34, 0.0 }
 0x2b4   : > { %v3120_v8 = vpop.f32.mrf.mxu0  ;;  %3824 = vadd.xlane.f32.xlu1 %v3823_v51  ;;  %v5152_v48 = vpop.f32.mrf.mxu1 }
 0x2b5   : > { %v3712_v43 = vmul.f32 %v3499_v41, %v6568_v62 }
 0x2b6   : > { %v3123_v50 = vpop.f32.mrf.mxu0  ;;  %v3503_v24 = vpop.f32.mrf.mxu1 }
 0x2b7   : > { %v3504_v60 = vadd.f32 %v3503_v24, %v3123_v50  ;;  %v3826_v29 = vsel %vm3750_vm12, %v3712_v43, 0.0 }
 0x2b8   : > { %v3125_v59 = vpop.f32.mrf.mxu0  ;;  %v5155_v12 = vpop.f32.mrf.mxu1  ;;  %3827 = vadd.xlane.f32.xlu0 %v3826_v29 }
 0x2b9   : > { %v3713_v52 = vmul.f32 %v3504_v60, %v6578_v14 }
 0x2ba   : > { %v3128_v17 = vpop.f32.mrf.mxu0  ;;  %v3508_v31 = vpop.f32.mrf.mxu1 }
 0x2bb   : > { %v3509_v57 = vadd.f32 %v3508_v31, %v3128_v17  ;;  %v3829_v40 = vsel %vm3750_vm12, %v3713_v52, 0.0 }
 0x2bc   : > { %v3130_v47 = vpop.f32.mrf.mxu0  ;;  %3830 = vadd.xlane.f32.xlu1 %v3829_v40  ;;  %v5158_v9 = vpop.f32.mrf.mxu1 }
 0x2bd   : > { %v3714_v62 = vmul.f32 %v3509_v57, %v6588_v25 }
 0x2be   : > { %v3133_v30 = vpop.f32.mrf.mxu0  ;;  %v3513_v22 = vpop.f32.mrf.mxu1 }
 0x2bf   : > { %v3514_v7 = vadd.f32 %v3513_v22, %v3133_v30  ;;  %v3832_v26 = vsel %vm3750_vm12, %v3714_v62, 0.0 }
 0x2c0   : > { %v3135_v11 = vpop.f32.mrf.mxu0  ;;  %v5161_v35 = vpop.f32.mrf.mxu1  ;;  %3833 = vadd.xlane.f32.xlu0 %v3832_v26 }
 0x2c1   : > { %v3715_v14 = vmul.f32 %v3514_v7, %v6598_v33 }
 0x2c2   : > { %v3138_v19 = vpop.f32.mrf.mxu0  ;;  %v3518_v10 = vpop.f32.mrf.mxu1 }
 0x2c3   : > { %v3519_v37 = vadd.f32 %v3518_v10, %v3138_v19  ;;  %v3835_v23 = vsel %vm3750_vm12, %v3715_v14, 0.0 }
 0x2c4   : > { %v3140_v36 = vpop.f32.mrf.mxu0  ;;  %3836 = vadd.xlane.f32.xlu1 %v3835_v23  ;;  %v5164_v16 = vpop.f32.mrf.mxu1 }
 0x2c5   : > { %v3716_v25 = vmul.f32 %v3519_v37, %v6608_v45 }
 0x2c6   : > { %v3143_v53 = vpop.f32.mrf.mxu0  ;;  %v3523_v27 = vpop.f32.mrf.mxu1 }
 0x2c7   : > { %v3524_v2 = vadd.f32 %v3523_v27, %v3143_v53  ;;  %v3838_v4 = vsel %vm3750_vm12, %v3716_v25, 0.0 }
 0x2c8   : > { %v3145_v44 = vpop.f32.mrf.mxu0  ;;  %v5167_v63 = vpop.f32.mrf.mxu1  ;;  %3839 = vadd.xlane.f32.xlu0 %v3838_v4 }
 0x2c9   : > { %v3717_v33 = vmul.f32 %v3524_v2, %v6618_v55 }
 0x2ca   : > { %v3148_v3 = vpop.f32.mrf.mxu0  ;;  %v3528_v13 = vpop.f32.mrf.mxu1 }
 0x2cb   : > { %v3529_v34 = vadd.f32 %v3528_v13, %v3148_v3  ;;  %v3841_v49 = vsel %vm3750_vm12, %v3717_v33, 0.0 }
 0x2cc   : > { %v3150_v0 = vpop.f32.mrf.mxu0  ;;  %3842 = vadd.xlane.f32.xlu1 %v3841_v49  ;;  %v5170_v41 = vpop.f32.mrf.mxu1 }
 0x2cd   : > { %v3718_v45 = vmul.f32 %v3529_v34, %v6628_v6 }
 0x2ce   : > { %v3153_v51 = vpop.f32.mrf.mxu0  ;;  %v3533_v8 = vpop.f32.mrf.mxu1 }
 0x2cf   : > { %v3534_v48 = vadd.f32 %v3533_v8, %v3153_v51  ;;  %v3844_v43 = vsel %vm3750_vm12, %v3718_v45, 0.0 }
 0x2d0   : > { %v3155_v50 = vpop.f32.mrf.mxu0  ;;  %v5173_v24 = vpop.f32.mrf.mxu1  ;;  %3845 = vadd.xlane.f32.xlu0 %v3844_v43 }
 0x2d1   : > { %v3719_v55 = vmul.f32 %v3534_v48, %v6638_v21 }
 0x2d2   : > { %v3158_v60 = vpop.f32.mrf.mxu0  ;;  %v3538_v29 = vpop.f32.mrf.mxu1 }
 0x2d3   : > { %v3539_v59 = vadd.f32 %v3538_v29, %v3158_v60  ;;  %v3847_v12 = vsel %vm3750_vm12, %v3719_v55, 0.0 }
 0x2d4   : > { %v3160_v52 = vpop.f32.mrf.mxu0  ;;  %3848 = vadd.xlane.f32.xlu1 %v3847_v12  ;;  %v5176_v17 = vpop.f32.mrf.mxu1 }
 0x2d5   : > { %v3720_v6 = vmul.f32 %v3539_v59, %v6648_v32 }
 0x2d6   : > { %v3163_v31 = vpop.f32.mrf.mxu0  ;;  %v3543_v57 = vpop.f32.mrf.mxu1 }
 0x2d7   : > { %v3544_v40 = vadd.f32 %v3543_v57, %v3163_v31  ;;  %v3850_v47 = vsel %vm3750_vm12, %v3720_v6, 0.0 }
 0x2d8   : > { %v3165_v9 = vpop.f32.mrf.mxu0  ;;  %v5179_v62 = vpop.f32.mrf.mxu1  ;;  %3851 = vadd.xlane.f32.xlu0 %v3850_v47 }
 0x2d9   : > { %v3721_v21 = vmul.f32 %v3544_v40, %v6658_v46 }
 0x2da   : > { %v3168_v30 = vpop.f32.mrf.mxu0  ;;  %v3548_v22 = vpop.f32.mrf.mxu1 }
 0x2db   : > { %v3549_v7 = vadd.f32 %v3548_v22, %v3168_v30  ;;  %v3853_v26 = vsel %vm3750_vm12, %v3721_v21, 0.0 }
 0x2dc   : > { %v3170_v11 = vpop.f32.mrf.mxu0  ;;  %3854 = vadd.xlane.f32.xlu1 %v3853_v26  ;;  %v5182_v32 = vpop.f32.mrf.mxu1 }
 0x2dd   : > { %v3722_v35 = vmul.f32 %v3549_v7, %v6668_v58  ;;  %v3753_v14 = vpop.xlane.xlu0 %3752 }
 0x2de   : > { %v3173_v46 = vpop.f32.mrf.mxu0  ;;  %3941 = vst.msk [vmem:[%s7130_s7] sm:$0xff] %vm3940_vm13, %v3753_v14  ;;  %v3553_v19 = vpop.f32.mrf.mxu1 }
 0x2df   : > { %v3554_v10 = vadd.f32 %v3553_v19, %v3173_v46  ;;  %v3856_v37 = vsel %vm3750_vm12, %v3722_v35, 0.0 }
 0x2e0   : > { %v3175_v23 = vpop.f32.mrf.mxu0  ;;  %v5185_v36 = vpop.f32.mrf.mxu1  ;;  %3857 = vadd.xlane.f32.xlu0 %v3856_v37 }
 0x2e1   : > { %v3723_v16 = vmul.f32 %v3554_v10, %v6678_v15  ;;  %v3756_v25 = vpop.xlane.xlu1 %3755 }
 0x2e2   : > { %v3178_v53 = vpop.f32.mrf.mxu0  ;;  %3942 = vst.msk [vmem:[%s7130_s7 + $0x8] sm:$0xff] %vm3940_vm13, %v3756_v25  ;;  %v3558_v27 = vpop.f32.mrf.mxu1 }
 0x2e3   : > { %v3559_v58 = vadd.f32 %v3558_v27, %v3178_v53  ;;  %v3859_v2 = vsel %vm3750_vm12, %v3723_v16, 0.0 }
 0x2e4   : > { %v3180_v4 = vpop.f32.mrf.mxu0  ;;  %3860 = vadd.xlane.f32.xlu1 %v3859_v2  ;;  %v5188_v44 = vpop.f32.mrf.mxu1 }
 0x2e5   : > { %v3724_v63 = vmul.f32 %v3559_v58, %v6688_v28  ;;  %v3759_v33 = vpop.xlane.xlu0 %3758 }
 0x2e6   : > { %v3183_v3 = vpop.f32.mrf.mxu0  ;;  %3943 = vst.msk [vmem:[%s7130_s7 + $0x10] sm:$0xff] %vm3940_vm13, %v3759_v33  ;;  %v3563_v13 = vpop.f32.mrf.mxu1 }
 0x2e7   : > { %v3564_v15 = vadd.f32 %v3563_v13, %v3183_v3  ;;  %v3862_v34 = vsel %vm3750_vm12, %v3724_v63, 0.0 }
 0x2e8   : > { %v3185_v49 = vpop.f32.mrf.mxu0  ;;  %v5191_v0 = vpop.f32.mrf.mxu1  ;;  %3863 = vadd.xlane.f32.xlu0 %v3862_v34 }
 0x2e9   : > { %v3725_v41 = vmul.f32 %v3564_v15, %v6698_v42  ;;  %v3762_v45 = vpop.xlane.xlu0 %3761 }
 0x2ea   : > { %v3188_v51 = vpop.f32.mrf.mxu0  ;;  %3944 = vst.msk [vmem:[%s7130_s7 + $0x18] sm:$0xff] %vm3940_vm13, %v3762_v45  ;;  %v3568_v8 = vpop.f32.mrf.mxu1 }
 0x2eb   : > { %v3569_v28 = vadd.f32 %v3568_v8, %v3188_v51  ;;  %v3865_v48 = vsel %vm3750_vm12, %v3725_v41, 0.0 }
 0x2ec   : > { %v3190_v43 = vpop.f32.mrf.mxu0  ;;  %3866 = vadd.xlane.f32.xlu1 %v3865_v48  ;;  %v5194_v50 = vpop.f32.mrf.mxu1 }
 0x2ed   : > { %v3726_v24 = vmul.f32 %v3569_v28, %v6708_v61  ;;  %v3765_v55 = vpop.xlane.xlu1 %3764 }
 0x2ee   : > { %v3193_v60 = vpop.f32.mrf.mxu0  ;;  %3945 = vst.msk [vmem:[%s7130_s7 + $0x20] sm:$0xff] %vm3940_vm13, %v3765_v55  ;;  %v3573_v29 = vpop.f32.mrf.mxu1 }
 0x2ef   : > { %v3574_v42 = vadd.f32 %v3573_v29, %v3193_v60  ;;  %v3868_v59 = vsel %vm3750_vm12, %v3726_v24, 0.0 }
 0x2f0   : > { %v3195_v12 = vpop.f32.mrf.mxu0  ;;  %v5197_v52 = vpop.f32.mrf.mxu1  ;;  %3869 = vadd.xlane.f32.xlu0 %v3868_v59 }
 0x2f1   : > { %v3727_v17 = vmul.f32 %v3574_v42, %v6718_v20  ;;  %v3768_v6 = vpop.xlane.xlu0 %3767 }
 0x2f2   : > { %v3198_v31 = vpop.f32.mrf.mxu0  ;;  %3946 = vst.msk [vmem:[%s7130_s7 + $0x28] sm:$0xff] %vm3940_vm13, %v3768_v6  ;;  %v3578_v57 = vpop.f32.mrf.mxu1  ;;  %v7337_v6 = vld [vmem:[#allocation2_spill] sm:$0xff] }
 0x2f3   : > { %v3579_v61 = vadd.f32 %v3578_v57, %v3198_v31  ;;  %v3871_v40 = vsel %vm3750_vm12, %v3727_v17, 0.0 }
 0x2f4   : > { %v3200_v47 = vpop.f32.mrf.mxu0  ;;  %3872 = vadd.xlane.f32.xlu1 %v3871_v40  ;;  %v5200_v9 = vpop.f32.mrf.mxu1 }
 0x2f5   : > { %v3728_v62 = vmul.f32 %v3579_v61, %v6728_v38  ;;  %v3771_v21 = vpop.xlane.xlu1 %3770 }
 0x2f6   : > { %v3203_v30 = vpop.f32.mrf.mxu0  ;;  %3947 = vst.msk [vmem:[%s7130_s7 + $0x30] sm:$0xff] %vm3940_vm13, %v3771_v21  ;;  %v3583_v22 = vpop.f32.mrf.mxu1  ;;  %v7338_v21 = vld [vmem:[#allocation3_spill] sm:$0xff] }
 0x2f7   : > { %v3584_v20 = vadd.f32 %v3583_v22, %v3203_v30  ;;  %v3874_v7 = vsel %vm3750_vm12, %v3728_v62, 0.0 }
 0x2f8   : > { %v3205_v26 = vpop.f32.mrf.mxu0  ;;  %v5203_v11 = vpop.f32.mrf.mxu1  ;;  %3875 = vadd.xlane.f32.xlu0 %v3874_v7 }
 0x2f9   : > { %v3729_v32 = vmul.f32 %v3584_v20, %v6738_v54  ;;  %v3774_v35 = vpop.xlane.xlu0 %3773 }
 0x2fa   : > { %v3208_v14 = vpop.f32.mrf.mxu0  ;;  %3948 = vst.msk [vmem:[%s7130_s7 + $0x38] sm:$0xff] %vm3940_vm13, %v3774_v35  ;;  %v3588_v46 = vpop.f32.mrf.mxu1 }
 0x2fb   : > { %v3589_v38 = vadd.f32 %v3588_v46, %v3208_v14  ;;  %v3877_v19 = vsel %vm3750_vm12, %v3729_v32, 0.0  ;;  %v7339_v14 = vld [vmem:[#allocation4_spill] sm:$0xff] }
 0x2fc   : > { %v3210_v10 = vpop.f32.mrf.mxu0  ;;  %3878 = vadd.xlane.f32.xlu1 %v3877_v19  ;;  %v5206_v37 = vpop.f32.mrf.mxu1 }
 0x2fd   : > { %v3730_v23 = vmul.f32 %v3589_v38, %v6748_v18  ;;  %v3777_v36 = vpop.xlane.xlu1 %3776 }
 0x2fe   : > { %v3213_v16 = vpop.f32.mrf.mxu0  ;;  %3949 = vst.msk [vmem:[%s7130_s7 + $0x40] sm:$0xff] %vm3940_vm13, %v3777_v36  ;;  %v3593_v25 = vpop.f32.mrf.mxu1 }
 0x2ff   : > { %v3594_v54 = vadd.f32 %v3593_v25, %v3213_v16  ;;  %v3880_v53 = vsel %vm3750_vm12, %v3730_v23, 0.0  ;;  %v7340_v25 = vld [vmem:[#allocation5_spill] sm:$0xff] }
 0x300   : > { %v3215_v27 = vpop.f32.mrf.mxu0  ;;  %v5209_v58 = vpop.f32.mrf.mxu1  ;;  %3881 = vadd.xlane.f32.xlu0 %v3880_v53 }
 0x301   : > { %v3731_v2 = vmul.f32 %v3594_v54, %v6758_v39  ;;  %v3780_v4 = vpop.xlane.xlu0 %3779 }
 0x302   : > { %v3218_v44 = vpop.f32.mrf.mxu0  ;;  %3950 = vst.msk [vmem:[%s7130_s7 + $0x48] sm:$0xff] %vm3940_vm13, %v3780_v4  ;;  %v3598_v63 = vpop.f32.mrf.mxu1 }
 0x303   : > { %v3599_v18 = vadd.f32 %v3598_v63, %v3218_v44  ;;  %v3883_v33 = vsel %vm3750_vm12, %v3731_v2, 0.0 }
 0x304   : > { %v3220_v3 = vpop.f32.mrf.mxu0  ;;  %3884 = vadd.xlane.f32.xlu1 %v3883_v33  ;;  %v5212_v13 = vpop.f32.mrf.mxu1 }
 0x305   : > { %v3732_v15 = vmul.f32 %v3599_v18, %v6768_v1  ;;  %v3783_v34 = vpop.xlane.xlu1 %3782  ;;  %v7341_v18 = vld [vmem:[#allocation6_spill] sm:$0xff] }
 0x306   : > { %v3223_v49 = vpop.f32.mrf.mxu0  ;;  %3951 = vst.msk [vmem:[%s7130_s7 + $0x50] sm:$0xff] %vm3940_vm13, %v3783_v34  ;;  %v3603_v0 = vpop.f32.mrf.mxu1 }
 0x307   : > { %v3604_v39 = vadd.f32 %v3603_v0, %v3223_v49  ;;  %v3886_v41 = vsel %vm3750_vm12, %v3732_v15, 0.0 }
 0x308   : > { %v3225_v45 = vpop.f32.mrf.mxu0  ;;  %v5215_v51 = vpop.f32.mrf.mxu1  ;;  %3887 = vadd.xlane.f32.xlu0 %v3886_v41  ;;  %v7342_v41 = vld [vmem:[#allocation7_spill] sm:$0xff] }
 0x309   : > { %v3733_v8 = vmul.f32 %v3604_v39, %v6778_v5  ;;  %v3786_v28 = vpop.xlane.xlu0 %3785 }
 0x30a   : > { %v3228_v48 = vpop.f32.mrf.mxu0  ;;  %3952 = vst.msk [vmem:[%s7130_s7 + $0x58] sm:$0xff] %vm3940_vm13, %v3786_v28  ;;  %v3608_v43 = vpop.f32.mrf.mxu1 }
 0x30b   : > { %v3609_v1 = vadd.f32 %v3608_v43, %v3228_v48  ;;  %v3889_v50 = vsel %vm3750_vm12, %v3733_v8, 0.0 }
 0x30c   : > { %v3230_v24 = vpop.f32.mrf.mxu0  ;;  %3890 = vadd.xlane.f32.xlu1 %v3889_v50  ;;  %v5218_v55 = vpop.f32.mrf.mxu1 }
 0x30d   : > { %v3734_v60 = vmul.f32 %v3609_v1, %v6788_v56  ;;  %v3789_v29 = vpop.xlane.xlu1 %3788  ;;  %v7343_v24 = vld [vmem:[#allocation8_spill] sm:$0xff] }
 0x30e   : > { %v3233_v42 = vpop.f32.mrf.mxu0  ;;  %3953 = vst.msk [vmem:[%s7130_s7 + $0x60] sm:$0xff] %vm3940_vm13, %v3789_v29  ;;  %v3613_v59 = vpop.f32.mrf.mxu1 }
 0x30f   : > { %v3614_v5 = vadd.f32 %v3613_v59, %v3233_v42  ;;  %v3892_v12 = vsel %vm3750_vm12, %v3734_v60, 0.0 }
 0x310   : > { %v3235_v52 = vpop.f32.mrf.mxu0  ;;  %v5221_v17 = vpop.f32.mrf.mxu1  ;;  %3893 = vadd.xlane.f32.xlu0 %v3892_v12 }
 0x311   : > { %v3735_v31 = vmul.f32 %v3614_v5, %v7337_v6  ;;  %v3792_v57 = vpop.xlane.xlu0 %3791  ;;  %v7344_v17 = vld [vmem:[#allocation9_spill] sm:$0xff] }
 0x312   : > { %v3238_v61 = vpop.f32.mrf.mxu0  ;;  %3954 = vst.msk [vmem:[%s7130_s7 + $0x68] sm:$0xff] %vm3940_vm13, %v3792_v57  ;;  %v3618_v40 = vpop.f32.mrf.mxu1 }
 0x313   : > { %v3619_v56 = vadd.f32 %v3618_v40, %v3238_v61  ;;  %v3895_v47 = vsel %vm3750_vm12, %v3735_v31, 0.0 }
 0x314   : > { %v3240_v9 = vpop.f32.mrf.mxu0  ;;  %3896 = vadd.xlane.f32.xlu1 %v3895_v47  ;;  %v5224_v62 = vpop.f32.mrf.mxu1 }
 0x315   : > { %v3736_v30 = vmul.f32 %v3619_v56, %v7338_v21  ;;  %v3795_v22 = vpop.xlane.xlu1 %3794  ;;  %v7345_v62 = vld [vmem:[#allocation10_spill] sm:$0xff] }
 0x316   : > { %v3243_v20 = vpop.f32.mrf.mxu0  ;;  %3955 = vst.msk [vmem:[%s7130_s7 + $0x70] sm:$0xff] %vm3940_vm13, %v3795_v22  ;;  %v3623_v7 = vpop.f32.mrf.mxu1 }
 0x317   : > { %v3624_v26 = vadd.f32 %v3623_v7, %v3243_v20  ;;  %v3898_v11 = vsel %vm3750_vm12, %v3736_v30, 0.0 }
 0x318   : > { %v3245_v32 = vpop.f32.mrf.mxu0  ;;  %v5227_v35 = vpop.f32.mrf.mxu1  ;;  %3899 = vadd.xlane.f32.xlu0 %v3898_v11 }
 0x319   : > { %v3737_v46 = vmul.f32 %v3624_v26, %v7339_v14  ;;  %v3798_v38 = vpop.xlane.xlu0 %3797  ;;  %v7346_v35 = vld [vmem:[#allocation11_spill] sm:$0xff] }
 0x31a   : > { %v3248_v19 = vpop.f32.mrf.mxu0  ;;  %3956 = vst.msk [vmem:[%s7130_s7 + $0x78] sm:$0xff] %vm3940_vm13, %v3798_v38  ;;  %v3628_v10 = vpop.f32.mrf.mxu1 }
 0x31b   : > { %v3629_v37 = vadd.f32 %v3628_v10, %v3248_v19  ;;  %v3901_v23 = vsel %vm3750_vm12, %v3737_v46, 0.0 }
 0x31c   : > { %v3250_v36 = vpop.f32.mrf.mxu0  ;;  %3902 = vadd.xlane.f32.xlu1 %v3901_v23  ;;  %v5230_v16 = vpop.f32.mrf.mxu1 }
 0x31d   : > { %v3738_v54 = vmul.f32 %v3629_v37, %v7340_v25  ;;  %v3801_v53 = vpop.xlane.xlu1 %3800  ;;  %v7347_v16 = vld [vmem:[#allocation12_spill] sm:$0xff] }
 0x31e   : > { %v3253_v27 = vpop.f32.mrf.mxu0  ;;  %3957 = vst.msk [vmem:[%s7130_s7 + $0x80] sm:$0xff] %vm3940_vm13, %v3801_v53  ;;  %v3633_v58 = vpop.f32.mrf.mxu1 }
 0x31f   : > { %v3634_v2 = vadd.f32 %v3633_v58, %v3253_v27  ;;  %v3904_v4 = vsel %vm3750_vm12, %v3738_v54, 0.0 }
 0x320   : > { %v3255_v44 = vpop.f32.mrf.mxu0  ;;  %v5233_v63 = vpop.f32.mrf.mxu1  ;;  %3905 = vadd.xlane.f32.xlu0 %v3904_v4 }
 0x321   : > { %v3739_v33 = vmul.f32 %v3634_v2, %v7341_v18  ;;  %v3804_v3 = vpop.xlane.xlu0 %3803  ;;  %v7348_v63 = vld [vmem:[#allocation13_spill] sm:$0xff] }
 0x322   : > { %v3258_v13 = vpop.f32.mrf.mxu0  ;;  %3958 = vst.msk [vmem:[%s7130_s7 + $0x88] sm:$0xff] %vm3940_vm13, %v3804_v3  ;;  %v3638_v15 = vpop.f32.mrf.mxu1 }
 0x323   : > { %v3639_v34 = vadd.f32 %v3638_v15, %v3258_v13  ;;  %v3907_v49 = vsel %vm3750_vm12, %v3739_v33, 0.0 }
 0x324   : > { %v3260_v0 = vpop.f32.mrf.mxu0  ;;  %3908 = vadd.xlane.f32.xlu1 %v3907_v49  ;;  %v5236_v39 = vpop.f32.mrf.mxu1 }
 0x325   : > { %v3740_v45 = vmul.f32 %v3639_v34, %v7342_v41  ;;  %v3807_v51 = vpop.xlane.xlu1 %3806  ;;  %v7349_v39 = vld [vmem:[#allocation14_spill] sm:$0xff] }
 0x326   : > { %v3263_v8 = vpop.f32.mrf.mxu0  ;;  %3959 = vst.msk [vmem:[%s7130_s7 + $0x90] sm:$0xff] %vm3940_vm13, %v3807_v51  ;;  %v3643_v28 = vpop.f32.mrf.mxu1 }
 0x327   : > { %v3644_v48 = vadd.f32 %v3643_v28, %v3263_v8  ;;  %v3910_v43 = vsel %vm3750_vm12, %v3740_v45, 0.0 }
 0x328   : > { %v3265_v1 = vpop.f32.mrf.mxu0  ;;  %v5239_v50 = vpop.f32.mrf.mxu1  ;;  %3911 = vadd.xlane.f32.xlu0 %v3910_v43 }
 0x329   : > { %v3741_v55 = vmul.f32 %v3644_v48, %v7343_v24  ;;  %v3810_v60 = vpop.xlane.xlu0 %3809  ;;  %v7350_v50 = vld [vmem:[#allocation15_spill] sm:$0xff] }
 0x32a   : > { %v3268_v29 = vpop.f32.mrf.mxu0  ;;  %3960 = vst.msk [vmem:[%s7130_s7 + $0x98] sm:$0xff] %vm3940_vm13, %v3810_v60  ;;  %v3648_v42 = vpop.f32.mrf.mxu1 }
 0x32b   : > { %v3649_v59 = vadd.f32 %v3648_v42, %v3268_v29  ;;  %v3913_v5 = vsel %vm3750_vm12, %v3741_v55, 0.0 }
 0x32c   : > { %v3270_v12 = vpop.f32.mrf.mxu0  ;;  %3914 = vadd.xlane.f32.xlu1 %v3913_v5  ;;  %v5242_v52 = vpop.f32.mrf.mxu1 }
 0x32d   : > { %v3742_v6 = vmul.f32 %v3649_v59, %v7344_v17  ;;  %v3813_v31 = vpop.xlane.xlu1 %3812  ;;  %v7351_v52 = vld [vmem:[#allocation16_spill] sm:$0xff] }
 0x32e   : > { %v3273_v57 = vpop.f32.mrf.mxu0  ;;  %3961 = vst.msk [vmem:[%s7130_s7 + $0xa0] sm:$0xff] %vm3940_vm13, %v3813_v31  ;;  %v3653_v61 = vpop.f32.mrf.mxu1 }
 0x32f   : > { %v3654_v40 = vadd.f32 %v3653_v61, %v3273_v57  ;;  %v3916_v56 = vsel %vm3750_vm12, %v3742_v6, 0.0 }
 0x330   : > { %v3275_v47 = vpop.f32.mrf.mxu0  ;;  %v5245_v9 = vpop.f32.mrf.mxu1  ;;  %3917 = vadd.xlane.f32.xlu0 %v3916_v56 }
 0x331   : > { %v3743_v21 = vmul.f32 %v3654_v40, %v7345_v62  ;;  %v3816_v30 = vpop.xlane.xlu0 %3815 }
 0x332   : > { %v3278_v22 = vpop.f32.mrf.mxu0  ;;  %3962 = vst.msk [vmem:[%s7130_s7 + $0xa8] sm:$0xff] %vm3940_vm13, %v3816_v30  ;;  %v3658_v20 = vpop.f32.mrf.mxu1 }
 0x333   : > { %v3659_v7 = vadd.f32 %v3658_v20, %v3278_v22  ;;  %v3919_v26 = vsel %vm3750_vm12, %v3743_v21, 0.0 }
 0x334   : > { %v3280_v11 = vpop.f32.mrf.mxu0  ;;  %3920 = vadd.xlane.f32.xlu1 %v3919_v26  ;;  %v5248_v32 = vpop.f32.mrf.mxu1 }
 0x335   : > { %v3744_v14 = vmul.f32 %v3659_v7, %v7346_v35  ;;  %v3819_v46 = vpop.xlane.xlu1 %3818 }
 0x336   : > { %v3283_v38 = vpop.f32.mrf.mxu0  ;;  %3963 = vst.msk [vmem:[%s7130_s7 + $0xb0] sm:$0xff] %vm3940_vm13, %v3819_v46  ;;  %v3663_v19 = vpop.f32.mrf.mxu1 }
 0x337   : > { %v3664_v10 = vadd.f32 %v3663_v19, %v3283_v38  ;;  %v3922_v37 = vsel %vm3750_vm12, %v3744_v14, 0.0 }
 0x338   : > { %v3285_v23 = vpop.f32.mrf.mxu0  ;;  %v5251_v36 = vpop.f32.mrf.mxu1  ;;  %3923 = vadd.xlane.f32.xlu0 %v3922_v37 }
 0x339   : > { %v3745_v25 = vmul.f32 %v3664_v10, %v7347_v16  ;;  %v3822_v54 = vpop.xlane.xlu0 %3821 }
 0x33a   : > { %v3288_v53 = vpop.f32.mrf.mxu0  ;;  %3964 = vst.msk [vmem:[%s7130_s7 + $0xb8] sm:$0xff] %vm3940_vm13, %v3822_v54  ;;  %v3668_v27 = vpop.f32.mrf.mxu1 }
 0x33b   : > { %v3669_v58 = vadd.f32 %v3668_v27, %v3288_v53  ;;  %v3925_v2 = vsel %vm3750_vm12, %v3745_v25, 0.0 }
 0x33c   : > { %v3290_v4 = vpop.f32.mrf.mxu0  ;;  %3926 = vadd.xlane.f32.xlu1 %v3925_v2  ;;  %v5254_v44 = vpop.f32.mrf.mxu1 }
 0x33d   : > { %v3746_v18 = vmul.f32 %v3669_v58, %v7348_v63  ;;  %v3825_v33 = vpop.xlane.xlu1 %3824 }
 0x33e   : > { %v3293_v3 = vpop.f32.mrf.mxu0  ;;  %3965 = vst.msk [vmem:[%s7130_s7 + $0xc0] sm:$0xff] %vm3940_vm13, %v3825_v33  ;;  %v3673_v13 = vpop.f32.mrf.mxu1 }
 0x33f   : > { %v3674_v15 = vadd.f32 %v3673_v13, %v3293_v3  ;;  %v3928_v34 = vsel %vm3750_vm12, %v3746_v18, 0.0 }
 0x340   : > { %v3295_v49 = vpop.f32.mrf.mxu0  ;;  %v5257_v0 = vpop.f32.mrf.mxu1  ;;  %3929 = vadd.xlane.f32.xlu0 %v3928_v34 }
 0x341   : > { %v3747_v41 = vmul.f32 %v3674_v15, %v7349_v39  ;;  %v3828_v45 = vpop.xlane.xlu0 %3827 }
 0x342   : > { %v3298_v51 = vpop.f32.mrf.mxu0  ;;  %3966 = vst.msk [vmem:[%s7130_s7 + $0xc8] sm:$0xff] %vm3940_vm13, %v3828_v45  ;;  %v3678_v8 = vpop.f32.mrf.mxu1 }
 0x343   : > { %v3679_v28 = vadd.f32 %v3678_v8, %v3298_v51  ;;  %v3931_v48 = vsel %vm3750_vm12, %v3747_v41, 0.0 }
 0x344   : > { %v3300_v43 = vpop.f32.mrf.mxu0  ;;  %3932 = vadd.xlane.f32.xlu1 %v3931_v48  ;;  %v5260_v1 = vpop.f32.mrf.mxu1 }
 0x345   : > { %v3748_v24 = vmul.f32 %v3679_v28, %v7350_v50  ;;  %v3831_v55 = vpop.xlane.xlu1 %3830 }
 0x346   : > { %v3303_v60 = vpop.f32.mrf.mxu0  ;;  %3967 = vst.msk [vmem:[%s7130_s7 + $0xd0] sm:$0xff] %vm3940_vm13, %v3831_v55  ;;  %v3683_v29 = vpop.f32.mrf.mxu1 }
 0x347   : > { %v3684_v42 = vadd.f32 %v3683_v29, %v3303_v60  ;;  %v3934_v59 = vsel %vm3750_vm12, %v3748_v24, 0.0 }
 0x348   : > { %v3305_v5 = vpop.f32.mrf.mxu0  ;;  %v5263_v12 = vpop.f32.mrf.mxu1  ;;  %3935 = vadd.xlane.f32.xlu0 %v3934_v59 }
 0x349   : > { %v3749_v17 = vmul.f32 %v3684_v42, %v7351_v52  ;;  %v3834_v6 = vpop.xlane.xlu0 %3833 }
 0x34a   : > { %3968 = vst.msk [vmem:[%s7130_s7 + $0xd8] sm:$0xff] %vm3940_vm13, %v3834_v6 }
 0x34b   : > { %v3937_v31 = vsel %vm3750_vm12, %v3749_v17, 0.0 }
 0x34c   : > { %3938 = vadd.xlane.f32.xlu1 %v3937_v31 }
 0x34d   : > { %v3837_v57 = vpop.xlane.xlu1 %3836 }
 0x34e   : > { %3969 = vst.msk [vmem:[%s7130_s7 + $0xe0] sm:$0xff] %vm3940_vm13, %v3837_v57 }
 0x351   : > { %v3840_v61 = vpop.xlane.xlu0 %3839 }
 0x352   : > { %3970 = vst.msk [vmem:[%s7130_s7 + $0xe8] sm:$0xff] %vm3940_vm13, %v3840_v61 }
 0x355   : > { %v3843_v40 = vpop.xlane.xlu1 %3842 }
 0x356   : > { %3971 = vst.msk [vmem:[%s7130_s7 + $0xf0] sm:$0xff] %vm3940_vm13, %v3843_v40 }
 0x359   : > { %v3846_v56 = vpop.xlane.xlu0 %3845 }
 0x35a   : > { %3972 = vst.msk [vmem:[%s7130_s7 + $0xf8] sm:$0xff] %vm3940_vm13, %v3846_v56 }
 0x35d   : > { %v3849_v47 = vpop.xlane.xlu1 %3848 }
 0x35e   : > { %3973 = vst.msk [vmem:[%s7130_s7 + $0x100] sm:$0xff] %vm3940_vm13, %v3849_v47 }
 0x361   : > { %v3852_v9 = vpop.xlane.xlu0 %3851 }
 0x362   : > { %3974 = vst.msk [vmem:[%s7130_s7 + $0x108] sm:$0xff] %vm3940_vm13, %v3852_v9 }
 0x365   : > { %v3855_v62 = vpop.xlane.xlu1 %3854 }
 0x366   : > { %3975 = vst.msk [vmem:[%s7130_s7 + $0x110] sm:$0xff] %vm3940_vm13, %v3855_v62 }
 0x369   : > { %v3858_v21 = vpop.xlane.xlu0 %3857 }
 0x36a   : > { %3976 = vst.msk [vmem:[%s7130_s7 + $0x118] sm:$0xff] %vm3940_vm13, %v3858_v21 }
 0x36d   : > { %v3861_v30 = vpop.xlane.xlu1 %3860 }
 0x36e   : > { %3977 = vst.msk [vmem:[%s7130_s7 + $0x120] sm:$0xff] %vm3940_vm13, %v3861_v30 }
 0x371   : > { %v3864_v22 = vpop.xlane.xlu0 %3863 }
 0x372   : > { %3978 = vst.msk [vmem:[%s7130_s7 + $0x128] sm:$0xff] %vm3940_vm13, %v3864_v22 }
 0x375   : > { %v3867_v20 = vpop.xlane.xlu1 %3866 }
 0x376   : > { %3979 = vst.msk [vmem:[%s7130_s7 + $0x130] sm:$0xff] %vm3940_vm13, %v3867_v20 }
 0x379   : > { %v3870_v7 = vpop.xlane.xlu0 %3869 }
 0x37a   : > { %3980 = vst.msk [vmem:[%s7130_s7 + $0x138] sm:$0xff] %vm3940_vm13, %v3870_v7 }
 0x37d   : > { %v3873_v26 = vpop.xlane.xlu1 %3872 }
 0x37e   : > { %3981 = vst.msk [vmem:[%s7130_s7 + $0x140] sm:$0xff] %vm3940_vm13, %v3873_v26 }
 0x381   : > { %v3876_v11 = vpop.xlane.xlu0 %3875 }
 0x382   : > { %3982 = vst.msk [vmem:[%s7130_s7 + $0x148] sm:$0xff] %vm3940_vm13, %v3876_v11 }
 0x385   : > { %v3879_v32 = vpop.xlane.xlu1 %3878 }
 0x386   : > { %3983 = vst.msk [vmem:[%s7130_s7 + $0x150] sm:$0xff] %vm3940_vm13, %v3879_v32 }
 0x389   : > { %v3882_v35 = vpop.xlane.xlu0 %3881 }
 0x38a   : > { %3984 = vst.msk [vmem:[%s7130_s7 + $0x158] sm:$0xff] %vm3940_vm13, %v3882_v35 }
 0x38d   : > { %v3885_v14 = vpop.xlane.xlu1 %3884 }
 0x38e   : > { %3985 = vst.msk [vmem:[%s7130_s7 + $0x160] sm:$0xff] %vm3940_vm13, %v3885_v14 }
 0x391   : > { %v3888_v46 = vpop.xlane.xlu0 %3887 }
 0x392   : > { %3986 = vst.msk [vmem:[%s7130_s7 + $0x168] sm:$0xff] %vm3940_vm13, %v3888_v46 }
 0x395   : > { %v3891_v38 = vpop.xlane.xlu1 %3890 }
 0x396   : > { %3987 = vst.msk [vmem:[%s7130_s7 + $0x170] sm:$0xff] %vm3940_vm13, %v3891_v38 }
 0x399   : > { %v3894_v19 = vpop.xlane.xlu0 %3893 }
 0x39a   : > { %3988 = vst.msk [vmem:[%s7130_s7 + $0x178] sm:$0xff] %vm3940_vm13, %v3894_v19 }
 0x39d   : > { %v3897_v10 = vpop.xlane.xlu1 %3896 }
 0x39e   : > { %3989 = vst.msk [vmem:[%s7130_s7 + $0x180] sm:$0xff] %vm3940_vm13, %v3897_v10 }
 0x3a1   : > { %v3900_v37 = vpop.xlane.xlu0 %3899 }
 0x3a2   : > { %3990 = vst.msk [vmem:[%s7130_s7 + $0x188] sm:$0xff] %vm3940_vm13, %v3900_v37 }
 0x3a5   : > { %v3903_v23 = vpop.xlane.xlu1 %3902 }
 0x3a6   : > { %3991 = vst.msk [vmem:[%s7130_s7 + $0x190] sm:$0xff] %vm3940_vm13, %v3903_v23 }
 0x3a9   : > { %v3906_v36 = vpop.xlane.xlu0 %3905 }
 0x3aa   : > { %3992 = vst.msk [vmem:[%s7130_s7 + $0x198] sm:$0xff] %vm3940_vm13, %v3906_v36 }
 0x3ad   : > { %v3909_v16 = vpop.xlane.xlu1 %3908 }
 0x3ae   : > { %3993 = vst.msk [vmem:[%s7130_s7 + $0x1a0] sm:$0xff] %vm3940_vm13, %v3909_v16 }
 0x3b1   : > { %v3912_v25 = vpop.xlane.xlu0 %3911 }
 0x3b2   : > { %3994 = vst.msk [vmem:[%s7130_s7 + $0x1a8] sm:$0xff] %vm3940_vm13, %v3912_v25 }
 0x3b5   : > { %v3915_v54 = vpop.xlane.xlu1 %3914 }
 0x3b6   : > { %3995 = vst.msk [vmem:[%s7130_s7 + $0x1b0] sm:$0xff] %vm3940_vm13, %v3915_v54 }
 0x3b9   : > { %v3918_v53 = vpop.xlane.xlu0 %3917 }
 0x3ba   : > { %3996 = vst.msk [vmem:[%s7130_s7 + $0x1b8] sm:$0xff] %vm3940_vm13, %v3918_v53 }
 0x3bd   : > { %v3921_v27 = vpop.xlane.xlu1 %3920 }
 0x3be   : > { %3997 = vst.msk [vmem:[%s7130_s7 + $0x1c0] sm:$0xff] %vm3940_vm13, %v3921_v27 }
 0x3c1   : > { %v3924_v58 = vpop.xlane.xlu0 %3923 }
 0x3c2   : > { %3998 = vst.msk [vmem:[%s7130_s7 + $0x1c8] sm:$0xff] %vm3940_vm13, %v3924_v58 }
 0x3c5   : > { %v3927_v2 = vpop.xlane.xlu1 %3926 }
 0x3c6   : > { %3999 = vst.msk [vmem:[%s7130_s7 + $0x1d0] sm:$0xff] %vm3940_vm13, %v3927_v2 }
 0x3c9   : > { %v3930_v4 = vpop.xlane.xlu0 %3929 }
 0x3ca   : > { %4000 = vst.msk [vmem:[%s7130_s7 + $0x1d8] sm:$0xff] %vm3940_vm13, %v3930_v4 }
 0x3cd   : > { %v3933_v44 = vpop.xlane.xlu1 %3932 }
 0x3ce   : > { %4001 = vst.msk [vmem:[%s7130_s7 + $0x1e0] sm:$0xff] %vm3940_vm13, %v3933_v44 }
 0x3d1   : > { %v3936_v63 = vpop.xlane.xlu0 %3935 }
 0x3d2   : > { %4002 = vst.msk [vmem:[%s7130_s7 + $0x1e8] sm:$0xff] %vm3940_vm13, %v3936_v63 }
 0x3d5   : > { %v3939_v18 = vpop.xlane.xlu1 %3938 }
 0x3d6   : > { %4003 = vst.msk [vmem:[%s7130_s7 + $0x1f0] sm:$0xff] %vm3940_vm13, %v3939_v18 }
 0x3d7 PF: > { %s14_s15 = sadd.s32 1, %s5284_s15  }
 0x3d8   : > { %p11_p4 = scmp.ge.s32.totalorder %s14_s15, 4  }
 0x3da   :  { %13 = sbr.rel (!%p11_p4) target bundleno = 1 (0x1), region = 69 }

</bundles_post_ra>
